<compile_context>
chip_gen: v6e
topology: v6e:2x2x1
jax: 0.10.0
libtpu: 0.0.40
codegen_flags: <defaults>
</compile_context>

<pallas_src>
import functools

import jax
import jax.numpy as jnp
from jax.experimental import pallas as pl
from jax.experimental.pallas import tpu as pltpu


def _align8(n):
    return ((n + 7) // 8) * 8


def _pad128(n):
    return ((n + 127) // 128) * 128


# ----------------------------------------------------------------------------
# Fused Pallas kernel: full EEGInceptionMI forward for ONE sample per grid step
# ----------------------------------------------------------------------------

def _eeg_inception_kernel(x_ref, wb_ref, bb_ref, wt_ref, wp_ref, bm_ref,
                          wr_ref, br_ref, wfc_ref, bfc_ref,
                          o_ref,
                          pad_ref, im_ref, mp_ref,
                          *, T, C, F, Kmax, KU):
    f32 = jnp.float32
    bf16 = jnp.bfloat16
    padK, padU = Kmax // 2, KU // 2
    offK, offU = _align8(padK), _align8(padU)    # sublane-aligned interior offsets

    # (Re)initialize only the constant pad borders each grid step.  The
    # interiors are fully rewritten before every read, so this is all the
    # cross-step state we need -- and it stays correct if the batch axis is
    # megacore-sharded (a pl.when(program_id == 0) guard would be skipped on
    # the second TensorCore).
    zero_border = jnp.zeros((offK, F), f32)
    pad_ref[pl.ds(0, offK), :] = zero_border                  # zero 'same' pad
    pad_ref[pl.ds(offK + T, offK), :] = zero_border
    ninf_border = jnp.full((offU, C), -jnp.inf, f32)
    mp_ref[pl.ds(0, offU), :] = ninf_border                   # maxpool -inf pad
    mp_ref[pl.ds(offU + T, offU), :] = ninf_border

    def mm(a, b):
        # bf16 MXU inputs, f32 accumulation.
        return jnp.dot(a.astype(bf16), b, preferred_element_type=f32)

    def inception(x_val, m):
        """One inception module: (T, C) -> (T, C)."""
        # Bottleneck 1x1 conv (bias only, no BN / activation).
        x1 = mm(x_val, wb_ref[m]) + bb_ref[m]                  # (T, F) f32
        # Temporal branches: shared zero-padded window -> im2col slab -> one
        # matmul against the combined (Kmax*F, C) weight (BN folded, pool
        # columns zero).
        pad_ref[pl.ds(offK, T), :] = x1
        for k in range(Kmax):                                  # static unroll
            im_ref[:, k * F:(k + 1) * F] = pad_ref[pl.ds(offK - padK + k, T), :]
        acc = mm(im_ref[...], wt_ref[m])                       # (T, C) f32
        # Max-pool branch (kernel KU, stride 1, -inf 'same' padding) + 1x1 conv.
        mp_ref[pl.ds(offU, T), :] = x_val
        mx = mp_ref[pl.ds(offU - padU, T), :]
        for k in range(1, KU):
            mx = jnp.maximum(mx, mp_ref[pl.ds(offU - padU + k, T), :])
        acc = acc + mm(mx, wp_ref[m])
        # Folded BatchNorm (+ conv biases) + ReLU, full-lane result.
        return jnp.maximum(acc + bm_ref[m], 0.0)

    def residual(x_val, r):
        # conv 1x1 -> BN (folded) -> ReLU
        return jnp.maximum(mm(x_val, wr_ref[r]) + br_ref[r], 0.0)

    x = x_ref[...]                                             # (T, C) f32

    res1 = residual(x, 0)
    out = x
    for m in range(3):                                         # inception block 1
        out = inception(out, m)
    out = out + res1

    res2 = residual(out, 1)
    for m in range(3, 6):                                      # inception block 2
        out = inception(out, m)
    out = out + res2

    # Global average pool over time (XLU reduce) + final Linear.
    pooled = jnp.sum(out, axis=0, keepdims=True) * (1.0 / T)   # (1, C)
    o_ref[0] = mm(pooled, wfc_ref[...]) + bfc_ref[...]         # (1, NP)


# ----------------------------------------------------------------------------
# Host wrapper
# ----------------------------------------------------------------------------

def eeg_inception_mi_forward(x, params, cfg):
    """x: (B, n_chans, n_times) -> (B, n_outputs)."""
    B, n_chans, T = x.shape
    F = cfg['n_filters']
    kernel_sizes = list(cfg['kernel_sizes'])
    KU = cfg['kernel_unit']
    n_out = cfg['n_outputs']
    n_convs = len(kernel_sizes)
    C_real = (n_convs + 1) * F
    C = _pad128(C_real)                      # lane-dense channel slab
    Kmax = max(kernel_sizes)
    NP = params['wfc'].shape[1]              # lane-dense padded output width

    assert KU % 2 == 1 and all(k % 2 == 1 for k in kernel_sizes), (
        "temporal kernel sizes must be odd so 'same' padding preserves T")
    assert T % 8 == 0, "n_times must be a multiple of 8 for aligned time tiles"
    assert n_chans <= C and n_out <= NP

    # (B, Cin, T) -> channels-last (B*T, C); channels zero-padded to the full
    # lane width C (padded channels only ever hit zero weight rows, so the
    # semantics are unchanged).
    xt = jnp.transpose(x, (0, 2, 1)).astype(jnp.float32)       # (B, T, Cin)
    xt = jnp.pad(xt, ((0, 0), (0, 0), (0, C - n_chans)))
    x_flat = xt.reshape(B * T, C)

    padK, padU = Kmax // 2, KU // 2
    offK, offU = _align8(padK), _align8(padU)

    kernel = functools.partial(_eeg_inception_kernel,
                               T=T, C=C, F=F, Kmax=Kmax, KU=KU)

    def full_spec(shape):
        return pl.BlockSpec(shape, lambda b, _n=len(shape): (0,) * _n)

    out = pl.pallas_call(
        kernel,
        out_shape=jax.ShapeDtypeStruct((B, 1, NP), jnp.float32),
        grid_spec=pltpu.PrefetchScalarGridSpec(
            num_scalar_prefetch=0,
            grid=(B,),
            in_specs=[
                pl.BlockSpec((T, C), lambda b: (b, 0)),        # one sample tile
                full_spec(params['wb'].shape),
                full_spec(params['bb'].shape),
                full_spec(params['wt'].shape),
                full_spec(params['wp'].shape),
                full_spec(params['bm'].shape),
                full_spec(params['wr'].shape),
                full_spec(params['br'].shape),
                full_spec(params['wfc'].shape),
                full_spec(params['bfc'].shape),
            ],
            out_specs=pl.BlockSpec((1, 1, NP), lambda b: (b, 0, 0)),
            scratch_shapes=[
                pltpu.VMEM((T + 2 * offK, F), jnp.float32),     # zero-pad window
                pltpu.VMEM((T, Kmax * F), jnp.float32),         # im2col slab
                pltpu.VMEM((T + 2 * offU, C), jnp.float32),     # maxpool window
            ]),
        compiler_params=pltpu.CompilerParams(
            dimension_semantics=("parallel",),
            vmem_limit_bytes=32 * 1024 * 1024),
    )(x_flat, params['wb'], params['bb'], params['wt'], params['wp'],
      params['bm'], params['wr'], params['br'], params['wfc'], params['bfc'])

    return out.reshape(B, NP)[:, :n_out]


# ----------------------------------------------------------------------------
# Deterministic synthetic parameters (BatchNorm folded, kernel-ready packing)
# ----------------------------------------------------------------------------

def _bn_affine(key, c, eps=1e-5):
    k1, k2, k3, k4 = jax.random.split(key, 4)
    gamma = 1.0 + 0.1 * jax.random.normal(k1, (c,), jnp.float32)
    beta = 0.1 * jax.random.normal(k2, (c,), jnp.float32)
    mu = 0.1 * jax.random.normal(k3, (c,), jnp.float32)
    var = 1.0 + 0.1 * jax.random.uniform(k4, (c,), jnp.float32)
    scale = gamma / jnp.sqrt(var + eps)
    shift = beta - mu * scale
    return scale, shift


def _pack_inception(key, in_ch, n_filters, kernel_sizes, C):
    """One inception module's params, BN folded + packed for the fused kernel."""
    F = n_filters
    n_convs = len(kernel_sizes)
    C_real = (n_convs + 1) * F
    Kmax = max(kernel_sizes)
    keys = jax.random.split(key, 5 + 2 * n_convs)
    scale, shift = _bn_affine(keys[0], C_real)                 # (C_real,)

    # bottleneck (bias kept as-is: no BN on this intermediate tensor)
    wb = jnp.zeros((C, F), jnp.float32)
    wb = wb.at[:in_ch].set(0.1 * jax.random.normal(keys[1], (in_ch, F), jnp.float32))
    bb = 0.1 * jax.random.normal(keys[2], (1, F), jnp.float32)

    # temporal branches: combined (Kmax, F, C) weight, each branch centered in
    # the Kmax window, BN scale folded in; pool / padded columns stay zero.
    wt = jnp.zeros((Kmax, F, C), jnp.float32)
    bias = jnp.zeros((1, C), jnp.float32)
    for i, K in enumerate(kernel_sizes):
        w = 0.1 * jax.random.normal(keys[3 + 2 * i], (K, F, F), jnp.float32)
        b = 0.1 * jax.random.normal(keys[4 + 2 * i], (1, F), jnp.float32)
        sc = scale[i * F:(i + 1) * F]
        sh = shift[i * F:(i + 1) * F]
        off = (Kmax - K) // 2
        wt = wt.at[off:off + K, :, i * F:(i + 1) * F].set(w * sc[None, None, :])
        bias = bias.at[:, i * F:(i + 1) * F].set(b * sc[None, :] + sh[None, :])

    # pooling 1x1 conv: occupies the last F real output columns only.
    wp = jnp.zeros((C, C), jnp.float32)
    w = 0.1 * jax.random.normal(keys[3 + 2 * n_convs], (in_ch, F), jnp.float32)
    b = 0.1 * jax.random.normal(keys[4 + 2 * n_convs], (1, F), jnp.float32)
    sc = scale[n_convs * F:]
    sh = shift[n_convs * F:]
    wp = wp.at[:in_ch, n_convs * F:C_real].set(w * sc[None, :])
    bias = bias.at[:, n_convs * F:C_real].set(b * sc[None, :] + sh[None, :])

    wt = wt.reshape(Kmax * F, C)                               # im2col layout
    return wb, bb, wt, wp, bias


def _pack_residual(key, in_ch, C_real, C):
    k1, k2, k3 = jax.random.split(key, 3)
    scale, shift = _bn_affine(k3, C_real)
    w = 0.1 * jax.random.normal(k1, (in_ch, C_real), jnp.float32)
    b = 0.1 * jax.random.normal(k2, (1, C_real), jnp.float32)
    wr = jnp.zeros((C, C), jnp.float32).at[:in_ch, :C_real].set(w * scale[None, :])
    br = jnp.zeros((1, C), jnp.float32).at[:, :C_real].set(
        b * scale[None, :] + shift[None, :])
    return wr, br


def make_params(key, n_chans, n_outputs, n_filters, kernel_sizes):
    n_convs = len(kernel_sizes)
    C_real = (n_convs + 1) * n_filters
    C = _pad128(C_real)
    NP = _pad128(n_outputs)
    keys = jax.random.split(key, 10)
    in_chs = [n_chans] + [C_real] * 5
    packed = [_pack_inception(keys[m], in_chs[m], n_filters, kernel_sizes, C)
              for m in range(6)]
    wb, bb, wt, wp, bm = [jnp.stack(z) for z in zip(*packed)]
    wr1, br1 = _pack_residual(keys[6], n_chans, C_real, C)
    wr2, br2 = _pack_residual(keys[7], C_real, C_real, C)
    wfc = jnp.zeros((C, NP), jnp.float32).at[:C_real, :n_outputs].set(
        0.1 * jax.random.normal(keys[8], (C_real, n_outputs), jnp.float32))
    bfc = jnp.zeros((1, NP), jnp.float32).at[:, :n_outputs].set(
        0.1 * jax.random.normal(keys[9], (1, n_outputs), jnp.float32))
    bf16 = jnp.bfloat16
    return {
        'wb': wb.astype(bf16), 'bb': bb,
        'wt': wt.astype(bf16), 'wp': wp.astype(bf16), 'bm': bm,
        'wr': jnp.stack([wr1, wr2]).astype(bf16),
        'br': jnp.stack([br1, br2]),
        'wfc': wfc.astype(bf16), 'bfc': bfc,
    }


# ----------------------------------------------------------------------------
# Main
# ----------------------------------------------------------------------------

if __name__ == "__main__":
    # Small synthetic config consistent with the module's constructor.
    B = 2
    n_chans = 4
    n_times = 16
    n_outputs = 3
    n_convs = 2
    n_filters = 8
    kernel_unit_s = 0.1
    sfreq = 30                                     # -> kernel_unit = 3 (odd)

    kernel_unit = int(kernel_unit_s * sfreq)
    kernel_sizes = [(u * 2 + 1) * kernel_unit for u in range(n_convs)]  # [3, 9]

    cfg = dict(n_filters=n_filters, kernel_sizes=kernel_sizes,
               kernel_unit=kernel_unit, n_outputs=n_outputs)

    key = jax.random.PRNGKey(0)
    kp, kx = jax.random.split(key)
    params = make_params(kp, n_chans, n_outputs, n_filters, kernel_sizes)
    x = jax.random.normal(kx, (B, n_chans, n_times), jnp.float32)

    fwd = jax.jit(functools.partial(eeg_inception_mi_forward, cfg=cfg))
    out = jax.block_until_ready(fwd(x, params))

    assert out.shape == (B, n_outputs), out.shape
    assert bool(jnp.all(jnp.isfinite(out)))
    print("KERNEL_OK")
</pallas_src>

<mosaic_0001>
module attributes {stable_mosaic.version = 11 : i64} {
  func.func @_eeg_inception_kernel(%arg0: i32, %arg1: memref<16x128xf32, #tpu.memory_space<vmem>>, %arg2: memref<6x128x8xbf16, #tpu.memory_space<vmem>>, %arg3: memref<6x1x8xf32, #tpu.memory_space<vmem>>, %arg4: memref<6x72x128xbf16, #tpu.memory_space<vmem>>, %arg5: memref<6x128x128xbf16, #tpu.memory_space<vmem>>, %arg6: memref<6x1x128xf32, #tpu.memory_space<vmem>>, %arg7: memref<2x128x128xbf16, #tpu.memory_space<vmem>>, %arg8: memref<2x1x128xf32, #tpu.memory_space<vmem>>, %arg9: memref<128x128xbf16, #tpu.memory_space<vmem>>, %arg10: memref<1x128xf32, #tpu.memory_space<vmem>>, %arg11: memref<1x1x128xf32, #tpu.memory_space<vmem>>, %arg12: memref<32x8xf32, #tpu.memory_space<vmem>>, %arg13: memref<16x72xf32, #tpu.memory_space<vmem>>, %arg14: memref<32x128xf32, #tpu.memory_space<vmem>>) attributes {dimension_semantics = [#tpu.dimension_semantics<parallel>], iteration_bounds = array<i64: 2>, scalar_prefetch = 0 : i64, scratch_operands = 3 : i64, tpu.core_type = #tpu.core_type<tc>, window_params = [{transform_indices = @transform_0, window_bounds = array<i64: 16, 128>}, {pipeline_mode = #tpu.pipeline_mode<synchronous>, transform_indices = @transform_1, window_bounds = array<i64: 6, 128, 8>}, {pipeline_mode = #tpu.pipeline_mode<synchronous>, transform_indices = @transform_2, window_bounds = array<i64: 6, 1, 8>}, {pipeline_mode = #tpu.pipeline_mode<synchronous>, transform_indices = @transform_3, window_bounds = array<i64: 6, 72, 128>}, {pipeline_mode = #tpu.pipeline_mode<synchronous>, transform_indices = @transform_4, window_bounds = array<i64: 6, 128, 128>}, {pipeline_mode = #tpu.pipeline_mode<synchronous>, transform_indices = @transform_5, window_bounds = array<i64: 6, 1, 128>}, {pipeline_mode = #tpu.pipeline_mode<synchronous>, transform_indices = @transform_6, window_bounds = array<i64: 2, 128, 128>}, {pipeline_mode = #tpu.pipeline_mode<synchronous>, transform_indices = @transform_7, window_bounds = array<i64: 2, 1, 128>}, {pipeline_mode = #tpu.pipeline_mode<synchronous>, transform_indices = @transform_8, window_bounds = array<i64: 128, 128>}, {pipeline_mode = #tpu.pipeline_mode<synchronous>, transform_indices = @transform_9, window_bounds = array<i64: 1, 128>}, {transform_indices = @transform_10, window_bounds = array<i64: 1, 1, 128>}]} {
    %cst = arith.constant 0.000000e+00 : f32
    %0 = vector.broadcast %cst : f32 to vector<8x8xf32>
    %c0 = arith.constant 0 : index
    %c0_0 = arith.constant 0 : index
    %1 = vector.load %arg12[%c0, %c0_0] : memref<32x8xf32, #tpu.memory_space<vmem>>, vector<8x8xf32>
    tpu.vector_store %arg12[%c0, %c0_0], %0 {strides = array<i32>} : memref<32x8xf32, #tpu.memory_space<vmem>>, vector<8x8xf32>,
    %c24 = arith.constant 24 : index
    %c0_1 = arith.constant 0 : index
    %2 = vector.load %arg12[%c24, %c0_1] : memref<32x8xf32, #tpu.memory_space<vmem>>, vector<8x8xf32>
    tpu.vector_store %arg12[%c24, %c0_1], %0 {strides = array<i32>} : memref<32x8xf32, #tpu.memory_space<vmem>>, vector<8x8xf32>,
    %cst_2 = arith.constant 0xFF800000 : f32
    %3 = vector.broadcast %cst_2 : f32 to vector<8x128xf32>
    %c0_3 = arith.constant 0 : index
    %c0_4 = arith.constant 0 : index
    %4 = vector.load %arg14[%c0_3, %c0_4] : memref<32x128xf32, #tpu.memory_space<vmem>>, vector<8x128xf32>
    tpu.vector_store %arg14[%c0_3, %c0_4], %3 {strides = array<i32>} : memref<32x128xf32, #tpu.memory_space<vmem>>, vector<8x128xf32>,
    %c24_5 = arith.constant 24 : index
    %c0_6 = arith.constant 0 : index
    %5 = vector.load %arg14[%c24_5, %c0_6] : memref<32x128xf32, #tpu.memory_space<vmem>>, vector<8x128xf32>
    tpu.vector_store %arg14[%c24_5, %c0_6], %3 {strides = array<i32>} : memref<32x128xf32, #tpu.memory_space<vmem>>, vector<8x128xf32>,
    %c0_7 = arith.constant 0 : index
    %c0_8 = arith.constant 0 : index
    %6 = vector.load %arg1[%c0_7, %c0_8] : memref<16x128xf32, #tpu.memory_space<vmem>>, vector<16x128xf32>
    %c0_9 = arith.constant 0 : index
    %c0_10 = arith.constant 0 : index
    %c0_11 = arith.constant 0 : index
    %7 = vector.load %arg7[%c0_9, %c0_10, %c0_11] : memref<2x128x128xbf16, #tpu.memory_space<vmem>>, vector<1x128x128xbf16>
    %8 = vector.shape_cast %7 : vector<1x128x128xbf16> to vector<128x128xbf16>
    %9 = arith.truncf %6 : vector<16x128xf32> to vector<16x128xbf16>
    %cst_12 = arith.constant dense<0.000000e+00> : vector<16x128xf32>
    %10 = tpu.matmul %9, %8, %cst_12 {dimension_numbers = #tpu.dot_dimension_numbers<[1], [0], [0], [1], [0, 0, 1, 1], [], []>} : vector<16x128xbf16>, vector<128x128xbf16>, vector<16x128xf32> -> vector<16x128xf32>
    %c0_13 = arith.constant 0 : index
    %c0_14 = arith.constant 0 : index
    %c0_15 = arith.constant 0 : index
    %11 = vector.load %arg8[%c0_13, %c0_14, %c0_15] : memref<2x1x128xf32, #tpu.memory_space<vmem>>, vector<1x1x128xf32>
    %12 = vector.shape_cast %11 : vector<1x1x128xf32> to vector<1x128xf32>
    %13 = vector.broadcast %12 : vector<1x128xf32> to vector<16x128xf32>
    %14 = arith.addf %10, %13 : vector<16x128xf32>
    %cst_16 = arith.constant 0.000000e+00 : f32
    %15 = vector.broadcast %cst_16 : f32 to vector<16x128xf32>
    %16 = arith.maximumf %14, %15 : vector<16x128xf32>
    %c0_17 = arith.constant 0 : index
    %c0_18 = arith.constant 0 : index
    %c0_19 = arith.constant 0 : index
    %17 = vector.load %arg2[%c0_17, %c0_18, %c0_19] : memref<6x128x8xbf16, #tpu.memory_space<vmem>>, vector<1x128x8xbf16>
    %18 = vector.shape_cast %17 : vector<1x128x8xbf16> to vector<128x8xbf16>
    %19 = arith.truncf %6 : vector<16x128xf32> to vector<16x128xbf16>
    %cst_20 = arith.constant dense<0.000000e+00> : vector<16x8xf32>
    %20 = tpu.matmul %19, %18, %cst_20 {dimension_numbers = #tpu.dot_dimension_numbers<[1], [0], [0], [1], [0, 0, 1, 1], [], []>} : vector<16x128xbf16>, vector<128x8xbf16>, vector<16x8xf32> -> vector<16x8xf32>
    %c0_21 = arith.constant 0 : index
    %c0_22 = arith.constant 0 : index
    %c0_23 = arith.constant 0 : index
    %21 = vector.load %arg3[%c0_21, %c0_22, %c0_23] : memref<6x1x8xf32, #tpu.memory_space<vmem>>, vector<1x1x8xf32>
    %22 = vector.shape_cast %21 : vector<1x1x8xf32> to vector<1x8xf32>
    %23 = vector.broadcast %22 : vector<1x8xf32> to vector<16x8xf32>
    %24 = arith.addf %20, %23 : vector<16x8xf32>
    %c8 = arith.constant 8 : index
    %c0_24 = arith.constant 0 : index
    %25 = vector.load %arg12[%c8, %c0_24] : memref<32x8xf32, #tpu.memory_space<vmem>>, vector<16x8xf32>
    tpu.vector_store %arg12[%c8, %c0_24], %24 {strides = array<i32>} : memref<32x8xf32, #tpu.memory_space<vmem>>, vector<16x8xf32>,
    %c4 = arith.constant 4 : index
    %c0_25 = arith.constant 0 : index
    %26 = vector.load %arg12[%c4, %c0_25] : memref<32x8xf32, #tpu.memory_space<vmem>>, vector<16x8xf32>
    %c0_26 = arith.constant 0 : index
    %c0_27 = arith.constant 0 : index
    %27 = vector.load %arg13[%c0_26, %c0_27] : memref<16x72xf32, #tpu.memory_space<vmem>>, vector<16x8xf32>
    tpu.vector_store %arg13[%c0_26, %c0_27], %26 {strides = array<i32>} : memref<16x72xf32, #tpu.memory_space<vmem>>, vector<16x8xf32>,
    %c5 = arith.constant 5 : index
    %c0_28 = arith.constant 0 : index
    %28 = vector.load %arg12[%c5, %c0_28] : memref<32x8xf32, #tpu.memory_space<vmem>>, vector<16x8xf32>
    %c0_29 = arith.constant 0 : index
    %c8_30 = arith.constant 8 : index
    %29 = vector.load %arg13[%c0_29, %c8_30] : memref<16x72xf32, #tpu.memory_space<vmem>>, vector<16x8xf32>
    tpu.vector_store %arg13[%c0_29, %c8_30], %28 {strides = array<i32>} : memref<16x72xf32, #tpu.memory_space<vmem>>, vector<16x8xf32>,
    %c6 = arith.constant 6 : index
    %c0_31 = arith.constant 0 : index
    %30 = vector.load %arg12[%c6, %c0_31] : memref<32x8xf32, #tpu.memory_space<vmem>>, vector<16x8xf32>
    %c0_32 = arith.constant 0 : index
    %c16 = arith.constant 16 : index
    %31 = vector.load %arg13[%c0_32, %c16] : memref<16x72xf32, #tpu.memory_space<vmem>>, vector<16x8xf32>
    tpu.vector_store %arg13[%c0_32, %c16], %30 {strides = array<i32>} : memref<16x72xf32, #tpu.memory_space<vmem>>, vector<16x8xf32>,
    %c7 = arith.constant 7 : index
    %c0_33 = arith.constant 0 : index
    %32 = vector.load %arg12[%c7, %c0_33] : memref<32x8xf32, #tpu.memory_space<vmem>>, vector<16x8xf32>
    %c0_34 = arith.constant 0 : index
    %c24_35 = arith.constant 24 : index
    %33 = vector.load %arg13[%c0_34, %c24_35] : memref<16x72xf32, #tpu.memory_space<vmem>>, vector<16x8xf32>
    tpu.vector_store %arg13[%c0_34, %c24_35], %32 {strides = array<i32>} : memref<16x72xf32, #tpu.memory_space<vmem>>, vector<16x8xf32>,
    %c8_36 = arith.constant 8 : index
    %c0_37 = arith.constant 0 : index
    %34 = vector.load %arg12[%c8_36, %c0_37] : memref<32x8xf32, #tpu.memory_space<vmem>>, vector<16x8xf32>
    %c0_38 = arith.constant 0 : index
    %c32 = arith.constant 32 : index
    %35 = vector.load %arg13[%c0_38, %c32] : memref<16x72xf32, #tpu.memory_space<vmem>>, vector<16x8xf32>
    tpu.vector_store %arg13[%c0_38, %c32], %34 {strides = array<i32>} : memref<16x72xf32, #tpu.memory_space<vmem>>, vector<16x8xf32>,
    %c9 = arith.constant 9 : index
    %c0_39 = arith.constant 0 : index
    %36 = vector.load %arg12[%c9, %c0_39] : memref<32x8xf32, #tpu.memory_space<vmem>>, vector<16x8xf32>
    %c0_40 = arith.constant 0 : index
    %c40 = arith.constant 40 : index
    %37 = vector.load %arg13[%c0_40, %c40] : memref<16x72xf32, #tpu.memory_space<vmem>>, vector<16x8xf32>
    tpu.vector_store %arg13[%c0_40, %c40], %36 {strides = array<i32>} : memref<16x72xf32, #tpu.memory_space<vmem>>, vector<16x8xf32>,
    %c10 = arith.constant 10 : index
    %c0_41 = arith.constant 0 : index
    %38 = vector.load %arg12[%c10, %c0_41] : memref<32x8xf32, #tpu.memory_space<vmem>>, vector<16x8xf32>
    %c0_42 = arith.constant 0 : index
    %c48 = arith.constant 48 : index
    %39 = vector.load %arg13[%c0_42, %c48] : memref<16x72xf32, #tpu.memory_space<vmem>>, vector<16x8xf32>
    tpu.vector_store %arg13[%c0_42, %c48], %38 {strides = array<i32>} : memref<16x72xf32, #tpu.memory_space<vmem>>, vector<16x8xf32>,
    %c11 = arith.constant 11 : index
    %c0_43 = arith.constant 0 : index
    %40 = vector.load %arg12[%c11, %c0_43] : memref<32x8xf32, #tpu.memory_space<vmem>>, vector<16x8xf32>
    %c0_44 = arith.constant 0 : index
    %c56 = arith.constant 56 : index
    %41 = vector.load %arg13[%c0_44, %c56] : memref<16x72xf32, #tpu.memory_space<vmem>>, vector<16x8xf32>
    tpu.vector_store %arg13[%c0_44, %c56], %40 {strides = array<i32>} : memref<16x72xf32, #tpu.memory_space<vmem>>, vector<16x8xf32>,
    %c12 = arith.constant 12 : index
    %c0_45 = arith.constant 0 : index
    %42 = vector.load %arg12[%c12, %c0_45] : memref<32x8xf32, #tpu.memory_space<vmem>>, vector<16x8xf32>
    %c0_46 = arith.constant 0 : index
    %c64 = arith.constant 64 : index
    %43 = vector.load %arg13[%c0_46, %c64] : memref<16x72xf32, #tpu.memory_space<vmem>>, vector<16x8xf32>
    tpu.vector_store %arg13[%c0_46, %c64], %42 {strides = array<i32>} : memref<16x72xf32, #tpu.memory_space<vmem>>, vector<16x8xf32>,
    %c0_47 = arith.constant 0 : index
    %c0_48 = arith.constant 0 : index
    %44 = vector.load %arg13[%c0_47, %c0_48] : memref<16x72xf32, #tpu.memory_space<vmem>>, vector<16x72xf32>
    %c0_49 = arith.constant 0 : index
    %c0_50 = arith.constant 0 : index
    %c0_51 = arith.constant 0 : index
    %45 = vector.load %arg4[%c0_49, %c0_50, %c0_51] : memref<6x72x128xbf16, #tpu.memory_space<vmem>>, vector<1x72x128xbf16>
    %46 = vector.shape_cast %45 : vector<1x72x128xbf16> to vector<72x128xbf16>
    %47 = arith.truncf %44 : vector<16x72xf32> to vector<16x72xbf16>
    %cst_52 = arith.constant dense<0.000000e+00> : vector<16x128xf32>
    %48 = tpu.matmul %47, %46, %cst_52 {dimension_numbers = #tpu.dot_dimension_numbers<[1], [0], [0], [1], [0, 0, 1, 1], [], []>} : vector<16x72xbf16>, vector<72x128xbf16>, vector<16x128xf32> -> vector<16x128xf32>
    %c8_53 = arith.constant 8 : index
    %c0_54 = arith.constant 0 : index
    %49 = vector.load %arg14[%c8_53, %c0_54] : memref<32x128xf32, #tpu.memory_space<vmem>>, vector<16x128xf32>
    tpu.vector_store %arg14[%c8_53, %c0_54], %6 {strides = array<i32>} : memref<32x128xf32, #tpu.memory_space<vmem>>, vector<16x128xf32>,
    %c7_55 = arith.constant 7 : index
    %c0_56 = arith.constant 0 : index
    %50 = vector.load %arg14[%c7_55, %c0_56] : memref<32x128xf32, #tpu.memory_space<vmem>>, vector<16x128xf32>
    %c8_57 = arith.constant 8 : index
    %c0_58 = arith.constant 0 : index
    %51 = vector.load %arg14[%c8_57, %c0_58] : memref<32x128xf32, #tpu.memory_space<vmem>>, vector<16x128xf32>
    %52 = arith.maximumf %50, %51 : vector<16x128xf32>
    %c9_59 = arith.constant 9 : index
    %c0_60 = arith.constant 0 : index
    %53 = vector.load %arg14[%c9_59, %c0_60] : memref<32x128xf32, #tpu.memory_space<vmem>>, vector<16x128xf32>
    %54 = arith.maximumf %52, %53 : vector<16x128xf32>
    %c0_61 = arith.constant 0 : index
    %c0_62 = arith.constant 0 : index
    %c0_63 = arith.constant 0 : index
    %55 = vector.load %arg5[%c0_61, %c0_62, %c0_63] : memref<6x128x128xbf16, #tpu.memory_space<vmem>>, vector<1x128x128xbf16>
    %56 = vector.shape_cast %55 : vector<1x128x128xbf16> to vector<128x128xbf16>
    %57 = arith.truncf %54 : vector<16x128xf32> to vector<16x128xbf16>
    %cst_64 = arith.constant dense<0.000000e+00> : vector<16x128xf32>
    %58 = tpu.matmul %57, %56, %cst_64 {dimension_numbers = #tpu.dot_dimension_numbers<[1], [0], [0], [1], [0, 0, 1, 1], [], []>} : vector<16x128xbf16>, vector<128x128xbf16>, vector<16x128xf32> -> vector<16x128xf32>
    %59 = arith.addf %48, %58 : vector<16x128xf32>
    %c0_65 = arith.constant 0 : index
    %c0_66 = arith.constant 0 : index
    %c0_67 = arith.constant 0 : index
    %60 = vector.load %arg6[%c0_65, %c0_66, %c0_67] : memref<6x1x128xf32, #tpu.memory_space<vmem>>, vector<1x1x128xf32>
    %61 = vector.shape_cast %60 : vector<1x1x128xf32> to vector<1x128xf32>
    %62 = vector.broadcast %61 : vector<1x128xf32> to vector<16x128xf32>
    %63 = arith.addf %59, %62 : vector<16x128xf32>
    %cst_68 = arith.constant 0.000000e+00 : f32
    %64 = vector.broadcast %cst_68 : f32 to vector<16x128xf32>
    %65 = arith.maximumf %63, %64 : vector<16x128xf32>
    %c1 = arith.constant 1 : index
    %c0_69 = arith.constant 0 : index
    %c0_70 = arith.constant 0 : index
    %66 = vector.load %arg2[%c1, %c0_69, %c0_70] : memref<6x128x8xbf16, #tpu.memory_space<vmem>>, vector<1x128x8xbf16>
    %67 = vector.shape_cast %66 : vector<1x128x8xbf16> to vector<128x8xbf16>
    %68 = arith.truncf %65 : vector<16x128xf32> to vector<16x128xbf16>
    %cst_71 = arith.constant dense<0.000000e+00> : vector<16x8xf32>
    %69 = tpu.matmul %68, %67, %cst_71 {dimension_numbers = #tpu.dot_dimension_numbers<[1], [0], [0], [1], [0, 0, 1, 1], [], []>} : vector<16x128xbf16>, vector<128x8xbf16>, vector<16x8xf32> -> vector<16x8xf32>
    %c1_72 = arith.constant 1 : index
    %c0_73 = arith.constant 0 : index
    %c0_74 = arith.constant 0 : index
    %70 = vector.load %arg3[%c1_72, %c0_73, %c0_74] : memref<6x1x8xf32, #tpu.memory_space<vmem>>, vector<1x1x8xf32>
    %71 = vector.shape_cast %70 : vector<1x1x8xf32> to vector<1x8xf32>
    %72 = vector.broadcast %71 : vector<1x8xf32> to vector<16x8xf32>
    %73 = arith.addf %69, %72 : vector<16x8xf32>
    %c8_75 = arith.constant 8 : index
    %c0_76 = arith.constant 0 : index
    %74 = vector.load %arg12[%c8_75, %c0_76] : memref<32x8xf32, #tpu.memory_space<vmem>>, vector<16x8xf32>
    tpu.vector_store %arg12[%c8_75, %c0_76], %73 {strides = array<i32>} : memref<32x8xf32, #tpu.memory_space<vmem>>, vector<16x8xf32>,
    %c4_77 = arith.constant 4 : index
    %c0_78 = arith.constant 0 : index
    %75 = vector.load %arg12[%c4_77, %c0_78] : memref<32x8xf32, #tpu.memory_space<vmem>>, vector<16x8xf32>
    %c0_79 = arith.constant 0 : index
    %c0_80 = arith.constant 0 : index
    %76 = vector.load %arg13[%c0_79, %c0_80] : memref<16x72xf32, #tpu.memory_space<vmem>>, vector<16x8xf32>
    tpu.vector_store %arg13[%c0_79, %c0_80], %75 {strides = array<i32>} : memref<16x72xf32, #tpu.memory_space<vmem>>, vector<16x8xf32>,
    %c5_81 = arith.constant 5 : index
    %c0_82 = arith.constant 0 : index
    %77 = vector.load %arg12[%c5_81, %c0_82] : memref<32x8xf32, #tpu.memory_space<vmem>>, vector<16x8xf32>
    %c0_83 = arith.constant 0 : index
    %c8_84 = arith.constant 8 : index
    %78 = vector.load %arg13[%c0_83, %c8_84] : memref<16x72xf32, #tpu.memory_space<vmem>>, vector<16x8xf32>
    tpu.vector_store %arg13[%c0_83, %c8_84], %77 {strides = array<i32>} : memref<16x72xf32, #tpu.memory_space<vmem>>, vector<16x8xf32>,
    %c6_85 = arith.constant 6 : index
    %c0_86 = arith.constant 0 : index
    %79 = vector.load %arg12[%c6_85, %c0_86] : memref<32x8xf32, #tpu.memory_space<vmem>>, vector<16x8xf32>
    %c0_87 = arith.constant 0 : index
    %c16_88 = arith.constant 16 : index
    %80 = vector.load %arg13[%c0_87, %c16_88] : memref<16x72xf32, #tpu.memory_space<vmem>>, vector<16x8xf32>
    tpu.vector_store %arg13[%c0_87, %c16_88], %79 {strides = array<i32>} : memref<16x72xf32, #tpu.memory_space<vmem>>, vector<16x8xf32>,
    %c7_89 = arith.constant 7 : index
    %c0_90 = arith.constant 0 : index
    %81 = vector.load %arg12[%c7_89, %c0_90] : memref<32x8xf32, #tpu.memory_space<vmem>>, vector<16x8xf32>
    %c0_91 = arith.constant 0 : index
    %c24_92 = arith.constant 24 : index
    %82 = vector.load %arg13[%c0_91, %c24_92] : memref<16x72xf32, #tpu.memory_space<vmem>>, vector<16x8xf32>
    tpu.vector_store %arg13[%c0_91, %c24_92], %81 {strides = array<i32>} : memref<16x72xf32, #tpu.memory_space<vmem>>, vector<16x8xf32>,
    %c8_93 = arith.constant 8 : index
    %c0_94 = arith.constant 0 : index
    %83 = vector.load %arg12[%c8_93, %c0_94] : memref<32x8xf32, #tpu.memory_space<vmem>>, vector<16x8xf32>
    %c0_95 = arith.constant 0 : index
    %c32_96 = arith.constant 32 : index
    %84 = vector.load %arg13[%c0_95, %c32_96] : memref<16x72xf32, #tpu.memory_space<vmem>>, vector<16x8xf32>
    tpu.vector_store %arg13[%c0_95, %c32_96], %83 {strides = array<i32>} : memref<16x72xf32, #tpu.memory_space<vmem>>, vector<16x8xf32>,
    %c9_97 = arith.constant 9 : index
    %c0_98 = arith.constant 0 : index
    %85 = vector.load %arg12[%c9_97, %c0_98] : memref<32x8xf32, #tpu.memory_space<vmem>>, vector<16x8xf32>
    %c0_99 = arith.constant 0 : index
    %c40_100 = arith.constant 40 : index
    %86 = vector.load %arg13[%c0_99, %c40_100] : memref<16x72xf32, #tpu.memory_space<vmem>>, vector<16x8xf32>
    tpu.vector_store %arg13[%c0_99, %c40_100], %85 {strides = array<i32>} : memref<16x72xf32, #tpu.memory_space<vmem>>, vector<16x8xf32>,
    %c10_101 = arith.constant 10 : index
    %c0_102 = arith.constant 0 : index
    %87 = vector.load %arg12[%c10_101, %c0_102] : memref<32x8xf32, #tpu.memory_space<vmem>>, vector<16x8xf32>
    %c0_103 = arith.constant 0 : index
    %c48_104 = arith.constant 48 : index
    %88 = vector.load %arg13[%c0_103, %c48_104] : memref<16x72xf32, #tpu.memory_space<vmem>>, vector<16x8xf32>
    tpu.vector_store %arg13[%c0_103, %c48_104], %87 {strides = array<i32>} : memref<16x72xf32, #tpu.memory_space<vmem>>, vector<16x8xf32>,
    %c11_105 = arith.constant 11 : index
    %c0_106 = arith.constant 0 : index
    %89 = vector.load %arg12[%c11_105, %c0_106] : memref<32x8xf32, #tpu.memory_space<vmem>>, vector<16x8xf32>
    %c0_107 = arith.constant 0 : index
    %c56_108 = arith.constant 56 : index
    %90 = vector.load %arg13[%c0_107, %c56_108] : memref<16x72xf32, #tpu.memory_space<vmem>>, vector<16x8xf32>
    tpu.vector_store %arg13[%c0_107, %c56_108], %89 {strides = array<i32>} : memref<16x72xf32, #tpu.memory_space<vmem>>, vector<16x8xf32>,
    %c12_109 = arith.constant 12 : index
    %c0_110 = arith.constant 0 : index
    %91 = vector.load %arg12[%c12_109, %c0_110] : memref<32x8xf32, #tpu.memory_space<vmem>>, vector<16x8xf32>
    %c0_111 = arith.constant 0 : index
    %c64_112 = arith.constant 64 : index
    %92 = vector.load %arg13[%c0_111, %c64_112] : memref<16x72xf32, #tpu.memory_space<vmem>>, vector<16x8xf32>
    tpu.vector_store %arg13[%c0_111, %c64_112], %91 {strides = array<i32>} : memref<16x72xf32, #tpu.memory_space<vmem>>, vector<16x8xf32>,
    %c0_113 = arith.constant 0 : index
    %c0_114 = arith.constant 0 : index
    %93 = vector.load %arg13[%c0_113, %c0_114] : memref<16x72xf32, #tpu.memory_space<vmem>>, vector<16x72xf32>
    %c1_115 = arith.constant 1 : index
    %c0_116 = arith.constant 0 : index
    %c0_117 = arith.constant 0 : index
    %94 = vector.load %arg4[%c1_115, %c0_116, %c0_117] : memref<6x72x128xbf16, #tpu.memory_space<vmem>>, vector<1x72x128xbf16>
    %95 = vector.shape_cast %94 : vector<1x72x128xbf16> to vector<72x128xbf16>
    %96 = arith.truncf %93 : vector<16x72xf32> to vector<16x72xbf16>
    %cst_118 = arith.constant dense<0.000000e+00> : vector<16x128xf32>
    %97 = tpu.matmul %96, %95, %cst_118 {dimension_numbers = #tpu.dot_dimension_numbers<[1], [0], [0], [1], [0, 0, 1, 1], [], []>} : vector<16x72xbf16>, vector<72x128xbf16>, vector<16x128xf32> -> vector<16x128xf32>
    %c8_119 = arith.constant 8 : index
    %c0_120 = arith.constant 0 : index
    %98 = vector.load %arg14[%c8_119, %c0_120] : memref<32x128xf32, #tpu.memory_space<vmem>>, vector<16x128xf32>
    tpu.vector_store %arg14[%c8_119, %c0_120], %65 {strides = array<i32>} : memref<32x128xf32, #tpu.memory_space<vmem>>, vector<16x128xf32>,
    %c7_121 = arith.constant 7 : index
    %c0_122 = arith.constant 0 : index
    %99 = vector.load %arg14[%c7_121, %c0_122] : memref<32x128xf32, #tpu.memory_space<vmem>>, vector<16x128xf32>
    %c8_123 = arith.constant 8 : index
    %c0_124 = arith.constant 0 : index
    %100 = vector.load %arg14[%c8_123, %c0_124] : memref<32x128xf32, #tpu.memory_space<vmem>>, vector<16x128xf32>
    %101 = arith.maximumf %99, %100 : vector<16x128xf32>
    %c9_125 = arith.constant 9 : index
    %c0_126 = arith.constant 0 : index
    %102 = vector.load %arg14[%c9_125, %c0_126] : memref<32x128xf32, #tpu.memory_space<vmem>>, vector<16x128xf32>
    %103 = arith.maximumf %101, %102 : vector<16x128xf32>
    %c1_127 = arith.constant 1 : index
    %c0_128 = arith.constant 0 : index
    %c0_129 = arith.constant 0 : index
    %104 = vector.load %arg5[%c1_127, %c0_128, %c0_129] : memref<6x128x128xbf16, #tpu.memory_space<vmem>>, vector<1x128x128xbf16>
    %105 = vector.shape_cast %104 : vector<1x128x128xbf16> to vector<128x128xbf16>
    %106 = arith.truncf %103 : vector<16x128xf32> to vector<16x128xbf16>
    %cst_130 = arith.constant dense<0.000000e+00> : vector<16x128xf32>
    %107 = tpu.matmul %106, %105, %cst_130 {dimension_numbers = #tpu.dot_dimension_numbers<[1], [0], [0], [1], [0, 0, 1, 1], [], []>} : vector<16x128xbf16>, vector<128x128xbf16>, vector<16x128xf32> -> vector<16x128xf32>
    %108 = arith.addf %97, %107 : vector<16x128xf32>
    %c1_131 = arith.constant 1 : index
    %c0_132 = arith.constant 0 : index
    %c0_133 = arith.constant 0 : index
    %109 = vector.load %arg6[%c1_131, %c0_132, %c0_133] : memref<6x1x128xf32, #tpu.memory_space<vmem>>, vector<1x1x128xf32>
    %110 = vector.shape_cast %109 : vector<1x1x128xf32> to vector<1x128xf32>
    %111 = vector.broadcast %110 : vector<1x128xf32> to vector<16x128xf32>
    %112 = arith.addf %108, %111 : vector<16x128xf32>
    %cst_134 = arith.constant 0.000000e+00 : f32
    %113 = vector.broadcast %cst_134 : f32 to vector<16x128xf32>
    %114 = arith.maximumf %112, %113 : vector<16x128xf32>
    %c2 = arith.constant 2 : index
    %c0_135 = arith.constant 0 : index
    %c0_136 = arith.constant 0 : index
    %115 = vector.load %arg2[%c2, %c0_135, %c0_136] : memref<6x128x8xbf16, #tpu.memory_space<vmem>>, vector<1x128x8xbf16>
    %116 = vector.shape_cast %115 : vector<1x128x8xbf16> to vector<128x8xbf16>
    %117 = arith.truncf %114 : vector<16x128xf32> to vector<16x128xbf16>
    %cst_137 = arith.constant dense<0.000000e+00> : vector<16x8xf32>
    %118 = tpu.matmul %117, %116, %cst_137 {dimension_numbers = #tpu.dot_dimension_numbers<[1], [0], [0], [1], [0, 0, 1, 1], [], []>} : vector<16x128xbf16>, vector<128x8xbf16>, vector<16x8xf32> -> vector<16x8xf32>
    %c2_138 = arith.constant 2 : index
    %c0_139 = arith.constant 0 : index
    %c0_140 = arith.constant 0 : index
    %119 = vector.load %arg3[%c2_138, %c0_139, %c0_140] : memref<6x1x8xf32, #tpu.memory_space<vmem>>, vector<1x1x8xf32>
    %120 = vector.shape_cast %119 : vector<1x1x8xf32> to vector<1x8xf32>
    %121 = vector.broadcast %120 : vector<1x8xf32> to vector<16x8xf32>
    %122 = arith.addf %118, %121 : vector<16x8xf32>
    %c8_141 = arith.constant 8 : index
    %c0_142 = arith.constant 0 : index
    %123 = vector.load %arg12[%c8_141, %c0_142] : memref<32x8xf32, #tpu.memory_space<vmem>>, vector<16x8xf32>
    tpu.vector_store %arg12[%c8_141, %c0_142], %122 {strides = array<i32>} : memref<32x8xf32, #tpu.memory_space<vmem>>, vector<16x8xf32>,
    %c4_143 = arith.constant 4 : index
    %c0_144 = arith.constant 0 : index
    %124 = vector.load %arg12[%c4_143, %c0_144] : memref<32x8xf32, #tpu.memory_space<vmem>>, vector<16x8xf32>
    %c0_145 = arith.constant 0 : index
    %c0_146 = arith.constant 0 : index
    %125 = vector.load %arg13[%c0_145, %c0_146] : memref<16x72xf32, #tpu.memory_space<vmem>>, vector<16x8xf32>
    tpu.vector_store %arg13[%c0_145, %c0_146], %124 {strides = array<i32>} : memref<16x72xf32, #tpu.memory_space<vmem>>, vector<16x8xf32>,
    %c5_147 = arith.constant 5 : index
    %c0_148 = arith.constant 0 : index
    %126 = vector.load %arg12[%c5_147, %c0_148] : memref<32x8xf32, #tpu.memory_space<vmem>>, vector<16x8xf32>
    %c0_149 = arith.constant 0 : index
    %c8_150 = arith.constant 8 : index
    %127 = vector.load %arg13[%c0_149, %c8_150] : memref<16x72xf32, #tpu.memory_space<vmem>>, vector<16x8xf32>
    tpu.vector_store %arg13[%c0_149, %c8_150], %126 {strides = array<i32>} : memref<16x72xf32, #tpu.memory_space<vmem>>, vector<16x8xf32>,
    %c6_151 = arith.constant 6 : index
    %c0_152 = arith.constant 0 : index
    %128 = vector.load %arg12[%c6_151, %c0_152] : memref<32x8xf32, #tpu.memory_space<vmem>>, vector<16x8xf32>
    %c0_153 = arith.constant 0 : index
    %c16_154 = arith.constant 16 : index
    %129 = vector.load %arg13[%c0_153, %c16_154] : memref<16x72xf32, #tpu.memory_space<vmem>>, vector<16x8xf32>
    tpu.vector_store %arg13[%c0_153, %c16_154], %128 {strides = array<i32>} : memref<16x72xf32, #tpu.memory_space<vmem>>, vector<16x8xf32>,
    %c7_155 = arith.constant 7 : index
    %c0_156 = arith.constant 0 : index
    %130 = vector.load %arg12[%c7_155, %c0_156] : memref<32x8xf32, #tpu.memory_space<vmem>>, vector<16x8xf32>
    %c0_157 = arith.constant 0 : index
    %c24_158 = arith.constant 24 : index
    %131 = vector.load %arg13[%c0_157, %c24_158] : memref<16x72xf32, #tpu.memory_space<vmem>>, vector<16x8xf32>
    tpu.vector_store %arg13[%c0_157, %c24_158], %130 {strides = array<i32>} : memref<16x72xf32, #tpu.memory_space<vmem>>, vector<16x8xf32>,
    %c8_159 = arith.constant 8 : index
    %c0_160 = arith.constant 0 : index
    %132 = vector.load %arg12[%c8_159, %c0_160] : memref<32x8xf32, #tpu.memory_space<vmem>>, vector<16x8xf32>
    %c0_161 = arith.constant 0 : index
    %c32_162 = arith.constant 32 : index
    %133 = vector.load %arg13[%c0_161, %c32_162] : memref<16x72xf32, #tpu.memory_space<vmem>>, vector<16x8xf32>
    tpu.vector_store %arg13[%c0_161, %c32_162], %132 {strides = array<i32>} : memref<16x72xf32, #tpu.memory_space<vmem>>, vector<16x8xf32>,
    %c9_163 = arith.constant 9 : index
    %c0_164 = arith.constant 0 : index
    %134 = vector.load %arg12[%c9_163, %c0_164] : memref<32x8xf32, #tpu.memory_space<vmem>>, vector<16x8xf32>
    %c0_165 = arith.constant 0 : index
    %c40_166 = arith.constant 40 : index
    %135 = vector.load %arg13[%c0_165, %c40_166] : memref<16x72xf32, #tpu.memory_space<vmem>>, vector<16x8xf32>
    tpu.vector_store %arg13[%c0_165, %c40_166], %134 {strides = array<i32>} : memref<16x72xf32, #tpu.memory_space<vmem>>, vector<16x8xf32>,
    %c10_167 = arith.constant 10 : index
    %c0_168 = arith.constant 0 : index
    %136 = vector.load %arg12[%c10_167, %c0_168] : memref<32x8xf32, #tpu.memory_space<vmem>>, vector<16x8xf32>
    %c0_169 = arith.constant 0 : index
    %c48_170 = arith.constant 48 : index
    %137 = vector.load %arg13[%c0_169, %c48_170] : memref<16x72xf32, #tpu.memory_space<vmem>>, vector<16x8xf32>
    tpu.vector_store %arg13[%c0_169, %c48_170], %136 {strides = array<i32>} : memref<16x72xf32, #tpu.memory_space<vmem>>, vector<16x8xf32>,
    %c11_171 = arith.constant 11 : index
    %c0_172 = arith.constant 0 : index
    %138 = vector.load %arg12[%c11_171, %c0_172] : memref<32x8xf32, #tpu.memory_space<vmem>>, vector<16x8xf32>
    %c0_173 = arith.constant 0 : index
    %c56_174 = arith.constant 56 : index
    %139 = vector.load %arg13[%c0_173, %c56_174] : memref<16x72xf32, #tpu.memory_space<vmem>>, vector<16x8xf32>
    tpu.vector_store %arg13[%c0_173, %c56_174], %138 {strides = array<i32>} : memref<16x72xf32, #tpu.memory_space<vmem>>, vector<16x8xf32>,
    %c12_175 = arith.constant 12 : index
    %c0_176 = arith.constant 0 : index
    %140 = vector.load %arg12[%c12_175, %c0_176] : memref<32x8xf32, #tpu.memory_space<vmem>>, vector<16x8xf32>
    %c0_177 = arith.constant 0 : index
    %c64_178 = arith.constant 64 : index
    %141 = vector.load %arg13[%c0_177, %c64_178] : memref<16x72xf32, #tpu.memory_space<vmem>>, vector<16x8xf32>
    tpu.vector_store %arg13[%c0_177, %c64_178], %140 {strides = array<i32>} : memref<16x72xf32, #tpu.memory_space<vmem>>, vector<16x8xf32>,
    %c0_179 = arith.constant 0 : index
    %c0_180 = arith.constant 0 : index
    %142 = vector.load %arg13[%c0_179, %c0_180] : memref<16x72xf32, #tpu.memory_space<vmem>>, vector<16x72xf32>
    %c2_181 = arith.constant 2 : index
    %c0_182 = arith.constant 0 : index
    %c0_183 = arith.constant 0 : index
    %143 = vector.load %arg4[%c2_181, %c0_182, %c0_183] : memref<6x72x128xbf16, #tpu.memory_space<vmem>>, vector<1x72x128xbf16>
    %144 = vector.shape_cast %143 : vector<1x72x128xbf16> to vector<72x128xbf16>
    %145 = arith.truncf %142 : vector<16x72xf32> to vector<16x72xbf16>
    %cst_184 = arith.constant dense<0.000000e+00> : vector<16x128xf32>
    %146 = tpu.matmul %145, %144, %cst_184 {dimension_numbers = #tpu.dot_dimension_numbers<[1], [0], [0], [1], [0, 0, 1, 1], [], []>} : vector<16x72xbf16>, vector<72x128xbf16>, vector<16x128xf32> -> vector<16x128xf32>
    %c8_185 = arith.constant 8 : index
    %c0_186 = arith.constant 0 : index
    %147 = vector.load %arg14[%c8_185, %c0_186] : memref<32x128xf32, #tpu.memory_space<vmem>>, vector<16x128xf32>
    tpu.vector_store %arg14[%c8_185, %c0_186], %114 {strides = array<i32>} : memref<32x128xf32, #tpu.memory_space<vmem>>, vector<16x128xf32>,
    %c7_187 = arith.constant 7 : index
    %c0_188 = arith.constant 0 : index
    %148 = vector.load %arg14[%c7_187, %c0_188] : memref<32x128xf32, #tpu.memory_space<vmem>>, vector<16x128xf32>
    %c8_189 = arith.constant 8 : index
    %c0_190 = arith.constant 0 : index
    %149 = vector.load %arg14[%c8_189, %c0_190] : memref<32x128xf32, #tpu.memory_space<vmem>>, vector<16x128xf32>
    %150 = arith.maximumf %148, %149 : vector<16x128xf32>
    %c9_191 = arith.constant 9 : index
    %c0_192 = arith.constant 0 : index
    %151 = vector.load %arg14[%c9_191, %c0_192] : memref<32x128xf32, #tpu.memory_space<vmem>>, vector<16x128xf32>
    %152 = arith.maximumf %150, %151 : vector<16x128xf32>
    %c2_193 = arith.constant 2 : index
    %c0_194 = arith.constant 0 : index
    %c0_195 = arith.constant 0 : index
    %153 = vector.load %arg5[%c2_193, %c0_194, %c0_195] : memref<6x128x128xbf16, #tpu.memory_space<vmem>>, vector<1x128x128xbf16>
    %154 = vector.shape_cast %153 : vector<1x128x128xbf16> to vector<128x128xbf16>
    %155 = arith.truncf %152 : vector<16x128xf32> to vector<16x128xbf16>
    %cst_196 = arith.constant dense<0.000000e+00> : vector<16x128xf32>
    %156 = tpu.matmul %155, %154, %cst_196 {dimension_numbers = #tpu.dot_dimension_numbers<[1], [0], [0], [1], [0, 0, 1, 1], [], []>} : vector<16x128xbf16>, vector<128x128xbf16>, vector<16x128xf32> -> vector<16x128xf32>
    %157 = arith.addf %146, %156 : vector<16x128xf32>
    %c2_197 = arith.constant 2 : index
    %c0_198 = arith.constant 0 : index
    %c0_199 = arith.constant 0 : index
    %158 = vector.load %arg6[%c2_197, %c0_198, %c0_199] : memref<6x1x128xf32, #tpu.memory_space<vmem>>, vector<1x1x128xf32>
    %159 = vector.shape_cast %158 : vector<1x1x128xf32> to vector<1x128xf32>
    %160 = vector.broadcast %159 : vector<1x128xf32> to vector<16x128xf32>
    %161 = arith.addf %157, %160 : vector<16x128xf32>
    %cst_200 = arith.constant 0.000000e+00 : f32
    %162 = vector.broadcast %cst_200 : f32 to vector<16x128xf32>
    %163 = arith.maximumf %161, %162 : vector<16x128xf32>
    %164 = arith.addf %163, %16 : vector<16x128xf32>
    %c1_201 = arith.constant 1 : index
    %c0_202 = arith.constant 0 : index
    %c0_203 = arith.constant 0 : index
    %165 = vector.load %arg7[%c1_201, %c0_202, %c0_203] : memref<2x128x128xbf16, #tpu.memory_space<vmem>>, vector<1x128x128xbf16>
    %166 = vector.shape_cast %165 : vector<1x128x128xbf16> to vector<128x128xbf16>
    %167 = arith.truncf %164 : vector<16x128xf32> to vector<16x128xbf16>
    %cst_204 = arith.constant dense<0.000000e+00> : vector<16x128xf32>
    %168 = tpu.matmul %167, %166, %cst_204 {dimension_numbers = #tpu.dot_dimension_numbers<[1], [0], [0], [1], [0, 0, 1, 1], [], []>} : vector<16x128xbf16>, vector<128x128xbf16>, vector<16x128xf32> -> vector<16x128xf32>
    %c1_205 = arith.constant 1 : index
    %c0_206 = arith.constant 0 : index
    %c0_207 = arith.constant 0 : index
    %169 = vector.load %arg8[%c1_205, %c0_206, %c0_207] : memref<2x1x128xf32, #tpu.memory_space<vmem>>, vector<1x1x128xf32>
    %170 = vector.shape_cast %169 : vector<1x1x128xf32> to vector<1x128xf32>
    %171 = vector.broadcast %170 : vector<1x128xf32> to vector<16x128xf32>
    %172 = arith.addf %168, %171 : vector<16x128xf32>
    %cst_208 = arith.constant 0.000000e+00 : f32
    %173 = vector.broadcast %cst_208 : f32 to vector<16x128xf32>
    %174 = arith.maximumf %172, %173 : vector<16x128xf32>
    %c3 = arith.constant 3 : index
    %c0_209 = arith.constant 0 : index
    %c0_210 = arith.constant 0 : index
    %175 = vector.load %arg2[%c3, %c0_209, %c0_210] : memref<6x128x8xbf16, #tpu.memory_space<vmem>>, vector<1x128x8xbf16>
    %176 = vector.shape_cast %175 : vector<1x128x8xbf16> to vector<128x8xbf16>
    %177 = arith.truncf %164 : vector<16x128xf32> to vector<16x128xbf16>
    %cst_211 = arith.constant dense<0.000000e+00> : vector<16x8xf32>
    %178 = tpu.matmul %177, %176, %cst_211 {dimension_numbers = #tpu.dot_dimension_numbers<[1], [0], [0], [1], [0, 0, 1, 1], [], []>} : vector<16x128xbf16>, vector<128x8xbf16>, vector<16x8xf32> -> vector<16x8xf32>
    %c3_212 = arith.constant 3 : index
    %c0_213 = arith.constant 0 : index
    %c0_214 = arith.constant 0 : index
    %179 = vector.load %arg3[%c3_212, %c0_213, %c0_214] : memref<6x1x8xf32, #tpu.memory_space<vmem>>, vector<1x1x8xf32>
    %180 = vector.shape_cast %179 : vector<1x1x8xf32> to vector<1x8xf32>
    %181 = vector.broadcast %180 : vector<1x8xf32> to vector<16x8xf32>
    %182 = arith.addf %178, %181 : vector<16x8xf32>
    %c8_215 = arith.constant 8 : index
    %c0_216 = arith.constant 0 : index
    %183 = vector.load %arg12[%c8_215, %c0_216] : memref<32x8xf32, #tpu.memory_space<vmem>>, vector<16x8xf32>
    tpu.vector_store %arg12[%c8_215, %c0_216], %182 {strides = array<i32>} : memref<32x8xf32, #tpu.memory_space<vmem>>, vector<16x8xf32>,
    %c4_217 = arith.constant 4 : index
    %c0_218 = arith.constant 0 : index
    %184 = vector.load %arg12[%c4_217, %c0_218] : memref<32x8xf32, #tpu.memory_space<vmem>>, vector<16x8xf32>
    %c0_219 = arith.constant 0 : index
    %c0_220 = arith.constant 0 : index
    %185 = vector.load %arg13[%c0_219, %c0_220] : memref<16x72xf32, #tpu.memory_space<vmem>>, vector<16x8xf32>
    tpu.vector_store %arg13[%c0_219, %c0_220], %184 {strides = array<i32>} : memref<16x72xf32, #tpu.memory_space<vmem>>, vector<16x8xf32>,
    %c5_221 = arith.constant 5 : index
    %c0_222 = arith.constant 0 : index
    %186 = vector.load %arg12[%c5_221, %c0_222] : memref<32x8xf32, #tpu.memory_space<vmem>>, vector<16x8xf32>
    %c0_223 = arith.constant 0 : index
    %c8_224 = arith.constant 8 : index
    %187 = vector.load %arg13[%c0_223, %c8_224] : memref<16x72xf32, #tpu.memory_space<vmem>>, vector<16x8xf32>
    tpu.vector_store %arg13[%c0_223, %c8_224], %186 {strides = array<i32>} : memref<16x72xf32, #tpu.memory_space<vmem>>, vector<16x8xf32>,
    %c6_225 = arith.constant 6 : index
    %c0_226 = arith.constant 0 : index
    %188 = vector.load %arg12[%c6_225, %c0_226] : memref<32x8xf32, #tpu.memory_space<vmem>>, vector<16x8xf32>
    %c0_227 = arith.constant 0 : index
    %c16_228 = arith.constant 16 : index
    %189 = vector.load %arg13[%c0_227, %c16_228] : memref<16x72xf32, #tpu.memory_space<vmem>>, vector<16x8xf32>
    tpu.vector_store %arg13[%c0_227, %c16_228], %188 {strides = array<i32>} : memref<16x72xf32, #tpu.memory_space<vmem>>, vector<16x8xf32>,
    %c7_229 = arith.constant 7 : index
    %c0_230 = arith.constant 0 : index
    %190 = vector.load %arg12[%c7_229, %c0_230] : memref<32x8xf32, #tpu.memory_space<vmem>>, vector<16x8xf32>
    %c0_231 = arith.constant 0 : index
    %c24_232 = arith.constant 24 : index
    %191 = vector.load %arg13[%c0_231, %c24_232] : memref<16x72xf32, #tpu.memory_space<vmem>>, vector<16x8xf32>
    tpu.vector_store %arg13[%c0_231, %c24_232], %190 {strides = array<i32>} : memref<16x72xf32, #tpu.memory_space<vmem>>, vector<16x8xf32>,
    %c8_233 = arith.constant 8 : index
    %c0_234 = arith.constant 0 : index
    %192 = vector.load %arg12[%c8_233, %c0_234] : memref<32x8xf32, #tpu.memory_space<vmem>>, vector<16x8xf32>
    %c0_235 = arith.constant 0 : index
    %c32_236 = arith.constant 32 : index
    %193 = vector.load %arg13[%c0_235, %c32_236] : memref<16x72xf32, #tpu.memory_space<vmem>>, vector<16x8xf32>
    tpu.vector_store %arg13[%c0_235, %c32_236], %192 {strides = array<i32>} : memref<16x72xf32, #tpu.memory_space<vmem>>, vector<16x8xf32>,
    %c9_237 = arith.constant 9 : index
    %c0_238 = arith.constant 0 : index
    %194 = vector.load %arg12[%c9_237, %c0_238] : memref<32x8xf32, #tpu.memory_space<vmem>>, vector<16x8xf32>
    %c0_239 = arith.constant 0 : index
    %c40_240 = arith.constant 40 : index
    %195 = vector.load %arg13[%c0_239, %c40_240] : memref<16x72xf32, #tpu.memory_space<vmem>>, vector<16x8xf32>
    tpu.vector_store %arg13[%c0_239, %c40_240], %194 {strides = array<i32>} : memref<16x72xf32, #tpu.memory_space<vmem>>, vector<16x8xf32>,
    %c10_241 = arith.constant 10 : index
    %c0_242 = arith.constant 0 : index
    %196 = vector.load %arg12[%c10_241, %c0_242] : memref<32x8xf32, #tpu.memory_space<vmem>>, vector<16x8xf32>
    %c0_243 = arith.constant 0 : index
    %c48_244 = arith.constant 48 : index
    %197 = vector.load %arg13[%c0_243, %c48_244] : memref<16x72xf32, #tpu.memory_space<vmem>>, vector<16x8xf32>
    tpu.vector_store %arg13[%c0_243, %c48_244], %196 {strides = array<i32>} : memref<16x72xf32, #tpu.memory_space<vmem>>, vector<16x8xf32>,
    %c11_245 = arith.constant 11 : index
    %c0_246 = arith.constant 0 : index
    %198 = vector.load %arg12[%c11_245, %c0_246] : memref<32x8xf32, #tpu.memory_space<vmem>>, vector<16x8xf32>
    %c0_247 = arith.constant 0 : index
    %c56_248 = arith.constant 56 : index
    %199 = vector.load %arg13[%c0_247, %c56_248] : memref<16x72xf32, #tpu.memory_space<vmem>>, vector<16x8xf32>
    tpu.vector_store %arg13[%c0_247, %c56_248], %198 {strides = array<i32>} : memref<16x72xf32, #tpu.memory_space<vmem>>, vector<16x8xf32>,
    %c12_249 = arith.constant 12 : index
    %c0_250 = arith.constant 0 : index
    %200 = vector.load %arg12[%c12_249, %c0_250] : memref<32x8xf32, #tpu.memory_space<vmem>>, vector<16x8xf32>
    %c0_251 = arith.constant 0 : index
    %c64_252 = arith.constant 64 : index
    %201 = vector.load %arg13[%c0_251, %c64_252] : memref<16x72xf32, #tpu.memory_space<vmem>>, vector<16x8xf32>
    tpu.vector_store %arg13[%c0_251, %c64_252], %200 {strides = array<i32>} : memref<16x72xf32, #tpu.memory_space<vmem>>, vector<16x8xf32>,
    %c0_253 = arith.constant 0 : index
    %c0_254 = arith.constant 0 : index
    %202 = vector.load %arg13[%c0_253, %c0_254] : memref<16x72xf32, #tpu.memory_space<vmem>>, vector<16x72xf32>
    %c3_255 = arith.constant 3 : index
    %c0_256 = arith.constant 0 : index
    %c0_257 = arith.constant 0 : index
    %203 = vector.load %arg4[%c3_255, %c0_256, %c0_257] : memref<6x72x128xbf16, #tpu.memory_space<vmem>>, vector<1x72x128xbf16>
    %204 = vector.shape_cast %203 : vector<1x72x128xbf16> to vector<72x128xbf16>
    %205 = arith.truncf %202 : vector<16x72xf32> to vector<16x72xbf16>
    %cst_258 = arith.constant dense<0.000000e+00> : vector<16x128xf32>
    %206 = tpu.matmul %205, %204, %cst_258 {dimension_numbers = #tpu.dot_dimension_numbers<[1], [0], [0], [1], [0, 0, 1, 1], [], []>} : vector<16x72xbf16>, vector<72x128xbf16>, vector<16x128xf32> -> vector<16x128xf32>
    %c8_259 = arith.constant 8 : index
    %c0_260 = arith.constant 0 : index
    %207 = vector.load %arg14[%c8_259, %c0_260] : memref<32x128xf32, #tpu.memory_space<vmem>>, vector<16x128xf32>
    tpu.vector_store %arg14[%c8_259, %c0_260], %164 {strides = array<i32>} : memref<32x128xf32, #tpu.memory_space<vmem>>, vector<16x128xf32>,
    %c7_261 = arith.constant 7 : index
    %c0_262 = arith.constant 0 : index
    %208 = vector.load %arg14[%c7_261, %c0_262] : memref<32x128xf32, #tpu.memory_space<vmem>>, vector<16x128xf32>
    %c8_263 = arith.constant 8 : index
    %c0_264 = arith.constant 0 : index
    %209 = vector.load %arg14[%c8_263, %c0_264] : memref<32x128xf32, #tpu.memory_space<vmem>>, vector<16x128xf32>
    %210 = arith.maximumf %208, %209 : vector<16x128xf32>
    %c9_265 = arith.constant 9 : index
    %c0_266 = arith.constant 0 : index
    %211 = vector.load %arg14[%c9_265, %c0_266] : memref<32x128xf32, #tpu.memory_space<vmem>>, vector<16x128xf32>
    %212 = arith.maximumf %210, %211 : vector<16x128xf32>
    %c3_267 = arith.constant 3 : index
    %c0_268 = arith.constant 0 : index
    %c0_269 = arith.constant 0 : index
    %213 = vector.load %arg5[%c3_267, %c0_268, %c0_269] : memref<6x128x128xbf16, #tpu.memory_space<vmem>>, vector<1x128x128xbf16>
    %214 = vector.shape_cast %213 : vector<1x128x128xbf16> to vector<128x128xbf16>
    %215 = arith.truncf %212 : vector<16x128xf32> to vector<16x128xbf16>
    %cst_270 = arith.constant dense<0.000000e+00> : vector<16x128xf32>
    %216 = tpu.matmul %215, %214, %cst_270 {dimension_numbers = #tpu.dot_dimension_numbers<[1], [0], [0], [1], [0, 0, 1, 1], [], []>} : vector<16x128xbf16>, vector<128x128xbf16>, vector<16x128xf32> -> vector<16x128xf32>
    %217 = arith.addf %206, %216 : vector<16x128xf32>
    %c3_271 = arith.constant 3 : index
    %c0_272 = arith.constant 0 : index
    %c0_273 = arith.constant 0 : index
    %218 = vector.load %arg6[%c3_271, %c0_272, %c0_273] : memref<6x1x128xf32, #tpu.memory_space<vmem>>, vector<1x1x128xf32>
    %219 = vector.shape_cast %218 : vector<1x1x128xf32> to vector<1x128xf32>
    %220 = vector.broadcast %219 : vector<1x128xf32> to vector<16x128xf32>
    %221 = arith.addf %217, %220 : vector<16x128xf32>
    %cst_274 = arith.constant 0.000000e+00 : f32
    %222 = vector.broadcast %cst_274 : f32 to vector<16x128xf32>
    %223 = arith.maximumf %221, %222 : vector<16x128xf32>
    %c4_275 = arith.constant 4 : index
    %c0_276 = arith.constant 0 : index
    %c0_277 = arith.constant 0 : index
    %224 = vector.load %arg2[%c4_275, %c0_276, %c0_277] : memref<6x128x8xbf16, #tpu.memory_space<vmem>>, vector<1x128x8xbf16>
    %225 = vector.shape_cast %224 : vector<1x128x8xbf16> to vector<128x8xbf16>
    %226 = arith.truncf %223 : vector<16x128xf32> to vector<16x128xbf16>
    %cst_278 = arith.constant dense<0.000000e+00> : vector<16x8xf32>
    %227 = tpu.matmul %226, %225, %cst_278 {dimension_numbers = #tpu.dot_dimension_numbers<[1], [0], [0], [1], [0, 0, 1, 1], [], []>} : vector<16x128xbf16>, vector<128x8xbf16>, vector<16x8xf32> -> vector<16x8xf32>
    %c4_279 = arith.constant 4 : index
    %c0_280 = arith.constant 0 : index
    %c0_281 = arith.constant 0 : index
    %228 = vector.load %arg3[%c4_279, %c0_280, %c0_281] : memref<6x1x8xf32, #tpu.memory_space<vmem>>, vector<1x1x8xf32>
    %229 = vector.shape_cast %228 : vector<1x1x8xf32> to vector<1x8xf32>
    %230 = vector.broadcast %229 : vector<1x8xf32> to vector<16x8xf32>
    %231 = arith.addf %227, %230 : vector<16x8xf32>
    %c8_282 = arith.constant 8 : index
    %c0_283 = arith.constant 0 : index
    %232 = vector.load %arg12[%c8_282, %c0_283] : memref<32x8xf32, #tpu.memory_space<vmem>>, vector<16x8xf32>
    tpu.vector_store %arg12[%c8_282, %c0_283], %231 {strides = array<i32>} : memref<32x8xf32, #tpu.memory_space<vmem>>, vector<16x8xf32>,
    %c4_284 = arith.constant 4 : index
    %c0_285 = arith.constant 0 : index
    %233 = vector.load %arg12[%c4_284, %c0_285] : memref<32x8xf32, #tpu.memory_space<vmem>>, vector<16x8xf32>
    %c0_286 = arith.constant 0 : index
    %c0_287 = arith.constant 0 : index
    %234 = vector.load %arg13[%c0_286, %c0_287] : memref<16x72xf32, #tpu.memory_space<vmem>>, vector<16x8xf32>
    tpu.vector_store %arg13[%c0_286, %c0_287], %233 {strides = array<i32>} : memref<16x72xf32, #tpu.memory_space<vmem>>, vector<16x8xf32>,
    %c5_288 = arith.constant 5 : index
    %c0_289 = arith.constant 0 : index
    %235 = vector.load %arg12[%c5_288, %c0_289] : memref<32x8xf32, #tpu.memory_space<vmem>>, vector<16x8xf32>
    %c0_290 = arith.constant 0 : index
    %c8_291 = arith.constant 8 : index
    %236 = vector.load %arg13[%c0_290, %c8_291] : memref<16x72xf32, #tpu.memory_space<vmem>>, vector<16x8xf32>
    tpu.vector_store %arg13[%c0_290, %c8_291], %235 {strides = array<i32>} : memref<16x72xf32, #tpu.memory_space<vmem>>, vector<16x8xf32>,
    %c6_292 = arith.constant 6 : index
    %c0_293 = arith.constant 0 : index
    %237 = vector.load %arg12[%c6_292, %c0_293] : memref<32x8xf32, #tpu.memory_space<vmem>>, vector<16x8xf32>
    %c0_294 = arith.constant 0 : index
    %c16_295 = arith.constant 16 : index
    %238 = vector.load %arg13[%c0_294, %c16_295] : memref<16x72xf32, #tpu.memory_space<vmem>>, vector<16x8xf32>
    tpu.vector_store %arg13[%c0_294, %c16_295], %237 {strides = array<i32>} : memref<16x72xf32, #tpu.memory_space<vmem>>, vector<16x8xf32>,
    %c7_296 = arith.constant 7 : index
    %c0_297 = arith.constant 0 : index
    %239 = vector.load %arg12[%c7_296, %c0_297] : memref<32x8xf32, #tpu.memory_space<vmem>>, vector<16x8xf32>
    %c0_298 = arith.constant 0 : index
    %c24_299 = arith.constant 24 : index
    %240 = vector.load %arg13[%c0_298, %c24_299] : memref<16x72xf32, #tpu.memory_space<vmem>>, vector<16x8xf32>
    tpu.vector_store %arg13[%c0_298, %c24_299], %239 {strides = array<i32>} : memref<16x72xf32, #tpu.memory_space<vmem>>, vector<16x8xf32>,
    %c8_300 = arith.constant 8 : index
    %c0_301 = arith.constant 0 : index
    %241 = vector.load %arg12[%c8_300, %c0_301] : memref<32x8xf32, #tpu.memory_space<vmem>>, vector<16x8xf32>
    %c0_302 = arith.constant 0 : index
    %c32_303 = arith.constant 32 : index
    %242 = vector.load %arg13[%c0_302, %c32_303] : memref<16x72xf32, #tpu.memory_space<vmem>>, vector<16x8xf32>
    tpu.vector_store %arg13[%c0_302, %c32_303], %241 {strides = array<i32>} : memref<16x72xf32, #tpu.memory_space<vmem>>, vector<16x8xf32>,
    %c9_304 = arith.constant 9 : index
    %c0_305 = arith.constant 0 : index
    %243 = vector.load %arg12[%c9_304, %c0_305] : memref<32x8xf32, #tpu.memory_space<vmem>>, vector<16x8xf32>
    %c0_306 = arith.constant 0 : index
    %c40_307 = arith.constant 40 : index
    %244 = vector.load %arg13[%c0_306, %c40_307] : memref<16x72xf32, #tpu.memory_space<vmem>>, vector<16x8xf32>
    tpu.vector_store %arg13[%c0_306, %c40_307], %243 {strides = array<i32>} : memref<16x72xf32, #tpu.memory_space<vmem>>, vector<16x8xf32>,
    %c10_308 = arith.constant 10 : index
    %c0_309 = arith.constant 0 : index
    %245 = vector.load %arg12[%c10_308, %c0_309] : memref<32x8xf32, #tpu.memory_space<vmem>>, vector<16x8xf32>
    %c0_310 = arith.constant 0 : index
    %c48_311 = arith.constant 48 : index
    %246 = vector.load %arg13[%c0_310, %c48_311] : memref<16x72xf32, #tpu.memory_space<vmem>>, vector<16x8xf32>
    tpu.vector_store %arg13[%c0_310, %c48_311], %245 {strides = array<i32>} : memref<16x72xf32, #tpu.memory_space<vmem>>, vector<16x8xf32>,
    %c11_312 = arith.constant 11 : index
    %c0_313 = arith.constant 0 : index
    %247 = vector.load %arg12[%c11_312, %c0_313] : memref<32x8xf32, #tpu.memory_space<vmem>>, vector<16x8xf32>
    %c0_314 = arith.constant 0 : index
    %c56_315 = arith.constant 56 : index
    %248 = vector.load %arg13[%c0_314, %c56_315] : memref<16x72xf32, #tpu.memory_space<vmem>>, vector<16x8xf32>
    tpu.vector_store %arg13[%c0_314, %c56_315], %247 {strides = array<i32>} : memref<16x72xf32, #tpu.memory_space<vmem>>, vector<16x8xf32>,
    %c12_316 = arith.constant 12 : index
    %c0_317 = arith.constant 0 : index
    %249 = vector.load %arg12[%c12_316, %c0_317] : memref<32x8xf32, #tpu.memory_space<vmem>>, vector<16x8xf32>
    %c0_318 = arith.constant 0 : index
    %c64_319 = arith.constant 64 : index
    %250 = vector.load %arg13[%c0_318, %c64_319] : memref<16x72xf32, #tpu.memory_space<vmem>>, vector<16x8xf32>
    tpu.vector_store %arg13[%c0_318, %c64_319], %249 {strides = array<i32>} : memref<16x72xf32, #tpu.memory_space<vmem>>, vector<16x8xf32>,
    %c0_320 = arith.constant 0 : index
    %c0_321 = arith.constant 0 : index
    %251 = vector.load %arg13[%c0_320, %c0_321] : memref<16x72xf32, #tpu.memory_space<vmem>>, vector<16x72xf32>
    %c4_322 = arith.constant 4 : index
    %c0_323 = arith.constant 0 : index
    %c0_324 = arith.constant 0 : index
    %252 = vector.load %arg4[%c4_322, %c0_323, %c0_324] : memref<6x72x128xbf16, #tpu.memory_space<vmem>>, vector<1x72x128xbf16>
    %253 = vector.shape_cast %252 : vector<1x72x128xbf16> to vector<72x128xbf16>
    %254 = arith.truncf %251 : vector<16x72xf32> to vector<16x72xbf16>
    %cst_325 = arith.constant dense<0.000000e+00> : vector<16x128xf32>
    %255 = tpu.matmul %254, %253, %cst_325 {dimension_numbers = #tpu.dot_dimension_numbers<[1], [0], [0], [1], [0, 0, 1, 1], [], []>} : vector<16x72xbf16>, vector<72x128xbf16>, vector<16x128xf32> -> vector<16x128xf32>
    %c8_326 = arith.constant 8 : index
    %c0_327 = arith.constant 0 : index
    %256 = vector.load %arg14[%c8_326, %c0_327] : memref<32x128xf32, #tpu.memory_space<vmem>>, vector<16x128xf32>
    tpu.vector_store %arg14[%c8_326, %c0_327], %223 {strides = array<i32>} : memref<32x128xf32, #tpu.memory_space<vmem>>, vector<16x128xf32>,
    %c7_328 = arith.constant 7 : index
    %c0_329 = arith.constant 0 : index
    %257 = vector.load %arg14[%c7_328, %c0_329] : memref<32x128xf32, #tpu.memory_space<vmem>>, vector<16x128xf32>
    %c8_330 = arith.constant 8 : index
    %c0_331 = arith.constant 0 : index
    %258 = vector.load %arg14[%c8_330, %c0_331] : memref<32x128xf32, #tpu.memory_space<vmem>>, vector<16x128xf32>
    %259 = arith.maximumf %257, %258 : vector<16x128xf32>
    %c9_332 = arith.constant 9 : index
    %c0_333 = arith.constant 0 : index
    %260 = vector.load %arg14[%c9_332, %c0_333] : memref<32x128xf32, #tpu.memory_space<vmem>>, vector<16x128xf32>
    %261 = arith.maximumf %259, %260 : vector<16x128xf32>
    %c4_334 = arith.constant 4 : index
    %c0_335 = arith.constant 0 : index
    %c0_336 = arith.constant 0 : index
    %262 = vector.load %arg5[%c4_334, %c0_335, %c0_336] : memref<6x128x128xbf16, #tpu.memory_space<vmem>>, vector<1x128x128xbf16>
    %263 = vector.shape_cast %262 : vector<1x128x128xbf16> to vector<128x128xbf16>
    %264 = arith.truncf %261 : vector<16x128xf32> to vector<16x128xbf16>
    %cst_337 = arith.constant dense<0.000000e+00> : vector<16x128xf32>
    %265 = tpu.matmul %264, %263, %cst_337 {dimension_numbers = #tpu.dot_dimension_numbers<[1], [0], [0], [1], [0, 0, 1, 1], [], []>} : vector<16x128xbf16>, vector<128x128xbf16>, vector<16x128xf32> -> vector<16x128xf32>
    %266 = arith.addf %255, %265 : vector<16x128xf32>
    %c4_338 = arith.constant 4 : index
    %c0_339 = arith.constant 0 : index
    %c0_340 = arith.constant 0 : index
    %267 = vector.load %arg6[%c4_338, %c0_339, %c0_340] : memref<6x1x128xf32, #tpu.memory_space<vmem>>, vector<1x1x128xf32>
    %268 = vector.shape_cast %267 : vector<1x1x128xf32> to vector<1x128xf32>
    %269 = vector.broadcast %268 : vector<1x128xf32> to vector<16x128xf32>
    %270 = arith.addf %266, %269 : vector<16x128xf32>
    %cst_341 = arith.constant 0.000000e+00 : f32
    %271 = vector.broadcast %cst_341 : f32 to vector<16x128xf32>
    %272 = arith.maximumf %270, %271 : vector<16x128xf32>
    %c5_342 = arith.constant 5 : index
    %c0_343 = arith.constant 0 : index
    %c0_344 = arith.constant 0 : index
    %273 = vector.load %arg2[%c5_342, %c0_343, %c0_344] : memref<6x128x8xbf16, #tpu.memory_space<vmem>>, vector<1x128x8xbf16>
    %274 = vector.shape_cast %273 : vector<1x128x8xbf16> to vector<128x8xbf16>
    %275 = arith.truncf %272 : vector<16x128xf32> to vector<16x128xbf16>
    %cst_345 = arith.constant dense<0.000000e+00> : vector<16x8xf32>
    %276 = tpu.matmul %275, %274, %cst_345 {dimension_numbers = #tpu.dot_dimension_numbers<[1], [0], [0], [1], [0, 0, 1, 1], [], []>} : vector<16x128xbf16>, vector<128x8xbf16>, vector<16x8xf32> -> vector<16x8xf32>
    %c5_346 = arith.constant 5 : index
    %c0_347 = arith.constant 0 : index
    %c0_348 = arith.constant 0 : index
    %277 = vector.load %arg3[%c5_346, %c0_347, %c0_348] : memref<6x1x8xf32, #tpu.memory_space<vmem>>, vector<1x1x8xf32>
    %278 = vector.shape_cast %277 : vector<1x1x8xf32> to vector<1x8xf32>
    %279 = vector.broadcast %278 : vector<1x8xf32> to vector<16x8xf32>
    %280 = arith.addf %276, %279 : vector<16x8xf32>
    %c8_349 = arith.constant 8 : index
    %c0_350 = arith.constant 0 : index
    %281 = vector.load %arg12[%c8_349, %c0_350] : memref<32x8xf32, #tpu.memory_space<vmem>>, vector<16x8xf32>
    tpu.vector_store %arg12[%c8_349, %c0_350], %280 {strides = array<i32>} : memref<32x8xf32, #tpu.memory_space<vmem>>, vector<16x8xf32>,
    %c4_351 = arith.constant 4 : index
    %c0_352 = arith.constant 0 : index
    %282 = vector.load %arg12[%c4_351, %c0_352] : memref<32x8xf32, #tpu.memory_space<vmem>>, vector<16x8xf32>
    %c0_353 = arith.constant 0 : index
    %c0_354 = arith.constant 0 : index
    %283 = vector.load %arg13[%c0_353, %c0_354] : memref<16x72xf32, #tpu.memory_space<vmem>>, vector<16x8xf32>
    tpu.vector_store %arg13[%c0_353, %c0_354], %282 {strides = array<i32>} : memref<16x72xf32, #tpu.memory_space<vmem>>, vector<16x8xf32>,
    %c5_355 = arith.constant 5 : index
    %c0_356 = arith.constant 0 : index
    %284 = vector.load %arg12[%c5_355, %c0_356] : memref<32x8xf32, #tpu.memory_space<vmem>>, vector<16x8xf32>
    %c0_357 = arith.constant 0 : index
    %c8_358 = arith.constant 8 : index
    %285 = vector.load %arg13[%c0_357, %c8_358] : memref<16x72xf32, #tpu.memory_space<vmem>>, vector<16x8xf32>
    tpu.vector_store %arg13[%c0_357, %c8_358], %284 {strides = array<i32>} : memref<16x72xf32, #tpu.memory_space<vmem>>, vector<16x8xf32>,
    %c6_359 = arith.constant 6 : index
    %c0_360 = arith.constant 0 : index
    %286 = vector.load %arg12[%c6_359, %c0_360] : memref<32x8xf32, #tpu.memory_space<vmem>>, vector<16x8xf32>
    %c0_361 = arith.constant 0 : index
    %c16_362 = arith.constant 16 : index
    %287 = vector.load %arg13[%c0_361, %c16_362] : memref<16x72xf32, #tpu.memory_space<vmem>>, vector<16x8xf32>
    tpu.vector_store %arg13[%c0_361, %c16_362], %286 {strides = array<i32>} : memref<16x72xf32, #tpu.memory_space<vmem>>, vector<16x8xf32>,
    %c7_363 = arith.constant 7 : index
    %c0_364 = arith.constant 0 : index
    %288 = vector.load %arg12[%c7_363, %c0_364] : memref<32x8xf32, #tpu.memory_space<vmem>>, vector<16x8xf32>
    %c0_365 = arith.constant 0 : index
    %c24_366 = arith.constant 24 : index
    %289 = vector.load %arg13[%c0_365, %c24_366] : memref<16x72xf32, #tpu.memory_space<vmem>>, vector<16x8xf32>
    tpu.vector_store %arg13[%c0_365, %c24_366], %288 {strides = array<i32>} : memref<16x72xf32, #tpu.memory_space<vmem>>, vector<16x8xf32>,
    %c8_367 = arith.constant 8 : index
    %c0_368 = arith.constant 0 : index
    %290 = vector.load %arg12[%c8_367, %c0_368] : memref<32x8xf32, #tpu.memory_space<vmem>>, vector<16x8xf32>
    %c0_369 = arith.constant 0 : index
    %c32_370 = arith.constant 32 : index
    %291 = vector.load %arg13[%c0_369, %c32_370] : memref<16x72xf32, #tpu.memory_space<vmem>>, vector<16x8xf32>
    tpu.vector_store %arg13[%c0_369, %c32_370], %290 {strides = array<i32>} : memref<16x72xf32, #tpu.memory_space<vmem>>, vector<16x8xf32>,
    %c9_371 = arith.constant 9 : index
    %c0_372 = arith.constant 0 : index
    %292 = vector.load %arg12[%c9_371, %c0_372] : memref<32x8xf32, #tpu.memory_space<vmem>>, vector<16x8xf32>
    %c0_373 = arith.constant 0 : index
    %c40_374 = arith.constant 40 : index
    %293 = vector.load %arg13[%c0_373, %c40_374] : memref<16x72xf32, #tpu.memory_space<vmem>>, vector<16x8xf32>
    tpu.vector_store %arg13[%c0_373, %c40_374], %292 {strides = array<i32>} : memref<16x72xf32, #tpu.memory_space<vmem>>, vector<16x8xf32>,
    %c10_375 = arith.constant 10 : index
    %c0_376 = arith.constant 0 : index
    %294 = vector.load %arg12[%c10_375, %c0_376] : memref<32x8xf32, #tpu.memory_space<vmem>>, vector<16x8xf32>
    %c0_377 = arith.constant 0 : index
    %c48_378 = arith.constant 48 : index
    %295 = vector.load %arg13[%c0_377, %c48_378] : memref<16x72xf32, #tpu.memory_space<vmem>>, vector<16x8xf32>
    tpu.vector_store %arg13[%c0_377, %c48_378], %294 {strides = array<i32>} : memref<16x72xf32, #tpu.memory_space<vmem>>, vector<16x8xf32>,
    %c11_379 = arith.constant 11 : index
    %c0_380 = arith.constant 0 : index
    %296 = vector.load %arg12[%c11_379, %c0_380] : memref<32x8xf32, #tpu.memory_space<vmem>>, vector<16x8xf32>
    %c0_381 = arith.constant 0 : index
    %c56_382 = arith.constant 56 : index
    %297 = vector.load %arg13[%c0_381, %c56_382] : memref<16x72xf32, #tpu.memory_space<vmem>>, vector<16x8xf32>
    tpu.vector_store %arg13[%c0_381, %c56_382], %296 {strides = array<i32>} : memref<16x72xf32, #tpu.memory_space<vmem>>, vector<16x8xf32>,
    %c12_383 = arith.constant 12 : index
    %c0_384 = arith.constant 0 : index
    %298 = vector.load %arg12[%c12_383, %c0_384] : memref<32x8xf32, #tpu.memory_space<vmem>>, vector<16x8xf32>
    %c0_385 = arith.constant 0 : index
    %c64_386 = arith.constant 64 : index
    %299 = vector.load %arg13[%c0_385, %c64_386] : memref<16x72xf32, #tpu.memory_space<vmem>>, vector<16x8xf32>
    tpu.vector_store %arg13[%c0_385, %c64_386], %298 {strides = array<i32>} : memref<16x72xf32, #tpu.memory_space<vmem>>, vector<16x8xf32>,
    %c0_387 = arith.constant 0 : index
    %c0_388 = arith.constant 0 : index
    %300 = vector.load %arg13[%c0_387, %c0_388] : memref<16x72xf32, #tpu.memory_space<vmem>>, vector<16x72xf32>
    %c5_389 = arith.constant 5 : index
    %c0_390 = arith.constant 0 : index
    %c0_391 = arith.constant 0 : index
    %301 = vector.load %arg4[%c5_389, %c0_390, %c0_391] : memref<6x72x128xbf16, #tpu.memory_space<vmem>>, vector<1x72x128xbf16>
    %302 = vector.shape_cast %301 : vector<1x72x128xbf16> to vector<72x128xbf16>
    %303 = arith.truncf %300 : vector<16x72xf32> to vector<16x72xbf16>
    %cst_392 = arith.constant dense<0.000000e+00> : vector<16x128xf32>
    %304 = tpu.matmul %303, %302, %cst_392 {dimension_numbers = #tpu.dot_dimension_numbers<[1], [0], [0], [1], [0, 0, 1, 1], [], []>} : vector<16x72xbf16>, vector<72x128xbf16>, vector<16x128xf32> -> vector<16x128xf32>
    %c8_393 = arith.constant 8 : index
    %c0_394 = arith.constant 0 : index
    %305 = vector.load %arg14[%c8_393, %c0_394] : memref<32x128xf32, #tpu.memory_space<vmem>>, vector<16x128xf32>
    tpu.vector_store %arg14[%c8_393, %c0_394], %272 {strides = array<i32>} : memref<32x128xf32, #tpu.memory_space<vmem>>, vector<16x128xf32>,
    %c7_395 = arith.constant 7 : index
    %c0_396 = arith.constant 0 : index
    %306 = vector.load %arg14[%c7_395, %c0_396] : memref<32x128xf32, #tpu.memory_space<vmem>>, vector<16x128xf32>
    %c8_397 = arith.constant 8 : index
    %c0_398 = arith.constant 0 : index
    %307 = vector.load %arg14[%c8_397, %c0_398] : memref<32x128xf32, #tpu.memory_space<vmem>>, vector<16x128xf32>
    %308 = arith.maximumf %306, %307 : vector<16x128xf32>
    %c9_399 = arith.constant 9 : index
    %c0_400 = arith.constant 0 : index
    %309 = vector.load %arg14[%c9_399, %c0_400] : memref<32x128xf32, #tpu.memory_space<vmem>>, vector<16x128xf32>
    %310 = arith.maximumf %308, %309 : vector<16x128xf32>
    %c5_401 = arith.constant 5 : index
    %c0_402 = arith.constant 0 : index
    %c0_403 = arith.constant 0 : index
    %311 = vector.load %arg5[%c5_401, %c0_402, %c0_403] : memref<6x128x128xbf16, #tpu.memory_space<vmem>>, vector<1x128x128xbf16>
    %312 = vector.shape_cast %311 : vector<1x128x128xbf16> to vector<128x128xbf16>
    %313 = arith.truncf %310 : vector<16x128xf32> to vector<16x128xbf16>
    %cst_404 = arith.constant dense<0.000000e+00> : vector<16x128xf32>
    %314 = tpu.matmul %313, %312, %cst_404 {dimension_numbers = #tpu.dot_dimension_numbers<[1], [0], [0], [1], [0, 0, 1, 1], [], []>} : vector<16x128xbf16>, vector<128x128xbf16>, vector<16x128xf32> -> vector<16x128xf32>
    %315 = arith.addf %304, %314 : vector<16x128xf32>
    %c5_405 = arith.constant 5 : index
    %c0_406 = arith.constant 0 : index
    %c0_407 = arith.constant 0 : index
    %316 = vector.load %arg6[%c5_405, %c0_406, %c0_407] : memref<6x1x128xf32, #tpu.memory_space<vmem>>, vector<1x1x128xf32>
    %317 = vector.shape_cast %316 : vector<1x1x128xf32> to vector<1x128xf32>
    %318 = vector.broadcast %317 : vector<1x128xf32> to vector<16x128xf32>
    %319 = arith.addf %315, %318 : vector<16x128xf32>
    %cst_408 = arith.constant 0.000000e+00 : f32
    %320 = vector.broadcast %cst_408 : f32 to vector<16x128xf32>
    %321 = arith.maximumf %319, %320 : vector<16x128xf32>
    %322 = arith.addf %321, %174 : vector<16x128xf32>
    %cst_409 = arith.constant dense<0.000000e+00> : vector<128xf32>
    %323 = vector.multi_reduction <add>, %322, %cst_409 [0] : vector<16x128xf32> to vector<128xf32>
    %324 = vector.shape_cast %323 : vector<128xf32> to vector<1x128xf32>
    %cst_410 = arith.constant 6.250000e-02 : f32
    %325 = vector.broadcast %cst_410 : f32 to vector<1x128xf32>
    %326 = arith.mulf %324, %325 : vector<1x128xf32>
    %c0_411 = arith.constant 0 : index
    %c0_412 = arith.constant 0 : index
    %327 = vector.load %arg9[%c0_411, %c0_412] : memref<128x128xbf16, #tpu.memory_space<vmem>>, vector<128x128xbf16>
    %328 = arith.truncf %326 : vector<1x128xf32> to vector<1x128xbf16>
    %cst_413 = arith.constant dense<0.000000e+00> : vector<1x128xf32>
    %329 = tpu.matmul %328, %327, %cst_413 {dimension_numbers = #tpu.dot_dimension_numbers<[1], [0], [0], [1], [0, 0, 1, 1], [], []>} : vector<1x128xbf16>, vector<128x128xbf16>, vector<1x128xf32> -> vector<1x128xf32>
    %c0_414 = arith.constant 0 : index
    %c0_415 = arith.constant 0 : index
    %330 = vector.load %arg10[%c0_414, %c0_415] : memref<1x128xf32, #tpu.memory_space<vmem>>, vector<1x128xf32>
    %331 = arith.addf %329, %330 : vector<1x128xf32>
    %c0_416 = arith.constant 0 : index
    %c0_417 = arith.constant 0 : index
    %c0_418 = arith.constant 0 : index
    %332 = vector.load %arg11[%c0_416, %c0_417, %c0_418] : memref<1x1x128xf32, #tpu.memory_space<vmem>>, vector<1x1x128xf32>
    %333 = vector.shape_cast %332 : vector<1x1x128xf32> to vector<1x128xf32>
    %334 = vector.shape_cast %331 : vector<1x128xf32> to vector<1x1x128xf32>
    tpu.vector_store %arg11[%c0_416, %c0_417, %c0_418], %334 {strides = array<i32>} : memref<1x1x128xf32, #tpu.memory_space<vmem>>, vector<1x1x128xf32>,
    return
  }
  func.func @transform_0(%arg0: i32) -> (i32, i32) {
    %c0_i32 = arith.constant 0 : i32
    %c0_i32_0 = arith.constant 0 : i32
    return %arg0, %c0_i32 : i32, i32
  }
  func.func @transform_1(%arg0: i32) -> (i32, i32, i32) {
    %c0_i32 = arith.constant 0 : i32
    %c0_i32_0 = arith.constant 0 : i32
    %c0_i32_1 = arith.constant 0 : i32
    %c0_i32_2 = arith.constant 0 : i32
    return %c0_i32, %c0_i32_0, %c0_i32_1 : i32, i32, i32
  }
  func.func @transform_2(%arg0: i32) -> (i32, i32, i32) {
    %c0_i32 = arith.constant 0 : i32
    %c0_i32_0 = arith.constant 0 : i32
    %c0_i32_1 = arith.constant 0 : i32
    %c0_i32_2 = arith.constant 0 : i32
    return %c0_i32, %c0_i32_0, %c0_i32_1 : i32, i32, i32
  }
  func.func @transform_3(%arg0: i32) -> (i32, i32, i32) {
    %c0_i32 = arith.constant 0 : i32
    %c0_i32_0 = arith.constant 0 : i32
    %c0_i32_1 = arith.constant 0 : i32
    %c0_i32_2 = arith.constant 0 : i32
    return %c0_i32, %c0_i32_0, %c0_i32_1 : i32, i32, i32
  }
  func.func @transform_4(%arg0: i32) -> (i32, i32, i32) {
    %c0_i32 = arith.constant 0 : i32
    %c0_i32_0 = arith.constant 0 : i32
    %c0_i32_1 = arith.constant 0 : i32
    %c0_i32_2 = arith.constant 0 : i32
    return %c0_i32, %c0_i32_0, %c0_i32_1 : i32, i32, i32
  }
  func.func @transform_5(%arg0: i32) -> (i32, i32, i32) {
    %c0_i32 = arith.constant 0 : i32
    %c0_i32_0 = arith.constant 0 : i32
    %c0_i32_1 = arith.constant 0 : i32
    %c0_i32_2 = arith.constant 0 : i32
    return %c0_i32, %c0_i32_0, %c0_i32_1 : i32, i32, i32
  }
  func.func @transform_6(%arg0: i32) -> (i32, i32, i32) {
    %c0_i32 = arith.constant 0 : i32
    %c0_i32_0 = arith.constant 0 : i32
    %c0_i32_1 = arith.constant 0 : i32
    %c0_i32_2 = arith.constant 0 : i32
    return %c0_i32, %c0_i32_0, %c0_i32_1 : i32, i32, i32
  }
  func.func @transform_7(%arg0: i32) -> (i32, i32, i32) {
    %c0_i32 = arith.constant 0 : i32
    %c0_i32_0 = arith.constant 0 : i32
    %c0_i32_1 = arith.constant 0 : i32
    %c0_i32_2 = arith.constant 0 : i32
    return %c0_i32, %c0_i32_0, %c0_i32_1 : i32, i32, i32
  }
  func.func @transform_8(%arg0: i32) -> (i32, i32) {
    %c0_i32 = arith.constant 0 : i32
    %c0_i32_0 = arith.constant 0 : i32
    %c0_i32_1 = arith.constant 0 : i32
    return %c0_i32, %c0_i32_0 : i32, i32
  }
  func.func @transform_9(%arg0: i32) -> (i32, i32) {
    %c0_i32 = arith.constant 0 : i32
    %c0_i32_0 = arith.constant 0 : i32
    %c0_i32_1 = arith.constant 0 : i32
    return %c0_i32, %c0_i32_0 : i32, i32
  }
  func.func @transform_10(%arg0: i32) -> (i32, i32, i32) {
    %c0_i32 = arith.constant 0 : i32
    %c0_i32_0 = arith.constant 0 : i32
    %c0_i32_1 = arith.constant 0 : i32
    return %arg0, %c0_i32, %c0_i32_0 : i32, i32, i32
  }
}

</mosaic_0001>

<bundles_post_ra>
// kernel: eeg_inception_mi_forward.1
= control target key start
LH: loop header
LB: loop body
LE: loop exit
PB: predicated region body
PF: predicated region fallthrough
CT: control target
= control target key end

     0   :  { %s5792_s0 = inlined_call_operand.vmem [shape: f32[32,128], index: 0, kind: input, shape index: {}]   ;;  %s5793_s1 = inlined_call_operand.vmem [shape: bf16[6,128,8], index: 1, kind: input, shape index: {}]   ;;  %s5794_s2 = inlined_call_operand.vmem [shape: f32[6,1,8], index: 2, kind: input, shape index: {}]   ;;  %s5795_s3 = inlined_call_operand.hbm [shape: bf16[6,72,128], index: 3, kind: input, shape index: {}]   ;;  %s5796_s4 = inlined_call_operand.vmem [shape: bf16[6,128,128], index: 4, kind: input, shape index: {}]   ;;  %s5797_s5 = inlined_call_operand.vmem [shape: f32[6,1,128], index: 5, kind: input, shape index: {}]   ;;  %s5798_s6 = inlined_call_operand.vmem [shape: bf16[2,128,128], index: 6, kind: input, shape index: {}]   ;;  %s5799_s7 = inlined_call_operand.vmem [shape: f32[2,1,128], index: 7, kind: input, shape index: {}]   ;;  %s5800_s8 = inlined_call_operand.hbm [shape: bf16[128,128], index: 8, kind: input, shape index: {}]   ;;  %s5801_s9 = inlined_call_operand.vmem [shape: f32[1,128], index: 9, kind: input, shape index: {}]   ;;  %s5802_s10 = inlined_call_operand.hbm [shape: f32[2,1,128], index: 10, kind: output, shape index: {}]  }
   0x1   :  { %5821 = sst [smem:[#allocation16_spill]] %s5792_s0 }
   0x2   :  { %5822 = sst [smem:[#allocation17_spill]] %s5795_s3 }
   0x3   :  { %5823 = sst [smem:[#allocation18_spill]] %s5800_s8 }
   0x4   :  { %15 = vsyncpa [#allocation6], 0 }
   0x5   :  { %16 = vsyncpa [#allocation9], 0 }
   0x6   :  { %17 = vsyncpa [#allocation7], 0 }
   0x7   :  { %19 = vsyncpa [#allocation7 + $0x1], 0  ;;  %s4792_s13 = smov 0   ;;  %s4794_s14 = smov 0  }
   0x8   :  { %s4796_s15 = smov 0   ;;  %s4798_s16 = smov 0  }
   0x9 LB: > { %5824 = sst [smem:[#allocation14_spill]] %s4715_s15  ;;  %s4813_s17 = sadd.s32 4294967295, %s4719_s16   ;;  %s4719_s16 = sphi %s4798_s16, %s5850_s16   ;;  %s4715_s15 = sphi %s4796_s15, %s5847_s15   ;;  %s4711_s14 = sphi %s4794_s14, %s5849_s14   ;;  %s4707_s13 = sphi %s4792_s13, %s5848_s13  }
   0xa   : > { %s3451_s18 = sadd.s32 4294967294, %s4719_s16   ;;  %s4817_s19 = sadd.s32 1, %s4719_s16  }
   0xb   : > { %s247_s20 = sadd.s32 1, %s4715_s15  ;;  %s244_s21 = ssub.s32 %s4719_s16, %s4817_s19 }
   0xc   : > { %p257_p0 = scmp.ne.s32.totalorder %s4715_s15, %s4711_s14  ;;  %p245_p1 = scmp.eq.s32.totalorder %s244_s21, 0 }
   0xd   : > { %p258_p2 = scmp.eq.s32.totalorder %s4813_s17, 1  ;;  %p263_p3 = scmp.ne.s32.totalorder %s4711_s14, %s4707_s13 }
   0xe   : > { %p264_p4 = scmp.eq.s32.totalorder %s3451_s18, 1  ;;  %p3452_p7 = scmp.ge.s32.totalorder %s4719_s16, 1 }
   0xf   : > { %s4828_s22 = scalar_select %p245_p1, %s4715_s15, %s247_s20  }
  0x10   : > { %p4830_p5 = por %p258_p2, %p257_p0  ;;  %p4834_p6 = por %p264_p4, %p263_p3 }
  0x11   : > { %5825 = sst [smem:[#allocation15_spill]] %s4828_s22  ;;  %p271_p8 = scmp.lt.s32.totalorder %s4719_s16, 3 }
  0x12   : > { %s5827_s24 = scalar_select %p4834_p6, 1, 0 }
  0x13   : > { %p5803_p9 = scmp.eq.s32.totalorder %s4813_s17, 0  ;;  %p4841_p10 = pnand %p3452_p7, %p271_p8 }
  0x14   : > { %s4721_s26 = smov [#allocation5]   ;;  %s4722_s29 = smov [#allocation8]  }
  0x15   : > { %s289_s27 = sshll.u32 %s4721_s26, 4  ;;  %p4386_p11 = pneg %p4841_p10  ;;  %s290_s27 = int_to_ptr.vmem [resolvable:$true] %s289_s27 }
  0x16   : > { %s314_s30 = sshll.u32 %s4722_s29, 4  ;;  %s4610_s11 = scalar_lea.vmem %s290_s27, 3456  ;;  %s315_s30 = int_to_ptr.vmem [resolvable:$true] %s314_s30 }
  0x17   : > { %p4849_p12 = pnand %p5803_p9, %p4386_p11  ;;  %p4611_p0 = scmp.ne.s32.totalorder %s290_s27, %s4610_s11 }
  0x18   : > { %p4618_p3 = scmp.lt.s32.totalorder %s290_s27, %s290_s27  ;;  %p4619_p4 = scmp.lt.s32.totalorder %s4610_s11, %s4610_s11 }
  0x19   : > { %p4601_p13 = pneg %p4849_p12 }
  0x1a   : > { %p4620_p7 = por %p4619_p4, %p4618_p3 }
  0x1b   : > { %p4613_p1 = pnand %p4611_p0, %p4601_p13 }
  0x1d   : > { %p4614_p2 = pneg %p4613_p1 }
  0x1f   : > { %p4621_p8 = pnand %p4620_p7, %p4614_p2 }
  0x21   : > { %4624 = shalt.err (!%p4621_p8)
}
  0x22   : > { %s4723_s12 = smov 64   ;;  %s4724_s18 = smov 4  }
  0x23   : > { %s5830_s3 = sld [smem:[#allocation17_spill]]  ;;  %s4636_s26 = scalar_lea.vmem %s315_s30, 1024 }
  0x24   : > { %p4637_p11 = scmp.ne.s32.totalorder %s315_s30, %s4636_s26  ;;  %p4644_p9 = scmp.lt.s32.totalorder %s315_s30, %s315_s30 }
  0x25   : > { %p4645_p6 = scmp.lt.s32.totalorder %s4636_s26, %s4636_s26 }
  0x26   : > { %p4639_p0 = pnand %p4637_p11, %p4601_p13 }
  0x27   : > { %p4646_p3 = por %p4645_p6, %p4644_p9 }
  0x28   : > { %p4640_p1 = pneg %p4639_p0 }
  0x29   : > { %4389 = dma.hbm_to_vmem [thread:$0]  (!%p4849_p12), %s5830_s3, 3456, %s290_s27, [#allocation6], %s4723_s12, %s4723_s12, %s4724_s18  }
  0x2a   : > { %p4647_p2 = pnand %p4646_p3, %p4640_p1 }
  0x2c   : > { %4650 = shalt.err (!%p4647_p2)
}
  0x2d   : > { %s5831_s8 = sld [smem:[#allocation18_spill]]  ;;  %p5832_p4 = scmp.eq.s32.totalorder (!%p4841_p10), %s4813_s17, 0 }
  0x2f   : > { %342 = sbr.rel (%p4841_p10) target bundleno = 3706 (0xe7a), region = 60 }
  0x33   : > { %4392 = dma.hbm_to_vmem [thread:$0]  (!%p4849_p12), %s5831_s8, 1024, %s315_s30, [#allocation9], %s4723_s12, %s4723_s12, %s4724_s18  }
  0x34   : > { %4694 = dma.done.wait (%p5832_p4), [#allocation6], 3456   ;;  %p5833_p13 = pmov %p5832_p4 }
  0x35   : > { %p5834_p7 = pmov %p5832_p4 }
  0x36   : > { %4696 = vsyncadd (%p5833_p13), [#allocation6], 4294963840 }
  0x37   : > { %4698 = dma.done.wait (%p5834_p7), [#allocation9], 1024   ;;  %p5835_p6 = pmov %p5832_p4 }
  0x38   : > { %s3459_s27 = sshll.u32 %s4813_s17, 1  ;;  %vm390_vm0 = vcmask 64512   ;;  %v4725_v0 = vmov 0.0   ;;  %vm4726_vm1 = vmmov 0   ;;  %v4449_v1 = vld [vmem:[%s5793_s1 + $0x38] sm:$0xff]   ;;  %v4450_v2 = vld [vmem:[%s5793_s1 + $0x30] sm:$0xff]  }
  0x39   : > { %4700 = vsyncadd (%p5835_p6), [#allocation9], 4294966272  ;;  %4012 = vmatprep.subr.bf16.mxu1 %v4725_v0  ;;  %4028 = vmatprep.mubr.msk.bf16.mxu1 %vm4726_vm1, %v4725_v0  ;;  %p384_p9 = scmp.lt.s32.totalorder %s3459_s27, 3  ;;  %391 = vst.msk [vmem:[#allocation2] sm:$0xff] %vm390_vm0, %v4725_v0  ;;  %s5836_s0 = sld [smem:[#allocation16_spill]]  ;;  %v4451_v3 = vld [vmem:[%s5793_s1 + $0x28] sm:$0xff]  }
  0x3a   : > { %392 = vst.msk [vmem:[#allocation2 + $0x18] sm:$0xff] %vm390_vm0, %v4725_v0  ;;  %3992 = vmatprep.subr.bf16.mxu0 %v4725_v0  ;;  %4008 = vmatprep.mubr.msk.bf16.mxu0 %vm4726_vm1, %v4725_v0  ;;  %v4452_v4 = vld [vmem:[%s5793_s1 + $0x20] sm:$0xff]   ;;  %v4453_v7 = vld [vmem:[%s5793_s1 + $0x18] sm:$0xff]   ;;  %v4454_v8 = vld [vmem:[%s5793_s1 + $0x10] sm:$0xff]   ;;  %s5816_s28 = smov 16   ;;  %vm895_vm2 = vcmask 1043456  }
  0x3b   : > { %s5852_s27 = smov (!%p384_p9, %s3459_s27), 3  ;;  %4013 = vmatpush3.bf16.msra.mxu1 %v4449_v1  ;;  %v4455_v9 = vld [vmem:[%s5793_s1 + $0x8] sm:$0xff]   ;;  %v4456_v10 = vld [vmem:[%s5793_s1] sm:$0xff]   ;;  %v4457_v12 = vld [vmem:[%s5798_s6 + $0x38] sm:$0xff]   ;;  %v4731_v41 = vmov -inf   ;;  %s5810_s12 = smov 40  }
  0x3c   : > { %s3460_s18 = sshll.u32 %s5852_s27, 3  ;;  %4014 = vmatprep.subr.bf16.mxu1 %v4725_v0  ;;  %3993 = vmatpush3.bf16.msra.mxu0 %v4457_v12  ;;  %v4458_v13 = vld [vmem:[%s5798_s6 + $0x30] sm:$0xff]   ;;  %v4459_v14 = vld [vmem:[%s5798_s6 + $0x28] sm:$0xff]   ;;  %v4460_v15 = vld [vmem:[%s5798_s6 + $0x20] sm:$0xff]   ;;  %s5818_s27 = smov 8   ;;  %393 = vst [vmem:[#allocation4] sm:$0xff] %v4731_v41 }
  0x3d   : > { %3994 = vmatprep.subr.bf16.mxu0 %v4725_v0  ;;  %v4461_v16 = vld [vmem:[%s5798_s6 + $0x18] sm:$0xff]   ;;  %v4462_v17 = vld [vmem:[%s5798_s6 + $0x10] sm:$0xff]   ;;  %v4463_v18 = vld [vmem:[%s5798_s6 + $0x8] sm:$0xff]   ;;  %394 = vst [vmem:[#allocation4 + $0x18] sm:$0xff] %v4731_v41  ;;  %s5808_s29 = smov 48   ;;  %s5804_s11 = smov 56  }
  0x3e   : > { %v4464_v19 = vld [vmem:[%s5798_s6] sm:$0xff]   ;;  %v4465_v21 = vld [vmem:[%s5796_s4 + $0x38] sm:$0xff]   ;;  %v4466_v25 = vld [vmem:[%s5796_s4 + $0x30] sm:$0xff]   ;;  %s5806_s25 = smov 64   ;;  %vm640_vm3 = vcmask 130112   ;;  %vm653_vm4 = vcmask 195712  }
  0x3f   : > { %s387_s26 = scalar_lea.vmem %s5836_s0, %s3460_s18  ;;  %4015 = vmatpush3.bf16.msra.mxu1 %v4450_v2  ;;  %v3470_v20 = vld [vmem:[%s5794_s2] ss:$0 sm:$0xff]  ;;  %v4467_v29 = vld [vmem:[%s5796_s4 + $0x28] sm:$0xff]   ;;  %s5814_s18 = smov 24   ;;  %v4469_v39 = vld [vmem:[%s5796_s4 + $0x18] sm:$0xff]   ;;  %vm666_vm5 = vcmask 261312  }
  0x40   : > { %4016 = vmatprep.subr.bf16.mxu1 %v4725_v0  ;;  %v4909_v5 = vld [vmem:[%s387_s26] sm:$0xff]  ;;  %v4911_v6 = vld [vmem:[%s387_s26 + $0x8] sm:$0xff]  ;;  %3995 = vmatpush3.bf16.msra.mxu0 %v4458_v13  ;;  %v4470_v40 = vld [vmem:[#allocation5 + $0x20] ss:$0 sps:$4 sm:$0xff]   ;;  %s5812_s26 = smov 32   ;;  %vm679_vm6 = vcmask 326912  }
  0x41   : > { %746 = vst [vmem:[#allocation4 + $0x8] sm:$0xff] %v4909_v5  ;;  %747 = vst [vmem:[#allocation4 + $0x10] sm:$0xff] %v4911_v6  ;;  %v413_v11 = vpack.c.bf16 %v4911_v6, %v4909_v5  ;;  %3996 = vmatprep.subr.bf16.mxu0 %v4725_v0  ;;  %v4468_v33 = vld [vmem:[%s5796_s4 + $0x20] sm:$0xff]   ;;  %v897_v42 = vsel %vm895_vm2, %v4470_v40, 0  ;;  %v4471_v43 = vld [vmem:[%s5796_s4 + $0x10] sm:$0xff]   ;;  %vm692_vm7 = vcmask 392512  }
  0x42   : > { %v4472_v44 = vld [vmem:[#allocation5 + $0x18] sm:$0xff]   ;;  %v4474_v50 = vld [vmem:[#allocation5 + $0x10] sm:$0xff]   ;;  %v4476_v59 = vld [vmem:[#allocation5 + $0x8] sm:$0xff]   ;;  %vm705_vm8 = vcmask 458112   ;;  %vm718_vm9 = vcmask 523712   ;;  %vm731_vm10 = vcmask 589312  }
  0x43   : > { %4017 = vmatpush3.bf16.msra.mxu1 %v4451_v3  ;;  %v4473_v48 = vld [vmem:[%s5796_s4 + $0x8] sm:$0xff]   ;;  %v4475_v57 = vld [vmem:[%s5796_s4] sm:$0xff]   ;;  %v4477_v1 = vld [vmem:[#allocation5] sm:$0xff]   ;;  %vm891_vm11 = vcmask 588800   ;;  %s5842_s0 = smov 8   ;;  %s5843_s3 = smov 16  }
  0x44   : > { %4018 = vmatprep.subr.bf16.mxu1 %v4725_v0  ;;  %3997 = vmatpush3.bf16.msra.mxu0 %v4459_v14  ;;  %v4487_v41 = vld [vmem:[%s5793_s1 + $0x48] sm:$0xff]  }
  0x45   : > { %3998 = vmatprep.subr.bf16.mxu0 %v4725_v0 }
  0x47   : > { %4019 = vmatpush3.bf16.msra.mxu1 %v4452_v4 }
  0x48   : > { %4020 = vmatprep.subr.bf16.mxu1 %v4725_v0  ;;  %3999 = vmatpush3.bf16.msra.mxu0 %v4460_v15  ;;  %v749_v47 = vld [vmem:[#allocation4 + $0xf] sm:$0xff]  ;;  %v748_v53 = vld [vmem:[#allocation4 + $0x7] sm:$0xff] }
  0x49   : > { %4000 = vmatprep.subr.bf16.mxu0 %v4725_v0  ;;  %v754_v49 = vld [vmem:[#allocation4 + $0x9] sm:$0xff]  ;;  %v753_v54 = vmax.f32 %v749_v47, %v4911_v6  ;;  %v752_v55 = vmax.f32 %v748_v53, %v4909_v5  ;;  %v755_v56 = vld [vmem:[#allocation4 + $0x11] sm:$0xff]  ;;  %v4484_v6 = vld [vmem:[%s5796_s4 + $0x70] sm:$0xff]  }
  0x4a   : > { %v4482_v5 = vld [vmem:[%s5796_s4 + $0x78] sm:$0xff]   ;;  %v4493_v47 = vld [vmem:[%s5796_s4 + $0x40] sm:$0xff]  }
  0x4b   : > { %4021 = vmatpush3.bf16.msra.mxu1 %v4453_v7  ;;  %v757_v58 = vmax.f32 %v753_v54, %v755_v56  ;;  %v756_v60 = vmax.f32 %v752_v55, %v754_v49  ;;  %v3493_v49 = vld [vmem:[%s5797_s5] ss:$0 sm:$0xff] }
  0x4c   : > { %4022 = vmatprep.subr.bf16.mxu1 %v4725_v0  ;;  %4001 = vmatpush3.bf16.msra.mxu0 %v4461_v16 }
  0x4d   : > { %4002 = vmatprep.subr.bf16.mxu0 %v4725_v0  ;;  %v774_v63 = vpack.c.bf16 %v757_v58, %v756_v60 }
  0x4f   : > { %4023 = vmatpush3.bf16.msra.mxu1 %v4454_v8 }
  0x50   : > { %4024 = vmatprep.subr.bf16.mxu1 %v4725_v0  ;;  %4003 = vmatpush3.bf16.msra.mxu0 %v4462_v17 }
  0x51   : > { %4004 = vmatprep.subr.bf16.mxu0 %v4725_v0 }
  0x53   : > { %4025 = vmatpush3.bf16.msra.mxu1 %v4455_v9 }
  0x54   : > { %4026 = vmatprep.subr.bf16.mxu1 %v4725_v0  ;;  %4005 = vmatpush3.bf16.msra.mxu0 %v4463_v18 }
  0x55   : > { %4006 = vmatprep.subr.bf16.mxu0 %v4725_v0 }
  0x57   : > { %4027 = vmatpush3.bf16.msra.mxu1 %v4456_v10 }
  0x58   : > { %4052 = vmatprep.subr.bf16.mxu1 %v4725_v0  ;;  %4007 = vmatpush3.bf16.msra.mxu0 %v4464_v19 }
  0x59   : > { %4032 = vmatprep.subr.bf16.mxu0 %v4725_v0 }
  0x5a   : > { %4029 = vmatmul.mubr.bf16.vlgmr.msra.gmra.mxu1 %v413_v11 }
  0x5b   : > { %4062 = vmatprep.mubr.msk.bf16.mxu1 %vm4726_vm1, %v4725_v0  ;;  %4009 = vmatmul.mubr.bf16.vlgmr.msra.gmra.mxu0 %v413_v11 }
  0x5c   : > { %4048 = vmatprep.mubr.msk.bf16.mxu0 %vm4726_vm1, %v4725_v0  ;;  %4033 = vmatpush3.bf16.msra.mxu0 %v4465_v21 }
  0x5d   : > { %4034 = vmatprep.subr.bf16.mxu0 %v4725_v0  ;;  %4053 = vmatpush3.bf16.msra.mxu1 %v897_v42  ;;  %v4488_v42 = vld [vmem:[%s5796_s4 + $0x60] sm:$0xff]  }
  0x5e   : > { %4054 = vmatprep.subr.bf16.mxu1 %v4725_v0 }
  0x60   : > { %4035 = vmatpush3.bf16.msra.mxu0 %v4466_v25 }
  0x61   : > { %4036 = vmatprep.subr.bf16.mxu0 %v4725_v0  ;;  %4055 = vmatpush3.bf16.msra.mxu1 %v4472_v44  ;;  %v4490_v44 = vld [vmem:[%s5796_s4 + $0x58] sm:$0xff]  }
  0x62   : > { %4056 = vmatprep.subr.bf16.mxu1 %v4725_v0 }
  0x64   : > { %4037 = vmatpush3.bf16.msra.mxu0 %v4467_v29  ;;  %v4478_v29 = vld [vmem:[%s5793_s1 + $0x78] sm:$0xff]  }
  0x65   : > { %4038 = vmatprep.subr.bf16.mxu0 %v4725_v0  ;;  %4057 = vmatpush3.bf16.msra.mxu1 %v4474_v50 }
  0x66   : > { %4058 = vmatprep.subr.bf16.mxu1 %v4725_v0 }
  0x68   : > { %4039 = vmatpush3.bf16.msra.mxu0 %v4468_v33  ;;  %v4481_v33 = vld [vmem:[%s5793_s1 + $0x60] sm:$0xff]  }
  0x69   : > { %4040 = vmatprep.subr.bf16.mxu0 %v4725_v0  ;;  %4059 = vmatpush3.bf16.msra.mxu1 %v4476_v59 }
  0x6a   : > { %4060 = vmatprep.subr.bf16.mxu1 %v4725_v0 }
  0x6c   : > { %4041 = vmatpush3.bf16.msra.mxu0 %v4469_v39 }
  0x6d   : > { %4042 = vmatprep.subr.bf16.mxu0 %v4725_v0  ;;  %4061 = vmatpush3.bf16.msra.mxu1 %v4477_v1 }
  0x6e   : > { %4066 = vmatprep.subr.bf16.mxu1 %v4725_v0 }
  0x70   : > { %4043 = vmatpush3.bf16.msra.mxu0 %v4471_v43  ;;  %v4489_v43 = vld [vmem:[%s5793_s1 + $0x40] sm:$0xff]  }
  0x71   : > { %4044 = vmatprep.subr.bf16.mxu0 %v4725_v0 }
  0x74   : > { %4045 = vmatpush3.bf16.msra.mxu0 %v4473_v48 }
  0x75   : > { %4046 = vmatprep.subr.bf16.mxu0 %v4725_v0 }
  0x78   : > { %4047 = vmatpush3.bf16.msra.mxu0 %v4475_v57 }
  0x79   : > { %4086 = vmatprep.subr.bf16.mxu0 %v4725_v0 }
  0x7b   : > { %4049 = vmatmul.mubr.bf16.vlgmr.msra.gmra.mxu0 %v774_v63 }
  0x7c   : > { %4102 = vmatprep.mubr.msk.bf16.mxu0 %vm4726_vm1, %v4725_v0  ;;  %4087 = vmatpush3.bf16.msra.mxu0 %v4482_v5 }
  0x7d   : > { %4088 = vmatprep.subr.bf16.mxu0 %v4725_v0 }
  0x80   : > { %4089 = vmatpush3.bf16.msra.mxu0 %v4484_v6  ;;  %v3511_v6 = vld [vmem:[%s5794_s2 + $0x1] ss:$0 sm:$0xff] }
  0x81   : > { %4090 = vmatprep.subr.bf16.mxu0 %v4725_v0 }
 0x11a   : > { %v617_v22 = vpop.f32.mrf.mxu1 }
 0x11b   : > { %v618_v23 = vadd.f32 %v3470_v20, %v617_v22  ;;  %v5052_v13 = vpop.f32.mrf.mxu0 }
 0x11c   : > { %v4030_v24 = vpop.f32.mrf.mxu1 }
 0x11d   : > { %624 = vst.msk [vmem:[#allocation2 + $0x8] sm:$0xff] %vm390_vm0, %v618_v23  ;;  %v4010_v16 = vpop.f32.mrf.mxu0 }
 0x11e   : > { %v620_v26 = vpop.f32.mrf.mxu1 }
 0x11f   : > { %v621_v27 = vadd.f32 %v3470_v20, %v620_v26  ;;  %v5057_v17 = vpop.f32.mrf.mxu0 }
 0x120   : > { %v4031_v28 = vpop.f32.mrf.mxu1 }
 0x121   : > { %625 = vst.msk [vmem:[#allocation2 + $0x10] sm:$0xff] %vm390_vm0, %v621_v27  ;;  %v4011_v20 = vpop.f32.mrf.mxu0 }
 0x124   : > { %v643_v30 = vld [vmem:[#allocation2 + $0x6] sm:$0xff] }
 0x125   : > { %v630_v31 = vld [vmem:[#allocation2 + $0x5] sm:$0xff]  ;;  %647 = vrot.lane.b32.xlu1 %v643_v30, %s5816_s28 }
 0x126   : > { %634 = vrot.lane.b32.xlu0 %v630_v31, %s5818_s27  ;;  %v626_v32 = vld [vmem:[#allocation2 + $0x4] sm:$0xff]  ;;  %v4479_v31 = vld [vmem:[%s5793_s1 + $0x70] sm:$0xff]  }
 0x127   : > { %628 = vst.msk [vmem:[#allocation3] sm:$0xff] %vm390_vm0, %v626_v32  ;;  %v656_v36 = vld [vmem:[#allocation2 + $0x7] sm:$0xff] }
 0x128   : > { %v4994_v34 = vld [vmem:[#allocation2 + $0xc] sm:$0xff]  ;;  %v722_v4 = vld [vmem:[#allocation2 + $0x14] sm:$0xff] }
 0x129   : > { %v644_v35 = vld [vmem:[#allocation2 + $0xe] sm:$0xff]  ;;  %629 = vst.msk [vmem:[#allocation3 + $0x8] sm:$0xff] %vm390_vm0, %v4994_v34 }
 0x12a   : > { %649 = vrot.lane.b32.xlu1 %v644_v35, %s5816_s28  ;;  %660 = vrot.lane.b32.xlu0 %v656_v36, %s5814_s18  ;;  %v669_v37 = vld [vmem:[#allocation2 + $0x8] sm:$0xff]  ;;  %v670_v45 = vld [vmem:[#allocation2 + $0x10] sm:$0xff] }
 0x12b   : > { %v657_v38 = vld [vmem:[#allocation2 + $0xf] sm:$0xff] }
 0x12c   : > { %v631_v46 = vld [vmem:[#allocation2 + $0xd] sm:$0xff] }
 0x12d   : > { %v683_v51 = vld [vmem:[#allocation2 + $0x11] sm:$0xff]  ;;  %v682_v52 = vld [vmem:[#allocation2 + $0x9] sm:$0xff] }
 0x12e   : > { %662 = vrot.lane.b32.xlu1 %v657_v38, %s5814_s18  ;;  %673 = vrot.lane.b32.xlu0 %v669_v37, %s5812_s26  ;;  %v696_v61 = vld [vmem:[#allocation2 + $0x12] sm:$0xff]  ;;  %v695_v62 = vld [vmem:[#allocation2 + $0xa] sm:$0xff] }
 0x12f   : > { %v709_v2 = vld [vmem:[#allocation2 + $0x13] sm:$0xff]  ;;  %v708_v3 = vld [vmem:[#allocation2 + $0xb] sm:$0xff] }
 0x130   : > { %v4480_v32 = vld [vmem:[%s5793_s1 + $0x68] sm:$0xff]   ;;  %v4485_v37 = vld [vmem:[%s5793_s1 + $0x50] sm:$0xff]  }
 0x131   : > { %v4486_v38 = vld [vmem:[%s5796_s4 + $0x68] sm:$0xff]  }
 0x132   : > { %675 = vrot.lane.b32.xlu1 %v670_v45, %s5812_s26  ;;  %636 = vrot.lane.b32.xlu0 %v631_v46, %s5818_s27  ;;  %v4491_v45 = vld [vmem:[%s5796_s4 + $0x50] sm:$0xff]   ;;  %v4492_v46 = vld [vmem:[%s5796_s4 + $0x48] sm:$0xff]   ;;  %s5837_s26 = smov 32  }
 0x133   : > { %4091 = vmatpush3.bf16.msra.mxu0 %v4486_v38 }
 0x134   : > { %4092 = vmatprep.subr.bf16.mxu0 %v4725_v0 }
 0x136   : > { %688 = vrot.lane.b32.xlu1 %v683_v51, %s5810_s12  ;;  %686 = vrot.lane.b32.xlu0 %v682_v52, %s5810_s12  ;;  %s5838_s12 = smov 40  }
 0x137   : > { %4093 = vmatpush3.bf16.msra.mxu0 %v4488_v42 }
 0x138   : > { %4094 = vmatprep.subr.bf16.mxu0 %v4725_v0 }
 0x13a   : > { %701 = vrot.lane.b32.xlu1 %v696_v61, %s5808_s29  ;;  %699 = vrot.lane.b32.xlu0 %v695_v62, %s5808_s29  ;;  %s5839_s29 = smov 48  }
 0x13b   : > { %v857_v35 = vpop.f32.mrf.mxu0  ;;  %4095 = vmatpush3.bf16.msra.mxu0 %v4490_v44  ;;  %v4501_v44 = vld [vmem:[%s5793_s1 + $0xa8] sm:$0xff]  }
 0x13c   : > { %4096 = vmatprep.subr.bf16.mxu0 %v4725_v0 }
 0x13d   : > { %v4050_v36 = vpop.f32.mrf.mxu0 }
 0x13e   : > { %714 = vrot.lane.b32.xlu1 %v709_v2, %s5804_s11  ;;  %712 = vrot.lane.b32.xlu0 %v708_v3, %s5804_s11  ;;  %v4497_v36 = vld [vmem:[#allocation5 + $0x2c] sm:$0xff]   ;;  %s5841_s11 = smov 64  }
 0x13f   : > { %v860_v39 = vpop.f32.mrf.mxu0  ;;  %4097 = vmatpush3.bf16.msra.mxu0 %v4491_v45  ;;  %v4502_v45 = vld [vmem:[%s5793_s1 + $0xa0] sm:$0xff]  }
 0x140   : > { %4098 = vmatprep.subr.bf16.mxu0 %v4725_v0 }
 0x141   : > { %v4051_v40 = vpop.f32.mrf.mxu0 }
 0x142   : > { %727 = vrot.lane.b32.xlu1 %v722_v4, %s5806_s25  ;;  %725 = vrot.lane.b32.xlu0 %v4994_v34, %s5806_s25  ;;  %v4483_v34 = vld [vmem:[%s5793_s1 + $0x58] sm:$0xff]   ;;  %s5840_s25 = smov 56  }
 0x143   : > { %4099 = vmatpush3.bf16.msra.mxu0 %v4492_v46  ;;  %v4504_v46 = vld [vmem:[%s5793_s1 + $0x98] sm:$0xff]  }
 0x144   : > { %4100 = vmatprep.subr.bf16.mxu0 %v4725_v0 }
 0x147   : > { %4101 = vmatpush3.bf16.msra.mxu0 %v4493_v47 }
 0x148   : > { %4120 = vmatprep.subr.bf16.mxu0 %v4725_v0 }
 0x197   : > { %v648_v7 = vpop.permute.xlu1 %647 }
 0x198   : > { %v635_v8 = vpop.permute.xlu0 %634 }
 0x199   : > { %641 = vst.msk [vmem:[#allocation3] sm:$0xff] %vm640_vm3, %v635_v8 }
 0x19a   : > { %654 = vst.msk [vmem:[#allocation3] sm:$0xff] %vm653_vm4, %v648_v7 }
 0x19c   : > { %v650_v9 = vpop.permute.xlu1 %649  ;;  %v661_v10 = vpop.permute.xlu0 %660 }
 0x19d   : > { %667 = vst.msk [vmem:[#allocation3] sm:$0xff] %vm666_vm5, %v661_v10 }
 0x1a0   : > { %v663_v11 = vpop.permute.xlu1 %662  ;;  %v674_v12 = vpop.permute.xlu0 %673 }
 0x1a1   : > { %680 = vst.msk [vmem:[#allocation3] sm:$0xff] %vm679_vm6, %v674_v12 }
 0x1a4   : > { %v676_v14 = vpop.permute.xlu1 %675  ;;  %v637_v15 = vpop.permute.xlu0 %636 }
 0x1a5   : > { %642 = vst.msk [vmem:[#allocation3 + $0x8] sm:$0xff] %vm640_vm3, %v637_v15 }
 0x1a6   : > { %655 = vst.msk [vmem:[#allocation3 + $0x8] sm:$0xff] %vm653_vm4, %v650_v9 }
 0x1a7   : > { %668 = vst.msk [vmem:[#allocation3 + $0x8] sm:$0xff] %vm666_vm5, %v663_v11 }
 0x1a8   : > { %681 = vst.msk [vmem:[#allocation3 + $0x8] sm:$0xff] %vm679_vm6, %v676_v14  ;;  %v689_v18 = vpop.permute.xlu1 %688  ;;  %v687_v19 = vpop.permute.xlu0 %686 }
 0x1a9   : > { %694 = vst.msk [vmem:[#allocation3 + $0x8] sm:$0xff] %vm692_vm7, %v689_v18  ;;  %693 = vst.msk [vmem:[#allocation3] sm:$0xff] %vm692_vm7, %v687_v19 }
 0x1ac   : > { %v702_v21 = vpop.permute.xlu1 %701  ;;  %v700_v22 = vpop.permute.xlu0 %699 }
 0x1ad   : > { %707 = vst.msk [vmem:[#allocation3 + $0x8] sm:$0xff] %vm705_vm8, %v702_v21  ;;  %706 = vst.msk [vmem:[#allocation3] sm:$0xff] %vm705_vm8, %v700_v22 }
 0x1b0   : > { %v715_v23 = vpop.permute.xlu1 %714  ;;  %v713_v24 = vpop.permute.xlu0 %712 }
 0x1b1   : > { %720 = vst.msk [vmem:[#allocation3 + $0x8] sm:$0xff] %vm718_vm9, %v715_v23  ;;  %719 = vst.msk [vmem:[#allocation3] sm:$0xff] %vm718_vm9, %v713_v24 }
 0x1b4   : > { %v728_v25 = vpop.permute.xlu1 %727  ;;  %v726_v26 = vpop.permute.xlu0 %725 }
 0x1b5   : > { %733 = vst.msk [vmem:[#allocation3 + $0x8] sm:$0xff] %vm731_vm10, %v728_v25  ;;  %732 = vst.msk [vmem:[#allocation3] sm:$0xff] %vm731_vm10, %v726_v26  ;;  %v4494_v26 = vld [vmem:[#allocation5 + $0x44] ss:$0 sps:$4 sm:$0xff]  }
 0x1bc   : > { %v734_v27 = vld [vmem:[#allocation3] sm:$0xff]  ;;  %v735_v28 = vld [vmem:[#allocation3 + $0x8] sm:$0xff] }
 0x1bd   : > { %v745_v30 = vpack.c.bf16 %v735_v28, %v734_v27  ;;  %v1331_v27 = vsel %vm895_vm2, %v4494_v26, 0 }
 0x1bf   : > { %4063 = vmatmul.mubr.msk.bf16.vlgmr.msra.gmra.mxu1 %vm891_vm11, %v745_v30  ;;  %v4495_v30 = vld [vmem:[#allocation5 + $0x3c] sm:$0xff]  }
 0x1c0   : > { %4067 = vmatpush3.bf16.msra.mxu1 %v4478_v29  ;;  %4082 = vmatprep.mubr.msk.bf16.mxu1 %vm4726_vm1, %v4725_v0 }
 0x1c1   : > { %4068 = vmatprep.subr.bf16.mxu1 %v4725_v0 }
 0x1c4   : > { %4069 = vmatpush3.bf16.msra.mxu1 %v4479_v31 }
 0x1c5   : > { %4070 = vmatprep.subr.bf16.mxu1 %v4725_v0 }
 0x1c8   : > { %4071 = vmatpush3.bf16.msra.mxu1 %v4480_v32 }
 0x1c9   : > { %4072 = vmatprep.subr.bf16.mxu1 %v4725_v0 }
 0x1cc   : > { %4073 = vmatpush3.bf16.msra.mxu1 %v4481_v33  ;;  %v4496_v33 = vld [vmem:[#allocation5 + $0x34] sm:$0xff]  }
 0x1cd   : > { %4074 = vmatprep.subr.bf16.mxu1 %v4725_v0 }
 0x1d0   : > { %4075 = vmatpush3.bf16.msra.mxu1 %v4483_v34 }
 0x1d1   : > { %4076 = vmatprep.subr.bf16.mxu1 %v4725_v0 }
 0x1d4   : > { %4077 = vmatpush3.bf16.msra.mxu1 %v4485_v37  ;;  %v4498_v37 = vld [vmem:[#allocation5 + $0x24] sm:$0xff]  }
 0x1d5   : > { %4078 = vmatprep.subr.bf16.mxu1 %v4725_v0 }
 0x1d8   : > { %4079 = vmatpush3.bf16.msra.mxu1 %v4487_v41  ;;  %v4499_v41 = vld [vmem:[%s5793_s1 + $0xb8] sm:$0xff]  }
 0x1d9   : > { %4080 = vmatprep.subr.bf16.mxu1 %v4725_v0 }
 0x1dc   : > { %4081 = vmatpush3.bf16.msra.mxu1 %v4489_v43  ;;  %v4500_v43 = vld [vmem:[%s5793_s1 + $0xb0] sm:$0xff]  }
 0x1dd   : > { %4106 = vmatprep.subr.bf16.mxu1 %v4725_v0 }
 0x27f   : > { %v933_v48 = vpop.f32.mrf.mxu1 }
 0x280   : > { %v934_v50 = vadd.f32 %v933_v48, %v857_v35 }
 0x281   : > { %v4064_v51 = vpop.f32.mrf.mxu1 }
 0x282   : > { %v947_v52 = vadd.f32 %v3493_v49, %v934_v50 }
 0x283   : > { %v936_v53 = vpop.f32.mrf.mxu1 }
 0x284   : > { %v949_v54 = vmax.f32 %v947_v52, 0.0  ;;  %v937_v55 = vadd.f32 %v936_v53, %v860_v39 }
 0x285   : > { %v4065_v56 = vpop.f32.mrf.mxu1 }
 0x286   : > { %1181 = vst [vmem:[#allocation4 + $0x8] sm:$0xff] %v949_v54  ;;  %v948_v57 = vadd.f32 %v3493_v49, %v937_v55 }
 0x288   : > { %v950_v58 = vmax.f32 %v948_v57, 0.0 }
 0x28a   : > { %v968_v59 = vpack.c.bf16 %v950_v58, %v949_v54  ;;  %1182 = vst [vmem:[#allocation4 + $0x10] sm:$0xff] %v950_v58 }
 0x28c   : > { %4083 = vmatmul.mubr.bf16.vlgmr.msra.gmra.mxu1 %v968_v59 }
 0x28d   : > { %4116 = vmatprep.mubr.msk.bf16.mxu1 %vm4726_vm1, %v4725_v0  ;;  %v1183_v60 = vld [vmem:[#allocation4 + $0x7] sm:$0xff]  ;;  %4107 = vmatpush3.bf16.msra.mxu1 %v1331_v27 }
 0x28e   : > { %v1187_v63 = vmax.f32 %v1183_v60, %v949_v54  ;;  %4108 = vmatprep.subr.bf16.mxu1 %v4725_v0 }
 0x291   : > { %v1184_v61 = vld [vmem:[#allocation4 + $0xf] sm:$0xff]  ;;  %4109 = vmatpush3.bf16.msra.mxu1 %v4495_v30 }
 0x292   : > { %v1189_v62 = vld [vmem:[#allocation4 + $0x9] sm:$0xff]  ;;  %v1188_v1 = vmax.f32 %v1184_v61, %v950_v58  ;;  %v1190_v2 = vld [vmem:[#allocation4 + $0x11] sm:$0xff]  ;;  %4110 = vmatprep.subr.bf16.mxu1 %v4725_v0 }
 0x293   : > { %v1191_v3 = vmax.f32 %v1187_v63, %v1189_v62 }
 0x294   : > { %v1192_v4 = vmax.f32 %v1188_v1, %v1190_v2  ;;  %v4503_v2 = vld [vmem:[%s5796_s4 + $0xb8] sm:$0xff]  }
 0x295   : > { %4111 = vmatpush3.bf16.msra.mxu1 %v4496_v33 }
 0x296   : > { %v1210_v5 = vpack.c.bf16 %v1192_v4, %v1191_v3  ;;  %4112 = vmatprep.subr.bf16.mxu1 %v4725_v0  ;;  %v4505_v4 = vld [vmem:[%s5796_s4 + $0xb0] sm:$0xff]  }
 0x298   : > { %4103 = vmatmul.mubr.bf16.vlgmr.msra.gmra.mxu0 %v1210_v5  ;;  %v4506_v5 = vld [vmem:[%s5793_s1 + $0x90] sm:$0xff]  }
 0x299   : > { %4136 = vmatprep.mubr.msk.bf16.mxu0 %vm4726_vm1, %v4725_v0  ;;  %4113 = vmatpush3.bf16.msra.mxu1 %v4497_v36 }
 0x29a   : > { %4114 = vmatprep.subr.bf16.mxu1 %v4725_v0  ;;  %4121 = vmatpush3.bf16.msra.mxu0 %v4499_v41 }
 0x29b   : > { %4122 = vmatprep.subr.bf16.mxu0 %v4725_v0 }
 0x29d   : > { %4115 = vmatpush3.bf16.msra.mxu1 %v4498_v37 }
 0x29e   : > { %4140 = vmatprep.subr.bf16.mxu1 %v4725_v0  ;;  %4123 = vmatpush3.bf16.msra.mxu0 %v4500_v43 }
 0x29f   : > { %4124 = vmatprep.subr.bf16.mxu0 %v4725_v0 }
 0x2a2   : > { %4125 = vmatpush3.bf16.msra.mxu0 %v4501_v44 }
 0x2a3   : > { %4126 = vmatprep.subr.bf16.mxu0 %v4725_v0 }
 0x2a6   : > { %4127 = vmatpush3.bf16.msra.mxu0 %v4502_v45 }
 0x2a7   : > { %4128 = vmatprep.subr.bf16.mxu0 %v4725_v0 }
 0x2aa   : > { %4129 = vmatpush3.bf16.msra.mxu0 %v4504_v46 }
 0x2ab   : > { %4130 = vmatprep.subr.bf16.mxu0 %v4725_v0 }
 0x2ae   : > { %4131 = vmatpush3.bf16.msra.mxu0 %v4506_v5 }
 0x2af   : > { %4132 = vmatprep.subr.bf16.mxu0 %v4725_v0 }
 0x34c   : > { %v1059_v7 = vpop.f32.mrf.mxu1 }
 0x34d   : > { %v1060_v8 = vadd.f32 %v3511_v6, %v1059_v7  ;;  %v4508_v7 = vld [vmem:[%s5793_s1 + $0x88] sm:$0xff]  }
 0x34e   : > { %v4084_v9 = vpop.f32.mrf.mxu1  ;;  %4133 = vmatpush3.bf16.msra.mxu0 %v4508_v7  ;;  %v4521_v7 = vld [vmem:[%s5793_s1 + $0xf8] sm:$0xff]  }
 0x34f   : > { %1066 = vst.msk [vmem:[#allocation2 + $0x8] sm:$0xff] %vm390_vm0, %v1060_v8  ;;  %v4509_v8 = vld [vmem:[%s5796_s4 + $0xa0] sm:$0xff]   ;;  %4134 = vmatprep.subr.bf16.mxu0 %v4725_v0 }
 0x350   : > { %v1062_v10 = vpop.f32.mrf.mxu1  ;;  %v4510_v9 = vld [vmem:[%s5793_s1 + $0x80] sm:$0xff]  }
 0x351   : > { %v1063_v11 = vadd.f32 %v3511_v6, %v1062_v10  ;;  %v4507_v6 = vld [vmem:[%s5796_s4 + $0xa8] sm:$0xff]   ;;  %v4511_v10 = vld [vmem:[%s5796_s4 + $0x98] sm:$0xff]  }
 0x352   : > { %v4085_v12 = vpop.f32.mrf.mxu1  ;;  %4135 = vmatpush3.bf16.msra.mxu0 %v4510_v9  ;;  %v4523_v9 = vld [vmem:[%s5793_s1 + $0xf0] sm:$0xff]  }
 0x353   : > { %1067 = vst.msk [vmem:[#allocation2 + $0x10] sm:$0xff] %vm390_vm0, %v1063_v11  ;;  %v4512_v11 = vld [vmem:[%s5796_s4 + $0x90] sm:$0xff]   ;;  %4194 = vmatprep.subr.bf16.mxu0 %v4725_v0  ;;  %v4513_v12 = vld [vmem:[%s5796_s4 + $0x88] sm:$0xff]  }
 0x356   : > { %v1072_v14 = vld [vmem:[#allocation2 + $0x5] sm:$0xff] }
 0x357   : > { %1076 = vrot.lane.b32.xlu0 %v1072_v14, %s5818_s27  ;;  %v1068_v15 = vld [vmem:[#allocation2 + $0x4] sm:$0xff] }
 0x358   : > { %v5140_v16 = vpop.f32.mrf.mxu0  ;;  %1070 = vst.msk [vmem:[#allocation3] sm:$0xff] %vm390_vm0, %v1068_v15  ;;  %v1084_v19 = vld [vmem:[#allocation2 + $0x6] sm:$0xff] }
 0x359   : > { %v1096_v24 = vld [vmem:[#allocation2 + $0x7] sm:$0xff] }
 0x35a   : > { %v4104_v18 = vpop.f32.mrf.mxu0  ;;  %v1073_v20 = vld [vmem:[#allocation2 + $0xd] sm:$0xff]  ;;  %v4514_v14 = vld [vmem:[%s5796_s4 + $0x80] sm:$0xff]  }
 0x35b   : > { %1088 = vrot.lane.b32.xlu0 %v1084_v19, %s5816_s28  ;;  %1078 = vrot.lane.b32.xlu1 %v1073_v20, %s5818_s27  ;;  %v1156_v22 = vld [vmem:[#allocation2 + $0xc] sm:$0xff]  ;;  %v1157_v42 = vld [vmem:[#allocation2 + $0x14] sm:$0xff]  ;;  %v3551_v18 = vld [vmem:[%s5797_s5 + $0x1] ss:$0 sm:$0xff] }
 0x35c   : > { %v5145_v21 = vpop.f32.mrf.mxu0  ;;  %v1085_v25 = vld [vmem:[#allocation2 + $0xe] sm:$0xff]  ;;  %1071 = vst.msk [vmem:[#allocation3 + $0x8] sm:$0xff] %vm390_vm0, %v1156_v22 }
 0x35d   : > { %v1108_v28 = vld [vmem:[#allocation2 + $0x8] sm:$0xff]  ;;  %v1109_v32 = vld [vmem:[#allocation2 + $0x10] sm:$0xff] }
 0x35e   : > { %v4105_v23 = vpop.f32.mrf.mxu0  ;;  %v1097_v29 = vld [vmem:[#allocation2 + $0xf] sm:$0xff] }
 0x35f   : > { %1100 = vrot.lane.b32.xlu0 %v1096_v24, %s5814_s18  ;;  %1090 = vrot.lane.b32.xlu1 %v1085_v25, %s5816_s28  ;;  %v1120_v31 = vld [vmem:[#allocation2 + $0x9] sm:$0xff]  ;;  %v1121_v35 = vld [vmem:[#allocation2 + $0x11] sm:$0xff] }
 0x360   : > { %v1132_v34 = vld [vmem:[#allocation2 + $0xa] sm:$0xff]  ;;  %v1133_v39 = vld [vmem:[#allocation2 + $0x12] sm:$0xff] }
 0x361   : > { %v1144_v38 = vld [vmem:[#allocation2 + $0xb] sm:$0xff]  ;;  %v1145_v40 = vld [vmem:[#allocation2 + $0x13] sm:$0xff] }
 0x363   : > { %1112 = vrot.lane.b32.xlu0 %v1108_v28, %s5837_s26  ;;  %1102 = vrot.lane.b32.xlu1 %v1097_v29, %s5814_s18  ;;  %s5844_s18 = smov 24  }
 0x367   : > { %1124 = vrot.lane.b32.xlu0 %v1120_v31, %s5838_s12  ;;  %1114 = vrot.lane.b32.xlu1 %v1109_v32, %s5837_s26 }
 0x36b   : > { %1136 = vrot.lane.b32.xlu0 %v1132_v34, %s5839_s29  ;;  %1126 = vrot.lane.b32.xlu1 %v1121_v35, %s5838_s12 }
 0x36f   : > { %1148 = vrot.lane.b32.xlu0 %v1144_v38, %s5840_s25  ;;  %1138 = vrot.lane.b32.xlu1 %v1133_v39, %s5839_s29 }
 0x373   : > { %1160 = vrot.lane.b32.xlu0 %v1156_v22, %s5841_s11  ;;  %1150 = vrot.lane.b32.xlu1 %v1145_v40, %s5840_s25 }
 0x377   : > { %1162 = vrot.lane.b32.xlu1 %v1157_v42, %s5841_s11 }
 0x3c9   : > { %v1077_v47 = vpop.permute.xlu0 %1076 }
 0x3ca   : > { %1082 = vst.msk [vmem:[#allocation3] sm:$0xff] %vm640_vm3, %v1077_v47 }
 0x3cd   : > { %v1089_v48 = vpop.permute.xlu0 %1088  ;;  %v1079_v49 = vpop.permute.xlu1 %1078 }
 0x3ce   : > { %1094 = vst.msk [vmem:[#allocation3] sm:$0xff] %vm653_vm4, %v1089_v48 }
 0x3cf   : > { %1083 = vst.msk [vmem:[#allocation3 + $0x8] sm:$0xff] %vm640_vm3, %v1079_v49 }
 0x3d1   : > { %v1101_v50 = vpop.permute.xlu0 %1100  ;;  %v1091_v51 = vpop.permute.xlu1 %1090 }
 0x3d2   : > { %1106 = vst.msk [vmem:[#allocation3] sm:$0xff] %vm666_vm5, %v1101_v50 }
 0x3d3   : > { %1095 = vst.msk [vmem:[#allocation3 + $0x8] sm:$0xff] %vm653_vm4, %v1091_v51 }
 0x3d5   : > { %v1113_v52 = vpop.permute.xlu0 %1112  ;;  %v1103_v53 = vpop.permute.xlu1 %1102 }
 0x3d6   : > { %1118 = vst.msk [vmem:[#allocation3] sm:$0xff] %vm679_vm6, %v1113_v52 }
 0x3d7   : > { %1107 = vst.msk [vmem:[#allocation3 + $0x8] sm:$0xff] %vm666_vm5, %v1103_v53 }
 0x3d9   : > { %v1125_v54 = vpop.permute.xlu0 %1124  ;;  %v1115_v55 = vpop.permute.xlu1 %1114 }
 0x3da   : > { %1130 = vst.msk [vmem:[#allocation3] sm:$0xff] %vm692_vm7, %v1125_v54 }
 0x3db   : > { %1119 = vst.msk [vmem:[#allocation3 + $0x8] sm:$0xff] %vm679_vm6, %v1115_v55  ;;  %v4515_v55 = vld [vmem:[#allocation5 + $0x68] ss:$0 sps:$4 sm:$0xff]  }
 0x3dd   : > { %v1137_v56 = vpop.permute.xlu0 %1136  ;;  %v1127_v57 = vpop.permute.xlu1 %1126 }
 0x3de   : > { %1142 = vst.msk [vmem:[#allocation3] sm:$0xff] %vm705_vm8, %v1137_v56  ;;  %v1766_v56 = vsel %vm895_vm2, %v4515_v55, 0 }
 0x3df   : > { %1131 = vst.msk [vmem:[#allocation3 + $0x8] sm:$0xff] %vm692_vm7, %v1127_v57 }
 0x3e1   : > { %v1149_v58 = vpop.permute.xlu0 %1148  ;;  %v1139_v59 = vpop.permute.xlu1 %1138 }
 0x3e2   : > { %1154 = vst.msk [vmem:[#allocation3] sm:$0xff] %vm718_vm9, %v1149_v58 }
 0x3e3   : > { %1143 = vst.msk [vmem:[#allocation3 + $0x8] sm:$0xff] %vm705_vm8, %v1139_v59  ;;  %v4516_v59 = vld [vmem:[#allocation5 + $0x60] sm:$0xff]  }
 0x3e5   : > { %v1161_v60 = vpop.permute.xlu0 %1160  ;;  %v1151_v61 = vpop.permute.xlu1 %1150 }
 0x3e6   : > { %1166 = vst.msk [vmem:[#allocation3] sm:$0xff] %vm731_vm10, %v1161_v60 }
 0x3e7   : > { %1155 = vst.msk [vmem:[#allocation3 + $0x8] sm:$0xff] %vm718_vm9, %v1151_v61 }
 0x3e9   : > { %v1163_v62 = vpop.permute.xlu1 %1162 }
 0x3ea   : > { %1167 = vst.msk [vmem:[#allocation3 + $0x8] sm:$0xff] %vm731_vm10, %v1163_v62  ;;  %v4517_v62 = vld [vmem:[#allocation5 + $0x58] sm:$0xff]  }
 0x3ed   : > { %v1168_v63 = vld [vmem:[#allocation3] sm:$0xff] }
 0x3f1   : > { %v1169_v1 = vld [vmem:[#allocation3 + $0x8] sm:$0xff] }
 0x3f2   : > { %v1180_v3 = vpack.c.bf16 %v1169_v1, %v1168_v63 }
 0x3f4   : > { %4117 = vmatmul.mubr.msk.bf16.vlgmr.msra.gmra.mxu1 %vm891_vm11, %v1180_v3  ;;  %v4519_v3 = vld [vmem:[#allocation5 + $0x48] sm:$0xff]  }
 0x3f5   : > { %4141 = vmatpush3.bf16.msra.mxu1 %v4503_v2  ;;  %4156 = vmatprep.mubr.msk.bf16.mxu1 %vm4726_vm1, %v4725_v0  ;;  %v4518_v2 = vld [vmem:[#allocation5 + $0x50] sm:$0xff]  }
 0x3f6   : > { %4142 = vmatprep.subr.bf16.mxu1 %v4725_v0 }
 0x3f9   : > { %4143 = vmatpush3.bf16.msra.mxu1 %v4505_v4 }
 0x3fa   : > { %4144 = vmatprep.subr.bf16.mxu1 %v4725_v0 }
 0x3fd   : > { %4145 = vmatpush3.bf16.msra.mxu1 %v4507_v6 }
 0x3fe   : > { %4146 = vmatprep.subr.bf16.mxu1 %v4725_v0 }
 0x401   : > { %4147 = vmatpush3.bf16.msra.mxu1 %v4509_v8 }
 0x402   : > { %4148 = vmatprep.subr.bf16.mxu1 %v4725_v0 }
 0x405   : > { %4149 = vmatpush3.bf16.msra.mxu1 %v4511_v10  ;;  %v4525_v10 = vld [vmem:[%s5793_s1 + $0xe8] sm:$0xff]  }
 0x406   : > { %4150 = vmatprep.subr.bf16.mxu1 %v4725_v0 }
 0x409   : > { %4151 = vmatpush3.bf16.msra.mxu1 %v4512_v11  ;;  %v4527_v11 = vld [vmem:[%s5793_s1 + $0xe0] sm:$0xff]  }
 0x40a   : > { %4152 = vmatprep.subr.bf16.mxu1 %v4725_v0 }
 0x40d   : > { %4153 = vmatpush3.bf16.msra.mxu1 %v4513_v12 }
 0x40e   : > { %4154 = vmatprep.subr.bf16.mxu1 %v4725_v0 }
 0x411   : > { %4155 = vmatpush3.bf16.msra.mxu1 %v4514_v14 }
 0x412   : > { %4160 = vmatprep.subr.bf16.mxu1 %v4725_v0 }
 0x4b4   : > { %v1367_v15 = vpop.f32.mrf.mxu1 }
 0x4b5   : > { %v1368_v19 = vadd.f32 %v1367_v15, %v5140_v16 }
 0x4b6   : > { %v4118_v20 = vpop.f32.mrf.mxu1 }
 0x4b7   : > { %v1382_v22 = vadd.f32 %v3551_v18, %v1368_v19 }
 0x4b8   : > { %v1370_v23 = vpop.f32.mrf.mxu1 }
 0x4b9   : > { %v1384_v24 = vmax.f32 %v1382_v22, 0.0  ;;  %v1371_v25 = vadd.f32 %v1370_v23, %v5145_v21  ;;  %v3569_v21 = vld [vmem:[%s5794_s2 + $0x2] ss:$0 sm:$0xff] }
 0x4ba   : > { %v4119_v26 = vpop.f32.mrf.mxu1 }
 0x4bb   : > { %1616 = vst [vmem:[#allocation4 + $0x8] sm:$0xff] %v1384_v24  ;;  %v1383_v27 = vadd.f32 %v3551_v18, %v1371_v25 }
 0x4bd   : > { %v1385_v28 = vmax.f32 %v1383_v27, 0.0 }
 0x4bf   : > { %v1403_v29 = vpack.c.bf16 %v1385_v28, %v1384_v24  ;;  %1617 = vst [vmem:[#allocation4 + $0x10] sm:$0xff] %v1385_v28 }
 0x4c1   : > { %4137 = vmatmul.mubr.bf16.vlgmr.msra.gmra.mxu0 %v1403_v29 }
 0x4c2   : > { %4210 = vmatprep.mubr.msk.bf16.mxu0 %vm4726_vm1, %v4725_v0  ;;  %v1618_v30 = vld [vmem:[#allocation4 + $0x7] sm:$0xff]  ;;  %4195 = vmatpush3.bf16.msra.mxu0 %v4521_v7 }
 0x4c3   : > { %v1622_v16 = vmax.f32 %v1618_v30, %v1384_v24  ;;  %4196 = vmatprep.subr.bf16.mxu0 %v4725_v0 }
 0x4c6   : > { %v1619_v31 = vld [vmem:[#allocation4 + $0xf] sm:$0xff]  ;;  %4197 = vmatpush3.bf16.msra.mxu0 %v4523_v9 }
 0x4c7   : > { %v1624_v32 = vld [vmem:[#allocation4 + $0x9] sm:$0xff]  ;;  %v1623_v33 = vmax.f32 %v1619_v31, %v1385_v28  ;;  %v1625_v34 = vld [vmem:[#allocation4 + $0x11] sm:$0xff]  ;;  %4198 = vmatprep.subr.bf16.mxu0 %v4725_v0 }
 0x4c8   : > { %v1626_v35 = vmax.f32 %v1622_v16, %v1624_v32 }
 0x4c9   : > { %v1627_v36 = vmax.f32 %v1623_v33, %v1625_v34  ;;  %v4520_v33 = vld [vmem:[%s5798_s6 + $0x78] sm:$0xff]  }
 0x4ca   : > { %4199 = vmatpush3.bf16.msra.mxu0 %v4525_v10  ;;  %v4539_v10 = vld [vmem:[%s5796_s4 + $0xe0] sm:$0xff]  }
 0x4cb   : > { %v1645_v37 = vpack.c.bf16 %v1627_v36, %v1626_v35  ;;  %4200 = vmatprep.subr.bf16.mxu0 %v4725_v0  ;;  %v4522_v35 = vld [vmem:[%s5798_s6 + $0x70] sm:$0xff]   ;;  %v4524_v36 = vld [vmem:[%s5798_s6 + $0x68] sm:$0xff]  }
 0x4cd   : > { %4157 = vmatmul.mubr.bf16.vlgmr.msra.gmra.mxu1 %v1645_v37  ;;  %v4526_v37 = vld [vmem:[%s5798_s6 + $0x60] sm:$0xff]  }
 0x4ce   : > { %4170 = vmatprep.mubr.msk.bf16.mxu1 %vm4726_vm1, %v4725_v0  ;;  %4161 = vmatpush3.bf16.msra.mxu1 %v1766_v56 }
 0x4cf   : > { %4162 = vmatprep.subr.bf16.mxu1 %v4725_v0  ;;  %4201 = vmatpush3.bf16.msra.mxu0 %v4527_v11 }
 0x4d0   : > { %4202 = vmatprep.subr.bf16.mxu0 %v4725_v0 }
 0x4d2   : > { %4163 = vmatpush3.bf16.msra.mxu1 %v4516_v59 }
 0x4d3   : > { %4164 = vmatprep.subr.bf16.mxu1 %v4725_v0 }
 0x4d6   : > { %4165 = vmatpush3.bf16.msra.mxu1 %v4517_v62 }
 0x4d7   : > { %4166 = vmatprep.subr.bf16.mxu1 %v4725_v0 }
 0x4da   : > { %4167 = vmatpush3.bf16.msra.mxu1 %v4518_v2  ;;  %v4538_v2 = vld [vmem:[%s5796_s4 + $0xe8] sm:$0xff]  }
 0x4db   : > { %4168 = vmatprep.subr.bf16.mxu1 %v4725_v0 }
 0x4de   : > { %4169 = vmatpush3.bf16.msra.mxu1 %v4519_v3 }
 0x4df   : > { %4174 = vmatprep.subr.bf16.mxu1 %v4725_v0 }
 0x581   : > { %v1494_v38 = vpop.f32.mrf.mxu0 }
 0x582   : > { %v1495_v39 = vadd.f32 %v3569_v21, %v1494_v38  ;;  %v4529_v38 = vld [vmem:[%s5793_s1 + $0xd8] sm:$0xff]  }
 0x583   : > { %v4138_v40 = vpop.f32.mrf.mxu0  ;;  %4203 = vmatpush3.bf16.msra.mxu0 %v4529_v38 }
 0x584   : > { %1501 = vst.msk [vmem:[#allocation2 + $0x8] sm:$0xff] %vm390_vm0, %v1495_v39  ;;  %v4530_v39 = vld [vmem:[%s5798_s6 + $0x50] sm:$0xff]   ;;  %4204 = vmatprep.subr.bf16.mxu0 %v4725_v0 }
 0x585   : > { %v1497_v41 = vpop.f32.mrf.mxu0  ;;  %v4531_v40 = vld [vmem:[%s5793_s1 + $0xd0] sm:$0xff]  }
 0x586   : > { %v1498_v42 = vadd.f32 %v3569_v21, %v1497_v41  ;;  %v4528_v21 = vld [vmem:[%s5798_s6 + $0x58] sm:$0xff]   ;;  %v4532_v41 = vld [vmem:[%s5798_s6 + $0x48] sm:$0xff]  }
 0x587   : > { %v4139_v43 = vpop.f32.mrf.mxu0  ;;  %4205 = vmatpush3.bf16.msra.mxu0 %v4531_v40  ;;  %v4545_v40 = vld [vmem:[#allocation5 + $0x84] sm:$0xff]  }
 0x588   : > { %1502 = vst.msk [vmem:[#allocation2 + $0x10] sm:$0xff] %vm390_vm0, %v1498_v42  ;;  %4206 = vmatprep.subr.bf16.mxu0 %v4725_v0  ;;  %v4533_v42 = vld [vmem:[%s5793_s1 + $0xc8] sm:$0xff]   ;;  %v4534_v43 = vld [vmem:[%s5798_s6 + $0x40] sm:$0xff]  }
 0x58b   : > { %v1507_v44 = vld [vmem:[#allocation2 + $0x5] sm:$0xff]  ;;  %4207 = vmatpush3.bf16.msra.mxu0 %v4533_v42 }
 0x58c   : > { %1511 = vrot.lane.b32.xlu0 %v1507_v44, %s5842_s0  ;;  %v1503_v45 = vld [vmem:[#allocation2 + $0x4] sm:$0xff]  ;;  %4208 = vmatprep.subr.bf16.mxu0 %v4725_v0 }
 0x58d   : > { %v5265_v46 = vpop.f32.mrf.mxu1  ;;  %1505 = vst.msk [vmem:[#allocation3] sm:$0xff] %vm390_vm0, %v1503_v45  ;;  %v1519_v48 = vld [vmem:[#allocation2 + $0x6] sm:$0xff]  ;;  %v3461_v45 = vld [vmem:[%s5799_s7] ss:$0 sm:$0xff] }
 0x58e   : > { %v1531_v53 = vld [vmem:[#allocation2 + $0x7] sm:$0xff]  ;;  %v507_v56 = vadd.f32 %v3461_v45, %v5057_v17  ;;  %v4537_v17 = vld [vmem:[%s5796_s4 + $0xf0] sm:$0xff]  }
 0x58f   : > { %v4158_v47 = vpop.f32.mrf.mxu1  ;;  %v1508_v49 = vld [vmem:[#allocation2 + $0xd] sm:$0xff]  ;;  %v4535_v44 = vld [vmem:[%s5793_s1 + $0xc0] sm:$0xff]  }
 0x590   : > { %1523 = vrot.lane.b32.xlu0 %v1519_v48, %s5843_s3  ;;  %1513 = vrot.lane.b32.xlu1 %v1508_v49, %s5842_s0  ;;  %v1591_v51 = vld [vmem:[#allocation2 + $0xc] sm:$0xff]  ;;  %v1592_v8 = vld [vmem:[#allocation2 + $0x14] sm:$0xff]  ;;  %v3609_v48 = vld [vmem:[%s5797_s5 + $0x2] ss:$0 sm:$0xff]  ;;  %v504_v49 = vadd.f32 %v3461_v45, %v5052_v13  ;;  %v511_v62 = vmax.f32 %v507_v56, 0.0 }
 0x591   : > { %v5270_v50 = vpop.f32.mrf.mxu1  ;;  %v1520_v54 = vld [vmem:[#allocation2 + $0xe] sm:$0xff]  ;;  %1506 = vst.msk [vmem:[#allocation3 + $0x8] sm:$0xff] %vm390_vm0, %v1591_v51  ;;  %4209 = vmatpush3.bf16.msra.mxu0 %v4535_v44  ;;  %v4536_v13 = vld [vmem:[%s5796_s4 + $0xf8] sm:$0xff]  }
 0x592   : > { %v1543_v57 = vld [vmem:[#allocation2 + $0x8] sm:$0xff]  ;;  %v1544_v61 = vld [vmem:[#allocation2 + $0x10] sm:$0xff]  ;;  %4234 = vmatprep.subr.bf16.mxu0 %v4725_v0  ;;  %v510_v55 = vmax.f32 %v504_v49, 0.0  ;;  %v4548_v49 = vld [vmem:[#allocation5 + $0x6c] sm:$0xff]  }
 0x593   : > { %v4159_v52 = vpop.f32.mrf.mxu1  ;;  %v1532_v58 = vld [vmem:[#allocation2 + $0xf] sm:$0xff] }
 0x594   : > { %1535 = vrot.lane.b32.xlu0 %v1531_v53, %s5844_s18  ;;  %1525 = vrot.lane.b32.xlu1 %v1520_v54, %s5843_s3  ;;  %v1555_v60 = vld [vmem:[#allocation2 + $0x9] sm:$0xff]  ;;  %v1556_v1 = vld [vmem:[#allocation2 + $0x11] sm:$0xff] }
 0x595   : > { %v1567_v63 = vld [vmem:[#allocation2 + $0xa] sm:$0xff]  ;;  %v1568_v5 = vld [vmem:[#allocation2 + $0x12] sm:$0xff] }
 0x596   : > { %v1579_v4 = vld [vmem:[#allocation2 + $0xb] sm:$0xff]  ;;  %v1580_v6 = vld [vmem:[#allocation2 + $0x13] sm:$0xff] }
 0x598   : > { %1547 = vrot.lane.b32.xlu0 %v1543_v57, %s5837_s26  ;;  %1537 = vrot.lane.b32.xlu1 %v1532_v58, %s5844_s18 }
 0x59c   : > { %1559 = vrot.lane.b32.xlu0 %v1555_v60, %s5838_s12  ;;  %1549 = vrot.lane.b32.xlu1 %v1544_v61, %s5837_s26 }
 0x5a0   : > { %1571 = vrot.lane.b32.xlu0 %v1567_v63, %s5839_s29  ;;  %1561 = vrot.lane.b32.xlu1 %v1556_v1, %s5838_s12 }
 0x5a4   : > { %1583 = vrot.lane.b32.xlu0 %v1579_v4, %s5840_s25  ;;  %1573 = vrot.lane.b32.xlu1 %v1568_v5, %s5839_s29 }
 0x5a8   : > { %1595 = vrot.lane.b32.xlu0 %v1591_v51, %s5841_s11  ;;  %1585 = vrot.lane.b32.xlu1 %v1580_v6, %s5840_s25 }
 0x5ac   : > { %1597 = vrot.lane.b32.xlu1 %v1592_v8, %s5841_s11 }
 0x5fe   : > { %v1512_v12 = vpop.permute.xlu0 %1511 }
 0x5ff   : > { %1517 = vst.msk [vmem:[#allocation3] sm:$0xff] %vm640_vm3, %v1512_v12  ;;  %v4540_v12 = vld [vmem:[%s5796_s4 + $0xd8] sm:$0xff]  }
 0x602   : > { %v1524_v14 = vpop.permute.xlu0 %1523  ;;  %v1514_v15 = vpop.permute.xlu1 %1513 }
 0x603   : > { %1529 = vst.msk [vmem:[#allocation3] sm:$0xff] %vm653_vm4, %v1524_v14  ;;  %v4541_v14 = vld [vmem:[%s5796_s4 + $0xd0] sm:$0xff]  }
 0x604   : > { %1518 = vst.msk [vmem:[#allocation3 + $0x8] sm:$0xff] %vm640_vm3, %v1514_v15  ;;  %v4542_v15 = vld [vmem:[%s5796_s4 + $0xc8] sm:$0xff]  }
 0x606   : > { %v1536_v18 = vpop.permute.xlu0 %1535  ;;  %v1526_v19 = vpop.permute.xlu1 %1525 }
 0x607   : > { %1541 = vst.msk [vmem:[#allocation3] sm:$0xff] %vm666_vm5, %v1536_v18  ;;  %v4543_v18 = vld [vmem:[%s5796_s4 + $0xc0] sm:$0xff]  }
 0x608   : > { %1530 = vst.msk [vmem:[#allocation3 + $0x8] sm:$0xff] %vm653_vm4, %v1526_v19  ;;  %v3653_v19 = vld [vmem:[%s5794_s2 + $0x3] ss:$0 sm:$0xff] }
 0x60a   : > { %v1548_v20 = vpop.permute.xlu0 %1547  ;;  %v1538_v22 = vpop.permute.xlu1 %1537 }
 0x60b   : > { %1553 = vst.msk [vmem:[#allocation3] sm:$0xff] %vm679_vm6, %v1548_v20 }
 0x60c   : > { %1542 = vst.msk [vmem:[#allocation3 + $0x8] sm:$0xff] %vm666_vm5, %v1538_v22 }
 0x60e   : > { %v1560_v23 = vpop.permute.xlu0 %1559  ;;  %v1550_v24 = vpop.permute.xlu1 %1549 }
 0x60f   : > { %1565 = vst.msk [vmem:[#allocation3] sm:$0xff] %vm692_vm7, %v1560_v23 }
 0x610   : > { %1554 = vst.msk [vmem:[#allocation3 + $0x8] sm:$0xff] %vm679_vm6, %v1550_v24 }
 0x612   : > { %v1572_v25 = vpop.permute.xlu0 %1571  ;;  %v1562_v26 = vpop.permute.xlu1 %1561 }
 0x613   : > { %1577 = vst.msk [vmem:[#allocation3] sm:$0xff] %vm705_vm8, %v1572_v25 }
 0x614   : > { %1566 = vst.msk [vmem:[#allocation3 + $0x8] sm:$0xff] %vm692_vm7, %v1562_v26 }
 0x616   : > { %v1584_v27 = vpop.permute.xlu0 %1583  ;;  %v1574_v28 = vpop.permute.xlu1 %1573 }
 0x617   : > { %1589 = vst.msk [vmem:[#allocation3] sm:$0xff] %vm718_vm9, %v1584_v27 }
 0x618   : > { %1578 = vst.msk [vmem:[#allocation3 + $0x8] sm:$0xff] %vm705_vm8, %v1574_v28 }
 0x61a   : > { %v1596_v29 = vpop.permute.xlu0 %1595  ;;  %v1586_v30 = vpop.permute.xlu1 %1585 }
 0x61b   : > { %1601 = vst.msk [vmem:[#allocation3] sm:$0xff] %vm731_vm10, %v1596_v29 }
 0x61c   : > { %1590 = vst.msk [vmem:[#allocation3 + $0x8] sm:$0xff] %vm718_vm9, %v1586_v30 }
 0x61e   : > { %v1598_v31 = vpop.permute.xlu1 %1597 }
 0x61f   : > { %1602 = vst.msk [vmem:[#allocation3 + $0x8] sm:$0xff] %vm731_vm10, %v1598_v31 }
 0x622   : > { %v1603_v32 = vld [vmem:[#allocation3] sm:$0xff] }
 0x626   : > { %v1604_v16 = vld [vmem:[#allocation3 + $0x8] sm:$0xff] }
 0x627   : > { %v1615_v34 = vpack.c.bf16 %v1604_v16, %v1603_v32 }
 0x629   : > { %4171 = vmatmul.mubr.msk.bf16.vlgmr.msra.gmra.mxu1 %vm891_vm11, %v1615_v34 }
 0x62a   : > { %4175 = vmatpush3.bf16.msra.mxu1 %v4520_v33  ;;  %4190 = vmatprep.mubr.msk.bf16.mxu1 %vm4726_vm1, %v4725_v0 }
 0x62b   : > { %4176 = vmatprep.subr.bf16.mxu1 %v4725_v0 }
 0x62e   : > { %4177 = vmatpush3.bf16.msra.mxu1 %v4522_v35 }
 0x62f   : > { %4178 = vmatprep.subr.bf16.mxu1 %v4725_v0 }
 0x632   : > { %4179 = vmatpush3.bf16.msra.mxu1 %v4524_v36 }
 0x633   : > { %4180 = vmatprep.subr.bf16.mxu1 %v4725_v0 }
 0x636   : > { %4181 = vmatpush3.bf16.msra.mxu1 %v4526_v37  ;;  %v4544_v37 = vld [vmem:[#allocation5 + $0x8c] ss:$0 sps:$4 sm:$0xff]  }
 0x637   : > { %4182 = vmatprep.subr.bf16.mxu1 %v4725_v0 }
 0x63a   : > { %4183 = vmatpush3.bf16.msra.mxu1 %v4528_v21  ;;  %v2319_v21 = vsel %vm895_vm2, %v4544_v37, 0 }
 0x63b   : > { %4184 = vmatprep.subr.bf16.mxu1 %v4725_v0 }
 0x63e   : > { %4185 = vmatpush3.bf16.msra.mxu1 %v4530_v39 }
 0x63f   : > { %4186 = vmatprep.subr.bf16.mxu1 %v4725_v0 }
 0x642   : > { %4187 = vmatpush3.bf16.msra.mxu1 %v4532_v41 }
 0x643   : > { %4188 = vmatprep.subr.bf16.mxu1 %v4725_v0 }
 0x646   : > { %4189 = vmatpush3.bf16.msra.mxu1 %v4534_v43  ;;  %v4546_v43 = vld [vmem:[#allocation5 + $0x7c] sm:$0xff]  }
 0x647   : > { %4214 = vmatprep.subr.bf16.mxu1 %v4725_v0 }
 0x6e9   : > { %v1802_v47 = vpop.f32.mrf.mxu1 }
 0x6ea   : > { %v1803_v51 = vadd.f32 %v1802_v47, %v5265_v46  ;;  %v4547_v47 = vld [vmem:[#allocation5 + $0x74] sm:$0xff]  }
 0x6eb   : > { %v4172_v52 = vpop.f32.mrf.mxu1 }
 0x6ec   : > { %v1817_v53 = vadd.f32 %v3609_v48, %v1803_v51 }
 0x6ed   : > { %v1805_v54 = vpop.f32.mrf.mxu1 }
 0x6ee   : > { %v1819_v57 = vmax.f32 %v1817_v53, 0.0  ;;  %v1806_v58 = vadd.f32 %v1805_v54, %v5270_v50 }
 0x6ef   : > { %v4173_v59 = vpop.f32.mrf.mxu1 }
 0x6f0   : > { %v1821_v60 = vadd.f32 %v1819_v57, %v510_v55  ;;  %v1818_v61 = vadd.f32 %v3609_v48, %v1806_v58  ;;  %v4553_v58 = vld [vmem:[%s5796_s4 + $0x138] sm:$0xff]   ;;  %v4555_v59 = vld [vmem:[%s5796_s4 + $0x130] sm:$0xff]  }
 0x6f2   : > { %2169 = vst [vmem:[#allocation4 + $0x8] sm:$0xff] %v1821_v60  ;;  %v1820_v63 = vmax.f32 %v1818_v61, 0.0 }
 0x6f4   : > { %v1822_v1 = vadd.f32 %v1820_v63, %v511_v62 }
 0x6f6   : > { %v1840_v46 = vpack.c.bf16 %v1822_v1, %v1821_v60  ;;  %2170 = vst [vmem:[#allocation4 + $0x10] sm:$0xff] %v1822_v1 }
 0x6f8   : > { %4191 = vmatmul.mubr.bf16.vlgmr.msra.gmra.mxu1 %v1840_v46  ;;  %4211 = vmatmul.mubr.bf16.vlgmr.msra.gmra.mxu0 %v1840_v46 }
 0x6f9   : > { %4215 = vmatpush3.bf16.msra.mxu1 %v4536_v13  ;;  %4230 = vmatprep.mubr.msk.bf16.mxu1 %vm4726_vm1, %v4725_v0  ;;  %v2171_v50 = vld [vmem:[#allocation4 + $0x7] sm:$0xff] }
 0x6fa   : > { %4216 = vmatprep.subr.bf16.mxu1 %v4725_v0  ;;  %4244 = vmatprep.mubr.msk.bf16.mxu0 %vm4726_vm1, %v4725_v0  ;;  %v2175_v5 = vmax.f32 %v2171_v50, %v1821_v60 }
 0x6fb   : > { %4235 = vmatpush3.bf16.msra.mxu0 %v2319_v21 }
 0x6fc   : > { %4236 = vmatprep.subr.bf16.mxu0 %v4725_v0 }
 0x6fd   : > { %4217 = vmatpush3.bf16.msra.mxu1 %v4537_v17  ;;  %v2172_v3 = vld [vmem:[#allocation4 + $0xf] sm:$0xff] }
 0x6fe   : > { %v2177_v4 = vld [vmem:[#allocation4 + $0x9] sm:$0xff]  ;;  %4218 = vmatprep.subr.bf16.mxu1 %v4725_v0  ;;  %v2176_v6 = vmax.f32 %v2172_v3, %v1822_v1  ;;  %v2178_v7 = vld [vmem:[#allocation4 + $0x11] sm:$0xff] }
 0x6ff   : > { %v2179_v8 = vmax.f32 %v2175_v5, %v2177_v4  ;;  %4237 = vmatpush3.bf16.msra.mxu0 %v4545_v40 }
 0x700   : > { %v2180_v9 = vmax.f32 %v2176_v6, %v2178_v7  ;;  %4238 = vmatprep.subr.bf16.mxu0 %v4725_v0 }
 0x701   : > { %4219 = vmatpush3.bf16.msra.mxu1 %v4538_v2 }
 0x702   : > { %4220 = vmatprep.subr.bf16.mxu1 %v4725_v0  ;;  %v2198_v11 = vpack.c.bf16 %v2180_v9, %v2179_v8 }
 0x703   : > { %4239 = vmatpush3.bf16.msra.mxu0 %v4546_v43 }
 0x704   : > { %4240 = vmatprep.subr.bf16.mxu0 %v4725_v0 }
 0x705   : > { %4221 = vmatpush3.bf16.msra.mxu1 %v4539_v10 }
 0x706   : > { %4222 = vmatprep.subr.bf16.mxu1 %v4725_v0 }
 0x707   : > { %4241 = vmatpush3.bf16.msra.mxu0 %v4547_v47 }
 0x708   : > { %4242 = vmatprep.subr.bf16.mxu0 %v4725_v0 }
 0x709   : > { %4223 = vmatpush3.bf16.msra.mxu1 %v4540_v12 }
 0x70a   : > { %4224 = vmatprep.subr.bf16.mxu1 %v4725_v0 }
 0x70b   : > { %4243 = vmatpush3.bf16.msra.mxu0 %v4548_v49 }
 0x70c   : > { %4248 = vmatprep.subr.bf16.mxu0 %v4725_v0 }
 0x70d   : > { %4225 = vmatpush3.bf16.msra.mxu1 %v4541_v14  ;;  %v4550_v14 = vld [vmem:[%s5793_s1 + $0x130] sm:$0xff]  }
 0x70e   : > { %4226 = vmatprep.subr.bf16.mxu1 %v4725_v0 }
 0x711   : > { %4227 = vmatpush3.bf16.msra.mxu1 %v4542_v15  ;;  %v4551_v15 = vld [vmem:[%s5793_s1 + $0x128] sm:$0xff]  }
 0x712   : > { %4228 = vmatprep.subr.bf16.mxu1 %v4725_v0 }
 0x715   : > { %4229 = vmatpush3.bf16.msra.mxu1 %v4543_v18  ;;  %v4552_v18 = vld [vmem:[%s5793_s1 + $0x120] sm:$0xff]  }
 0x716   : > { %4268 = vmatprep.subr.bf16.mxu1 %v4725_v0 }
 0x718   : > { %4231 = vmatmul.mubr.bf16.vlgmr.msra.gmra.mxu1 %v2198_v11  ;;  %v4549_v11 = vld [vmem:[%s5793_s1 + $0x138] sm:$0xff]  }
 0x719   : > { %4284 = vmatprep.mubr.msk.bf16.mxu1 %vm4726_vm1, %v4725_v0  ;;  %4269 = vmatpush3.bf16.msra.mxu1 %v4553_v58 }
 0x71a   : > { %4270 = vmatprep.subr.bf16.mxu1 %v4725_v0 }
 0x71d   : > { %4271 = vmatpush3.bf16.msra.mxu1 %v4555_v59 }
 0x71e   : > { %4272 = vmatprep.subr.bf16.mxu1 %v4725_v0 }
 0x7b8   : > { %v5426_v20 = vpop.f32.mrf.mxu1  ;;  %v2047_v22 = vpop.f32.mrf.mxu0 }
 0x7b9   : > { %v2048_v23 = vadd.f32 %v3653_v19, %v2047_v22  ;;  %v4556_v22 = vld [vmem:[%s5793_s1 + $0x110] sm:$0xff]  }
 0x7ba   : > { %v4192_v24 = vpop.f32.mrf.mxu1  ;;  %v4212_v25 = vpop.f32.mrf.mxu0 }
 0x7bb   : > { %2054 = vst.msk [vmem:[#allocation2 + $0x8] sm:$0xff] %vm390_vm0, %v2048_v23  ;;  %v4557_v23 = vld [vmem:[%s5796_s4 + $0x128] sm:$0xff]   ;;  %v4559_v25 = vld [vmem:[%s5796_s4 + $0x120] sm:$0xff]  }
 0x7bc   : > { %v5429_v26 = vpop.f32.mrf.mxu1  ;;  %v2050_v27 = vpop.f32.mrf.mxu0  ;;  %4273 = vmatpush3.bf16.msra.mxu1 %v4557_v23  ;;  %v4558_v24 = vld [vmem:[%s5793_s1 + $0x108] sm:$0xff]  }
 0x7bd   : > { %v2051_v28 = vadd.f32 %v3653_v19, %v2050_v27  ;;  %v4554_v19 = vld [vmem:[%s5793_s1 + $0x118] sm:$0xff]   ;;  %4274 = vmatprep.subr.bf16.mxu1 %v4725_v0  ;;  %v4560_v27 = vld [vmem:[%s5793_s1 + $0x100] sm:$0xff]  }
 0x7be   : > { %v4193_v29 = vpop.f32.mrf.mxu1  ;;  %v4213_v30 = vpop.f32.mrf.mxu0 }
 0x7bf   : > { %2055 = vst.msk [vmem:[#allocation2 + $0x10] sm:$0xff] %vm390_vm0, %v2051_v28  ;;  %v4561_v28 = vld [vmem:[%s5796_s4 + $0x118] sm:$0xff]   ;;  %v4562_v29 = vld [vmem:[%s5796_s4 + $0x110] sm:$0xff]   ;;  %v4563_v30 = vld [vmem:[%s5796_s4 + $0x108] sm:$0xff]  }
 0x7c0   : > { %4275 = vmatpush3.bf16.msra.mxu1 %v4559_v25 }
 0x7c1   : > { %4276 = vmatprep.subr.bf16.mxu1 %v4725_v0 }
 0x7c2   : > { %v2060_v31 = vld [vmem:[#allocation2 + $0x5] sm:$0xff] }
 0x7c3   : > { %2064 = vrot.lane.b32.xlu0 %v2060_v31, %s5842_s0  ;;  %v2056_v32 = vld [vmem:[#allocation2 + $0x4] sm:$0xff] }
 0x7c4   : > { %2058 = vst.msk [vmem:[#allocation3] sm:$0xff] %vm390_vm0, %v2056_v32  ;;  %v2072_v16 = vld [vmem:[#allocation2 + $0x6] sm:$0xff]  ;;  %4277 = vmatpush3.bf16.msra.mxu1 %v4561_v28 }
 0x7c5   : > { %v2084_v35 = vld [vmem:[#allocation2 + $0x7] sm:$0xff]  ;;  %4278 = vmatprep.subr.bf16.mxu1 %v4725_v0 }
 0x7c6   : > { %v2061_v33 = vld [vmem:[#allocation2 + $0xd] sm:$0xff]  ;;  %v4564_v31 = vld [vmem:[%s5796_s4 + $0x100] sm:$0xff]  }
 0x7c7   : > { %2076 = vrot.lane.b32.xlu0 %v2072_v16, %s5843_s3  ;;  %2066 = vrot.lane.b32.xlu1 %v2061_v33, %s5842_s0  ;;  %v2144_v34 = vld [vmem:[#allocation2 + $0xc] sm:$0xff]  ;;  %v2145_v57 = vld [vmem:[#allocation2 + $0x14] sm:$0xff]  ;;  %v3693_v16 = vld [vmem:[%s5797_s5 + $0x3] ss:$0 sm:$0xff] }
 0x7c8   : > { %v2073_v36 = vld [vmem:[#allocation2 + $0xe] sm:$0xff]  ;;  %2059 = vst.msk [vmem:[#allocation3 + $0x8] sm:$0xff] %vm390_vm0, %v2144_v34  ;;  %4279 = vmatpush3.bf16.msra.mxu1 %v4562_v29  ;;  %v4573_v29 = vld [vmem:[%s5793_s1 + $0x160] sm:$0xff]  }
 0x7c9   : > { %v2096_v38 = vld [vmem:[#allocation2 + $0x8] sm:$0xff]  ;;  %v2097_v42 = vld [vmem:[#allocation2 + $0x10] sm:$0xff]  ;;  %4280 = vmatprep.subr.bf16.mxu1 %v4725_v0 }
 0x7ca   : > { %v2085_v39 = vld [vmem:[#allocation2 + $0xf] sm:$0xff] }
 0x7cb   : > { %2088 = vrot.lane.b32.xlu0 %v2084_v35, %s5844_s18  ;;  %2078 = vrot.lane.b32.xlu1 %v2073_v36, %s5843_s3  ;;  %v2108_v41 = vld [vmem:[#allocation2 + $0x9] sm:$0xff]  ;;  %v2109_v45 = vld [vmem:[#allocation2 + $0x11] sm:$0xff] }
 0x7cc   : > { %v2120_v44 = vld [vmem:[#allocation2 + $0xa] sm:$0xff]  ;;  %v2121_v53 = vld [vmem:[#allocation2 + $0x12] sm:$0xff]  ;;  %4281 = vmatpush3.bf16.msra.mxu1 %v4563_v30 }
 0x7cd   : > { %v2132_v52 = vld [vmem:[#allocation2 + $0xb] sm:$0xff]  ;;  %v2133_v56 = vld [vmem:[#allocation2 + $0x13] sm:$0xff]  ;;  %4282 = vmatprep.subr.bf16.mxu1 %v4725_v0 }
 0x7ce   : > { %v4572_v28 = vld [vmem:[%s5793_s1 + $0x168] sm:$0xff]   ;;  %v4575_v30 = vld [vmem:[%s5793_s1 + $0x158] sm:$0xff]  }
 0x7cf   : > { %2100 = vrot.lane.b32.xlu0 %v2096_v38, %s5837_s26  ;;  %2090 = vrot.lane.b32.xlu1 %v2085_v39, %s5844_s18 }
 0x7d0   : > { %4283 = vmatpush3.bf16.msra.mxu1 %v4564_v31 }
 0x7d1   : > { %4302 = vmatprep.subr.bf16.mxu1 %v4725_v0 }
 0x7d3   : > { %2112 = vrot.lane.b32.xlu0 %v2108_v41, %s5838_s12  ;;  %2102 = vrot.lane.b32.xlu1 %v2097_v42, %s5837_s26 }
 0x7d7   : > { %2124 = vrot.lane.b32.xlu0 %v2120_v44, %s5839_s29  ;;  %2114 = vrot.lane.b32.xlu1 %v2109_v45, %s5838_s12 }
 0x7d8   : > { %v5449_v48 = vpop.f32.mrf.mxu1 }
 0x7da   : > { %v4232_v51 = vpop.f32.mrf.mxu1 }
 0x7db   : > { %2136 = vrot.lane.b32.xlu0 %v2132_v52, %s5840_s25  ;;  %2126 = vrot.lane.b32.xlu1 %v2121_v53, %s5839_s29  ;;  %v3711_v53 = vld [vmem:[%s5794_s2 + $0x4] ss:$0 sm:$0xff] }
 0x7dc   : > { %v5454_v54 = vpop.f32.mrf.mxu1 }
 0x7de   : > { %v4233_v55 = vpop.f32.mrf.mxu1 }
 0x7df   : > { %2148 = vrot.lane.b32.xlu0 %v2144_v34, %s5841_s11  ;;  %2138 = vrot.lane.b32.xlu1 %v2133_v56, %s5840_s25 }
 0x7e3   : > { %2150 = vrot.lane.b32.xlu1 %v2145_v57, %s5841_s11 }
 0x835   : > { %v2065_v60 = vpop.permute.xlu0 %2064 }
 0x836   : > { %2070 = vst.msk [vmem:[#allocation3] sm:$0xff] %vm640_vm3, %v2065_v60 }
 0x839   : > { %v2077_v61 = vpop.permute.xlu0 %2076  ;;  %v2067_v62 = vpop.permute.xlu1 %2066 }
 0x83a   : > { %2082 = vst.msk [vmem:[#allocation3] sm:$0xff] %vm653_vm4, %v2077_v61 }
 0x83b   : > { %2071 = vst.msk [vmem:[#allocation3 + $0x8] sm:$0xff] %vm640_vm3, %v2067_v62 }
 0x83d   : > { %v2089_v63 = vpop.permute.xlu0 %2088  ;;  %v2079_v1 = vpop.permute.xlu1 %2078 }
 0x83e   : > { %2094 = vst.msk [vmem:[#allocation3] sm:$0xff] %vm666_vm5, %v2089_v63 }
 0x83f   : > { %2083 = vst.msk [vmem:[#allocation3 + $0x8] sm:$0xff] %vm653_vm4, %v2079_v1 }
 0x841   : > { %v2101_v13 = vpop.permute.xlu0 %2100  ;;  %v2091_v46 = vpop.permute.xlu1 %2090 }
 0x842   : > { %2106 = vst.msk [vmem:[#allocation3] sm:$0xff] %vm679_vm6, %v2101_v13 }
 0x843   : > { %2095 = vst.msk [vmem:[#allocation3 + $0x8] sm:$0xff] %vm666_vm5, %v2091_v46 }
 0x845   : > { %v2113_v17 = vpop.permute.xlu0 %2112  ;;  %v2103_v50 = vpop.permute.xlu1 %2102 }
 0x846   : > { %2118 = vst.msk [vmem:[#allocation3] sm:$0xff] %vm692_vm7, %v2113_v17 }
 0x847   : > { %2107 = vst.msk [vmem:[#allocation3 + $0x8] sm:$0xff] %vm679_vm6, %v2103_v50 }
 0x849   : > { %v2125_v2 = vpop.permute.xlu0 %2124  ;;  %v2115_v3 = vpop.permute.xlu1 %2114 }
 0x84a   : > { %2130 = vst.msk [vmem:[#allocation3] sm:$0xff] %vm705_vm8, %v2125_v2 }
 0x84b   : > { %2119 = vst.msk [vmem:[#allocation3 + $0x8] sm:$0xff] %vm692_vm7, %v2115_v3 }
 0x84d   : > { %v2137_v4 = vpop.permute.xlu0 %2136  ;;  %v2127_v5 = vpop.permute.xlu1 %2126 }
 0x84e   : > { %2142 = vst.msk [vmem:[#allocation3] sm:$0xff] %vm718_vm9, %v2137_v4  ;;  %v4565_v4 = vld [vmem:[#allocation5 + $0xb0] ss:$0 sps:$4 sm:$0xff]  }
 0x84f   : > { %2131 = vst.msk [vmem:[#allocation3 + $0x8] sm:$0xff] %vm705_vm8, %v2127_v5  ;;  %v2754_v5 = vsel %vm895_vm2, %v4565_v4, 0 }
 0x851   : > { %v2149_v6 = vpop.permute.xlu0 %2148  ;;  %v2139_v7 = vpop.permute.xlu1 %2138 }
 0x852   : > { %2154 = vst.msk [vmem:[#allocation3] sm:$0xff] %vm731_vm10, %v2149_v6 }
 0x853   : > { %2143 = vst.msk [vmem:[#allocation3 + $0x8] sm:$0xff] %vm718_vm9, %v2139_v7 }
 0x855   : > { %v2151_v8 = vpop.permute.xlu1 %2150 }
 0x856   : > { %2155 = vst.msk [vmem:[#allocation3 + $0x8] sm:$0xff] %vm731_vm10, %v2151_v8  ;;  %v4566_v8 = vld [vmem:[#allocation5 + $0xa8] sm:$0xff]  }
 0x859   : > { %v2156_v9 = vld [vmem:[#allocation3] sm:$0xff] }
 0x85d   : > { %v2157_v10 = vld [vmem:[#allocation3 + $0x8] sm:$0xff] }
 0x85e   : > { %v2168_v12 = vpack.c.bf16 %v2157_v10, %v2156_v9 }
 0x860   : > { %4245 = vmatmul.mubr.msk.bf16.vlgmr.msra.gmra.mxu0 %vm891_vm11, %v2168_v12 }
 0x861   : > { %4249 = vmatpush3.bf16.msra.mxu0 %v4549_v11  ;;  %4264 = vmatprep.mubr.msk.bf16.mxu0 %vm4726_vm1, %v4725_v0  ;;  %v4567_v11 = vld [vmem:[#allocation5 + $0xa0] sm:$0xff]  }
 0x862   : > { %4250 = vmatprep.subr.bf16.mxu0 %v4725_v0 }
 0x865   : > { %4251 = vmatpush3.bf16.msra.mxu0 %v4550_v14 }
 0x866   : > { %4252 = vmatprep.subr.bf16.mxu0 %v4725_v0 }
 0x869   : > { %4253 = vmatpush3.bf16.msra.mxu0 %v4551_v15  ;;  %v4568_v15 = vld [vmem:[#allocation5 + $0x98] sm:$0xff]  }
 0x86a   : > { %4254 = vmatprep.subr.bf16.mxu0 %v4725_v0 }
 0x86d   : > { %4255 = vmatpush3.bf16.msra.mxu0 %v4552_v18  ;;  %v4569_v18 = vld [vmem:[#allocation5 + $0x90] sm:$0xff]  }
 0x86e   : > { %4256 = vmatprep.subr.bf16.mxu0 %v4725_v0 }
 0x871   : > { %4257 = vmatpush3.bf16.msra.mxu0 %v4554_v19 }
 0x872   : > { %4258 = vmatprep.subr.bf16.mxu0 %v4725_v0 }
 0x875   : > { %4259 = vmatpush3.bf16.msra.mxu0 %v4556_v22 }
 0x876   : > { %4260 = vmatprep.subr.bf16.mxu0 %v4725_v0 }
 0x879   : > { %4261 = vmatpush3.bf16.msra.mxu0 %v4558_v24  ;;  %v4570_v24 = vld [vmem:[%s5793_s1 + $0x178] sm:$0xff]  }
 0x87a   : > { %4262 = vmatprep.subr.bf16.mxu0 %v4725_v0 }
 0x87d   : > { %4263 = vmatpush3.bf16.msra.mxu0 %v4560_v27  ;;  %v4571_v27 = vld [vmem:[%s5793_s1 + $0x170] sm:$0xff]  }
 0x87e   : > { %4288 = vmatprep.subr.bf16.mxu0 %v4725_v0 }
 0x920   : > { %v2355_v32 = vpop.f32.mrf.mxu0 }
 0x921   : > { %v2356_v33 = vadd.f32 %v2355_v32, %v5449_v48 }
 0x922   : > { %v4246_v34 = vpop.f32.mrf.mxu0 }
 0x923   : > { %v2370_v35 = vadd.f32 %v3693_v16, %v2356_v33 }
 0x924   : > { %v2358_v36 = vpop.f32.mrf.mxu0 }
 0x925   : > { %v2372_v37 = vmax.f32 %v2370_v35, 0.0  ;;  %v2359_v21 = vadd.f32 %v2358_v36, %v5454_v54 }
 0x926   : > { %v4247_v38 = vpop.f32.mrf.mxu0 }
 0x927   : > { %2604 = vst [vmem:[#allocation4 + $0x8] sm:$0xff] %v2372_v37  ;;  %v2371_v39 = vadd.f32 %v3693_v16, %v2359_v21 }
 0x929   : > { %v2373_v40 = vmax.f32 %v2371_v39, 0.0 }
 0x92b   : > { %v2391_v41 = vpack.c.bf16 %v2373_v40, %v2372_v37  ;;  %2605 = vst [vmem:[#allocation4 + $0x10] sm:$0xff] %v2373_v40 }
 0x92d   : > { %4265 = vmatmul.mubr.bf16.vlgmr.msra.gmra.mxu0 %v2391_v41 }
 0x92e   : > { %4298 = vmatprep.mubr.msk.bf16.mxu0 %vm4726_vm1, %v4725_v0  ;;  %v2606_v42 = vld [vmem:[#allocation4 + $0x7] sm:$0xff]  ;;  %4289 = vmatpush3.bf16.msra.mxu0 %v2754_v5 }
 0x92f   : > { %v2610_v45 = vmax.f32 %v2606_v42, %v2372_v37  ;;  %4290 = vmatprep.subr.bf16.mxu0 %v4725_v0 }
 0x932   : > { %v2607_v43 = vld [vmem:[#allocation4 + $0xf] sm:$0xff]  ;;  %4291 = vmatpush3.bf16.msra.mxu0 %v4566_v8 }
 0x933   : > { %v2612_v44 = vld [vmem:[#allocation4 + $0x9] sm:$0xff]  ;;  %v2611_v47 = vmax.f32 %v2607_v43, %v2373_v40  ;;  %v2613_v48 = vld [vmem:[#allocation4 + $0x11] sm:$0xff]  ;;  %4292 = vmatprep.subr.bf16.mxu0 %v4725_v0 }
 0x934   : > { %v2614_v49 = vmax.f32 %v2610_v45, %v2612_v44 }
 0x935   : > { %v2615_v51 = vmax.f32 %v2611_v47, %v2613_v48  ;;  %v4574_v48 = vld [vmem:[%s5796_s4 + $0x178] sm:$0xff]  }
 0x936   : > { %4293 = vmatpush3.bf16.msra.mxu0 %v4567_v11 }
 0x937   : > { %v2633_v52 = vpack.c.bf16 %v2615_v51, %v2614_v49  ;;  %4294 = vmatprep.subr.bf16.mxu0 %v4725_v0  ;;  %v4576_v51 = vld [vmem:[%s5796_s4 + $0x170] sm:$0xff]  }
 0x939   : > { %4285 = vmatmul.mubr.bf16.vlgmr.msra.gmra.mxu1 %v2633_v52  ;;  %v4577_v52 = vld [vmem:[%s5793_s1 + $0x150] sm:$0xff]  }
 0x93a   : > { %4318 = vmatprep.mubr.msk.bf16.mxu1 %vm4726_vm1, %v4725_v0  ;;  %4295 = vmatpush3.bf16.msra.mxu0 %v4568_v15 }
 0x93b   : > { %4296 = vmatprep.subr.bf16.mxu0 %v4725_v0  ;;  %4303 = vmatpush3.bf16.msra.mxu1 %v4570_v24 }
 0x93c   : > { %4304 = vmatprep.subr.bf16.mxu1 %v4725_v0 }
 0x93e   : > { %4297 = vmatpush3.bf16.msra.mxu0 %v4569_v18 }
 0x93f   : > { %4322 = vmatprep.subr.bf16.mxu0 %v4725_v0  ;;  %4305 = vmatpush3.bf16.msra.mxu1 %v4571_v27 }
 0x940   : > { %4306 = vmatprep.subr.bf16.mxu1 %v4725_v0 }
 0x943   : > { %4307 = vmatpush3.bf16.msra.mxu1 %v4572_v28 }
 0x944   : > { %4308 = vmatprep.subr.bf16.mxu1 %v4725_v0 }
 0x947   : > { %4309 = vmatpush3.bf16.msra.mxu1 %v4573_v29 }
 0x948   : > { %4310 = vmatprep.subr.bf16.mxu1 %v4725_v0 }
 0x94b   : > { %4311 = vmatpush3.bf16.msra.mxu1 %v4575_v30 }
 0x94c   : > { %4312 = vmatprep.subr.bf16.mxu1 %v4725_v0 }
 0x94f   : > { %4313 = vmatpush3.bf16.msra.mxu1 %v4577_v52 }
 0x950   : > { %4314 = vmatprep.subr.bf16.mxu1 %v4725_v0 }
 0x9ed   : > { %v2482_v54 = vpop.f32.mrf.mxu0 }
 0x9ee   : > { %v2483_v55 = vadd.f32 %v3711_v53, %v2482_v54  ;;  %v4579_v54 = vld [vmem:[%s5793_s1 + $0x148] sm:$0xff]  }
 0x9ef   : > { %v4266_v56 = vpop.f32.mrf.mxu0  ;;  %4315 = vmatpush3.bf16.msra.mxu1 %v4579_v54 }
 0x9f0   : > { %2489 = vst.msk [vmem:[#allocation2 + $0x8] sm:$0xff] %vm390_vm0, %v2483_v55  ;;  %v4580_v55 = vld [vmem:[%s5796_s4 + $0x160] sm:$0xff]   ;;  %4316 = vmatprep.subr.bf16.mxu1 %v4725_v0 }
 0x9f1   : > { %v2485_v57 = vpop.f32.mrf.mxu0  ;;  %v4581_v56 = vld [vmem:[%s5793_s1 + $0x140] sm:$0xff]  }
 0x9f2   : > { %v2486_v58 = vadd.f32 %v3711_v53, %v2485_v57  ;;  %v4578_v53 = vld [vmem:[%s5796_s4 + $0x168] sm:$0xff]   ;;  %v4582_v57 = vld [vmem:[%s5796_s4 + $0x158] sm:$0xff]  }
 0x9f3   : > { %v4267_v59 = vpop.f32.mrf.mxu0  ;;  %4317 = vmatpush3.bf16.msra.mxu1 %v4581_v56 }
 0x9f4   : > { %2490 = vst.msk [vmem:[#allocation2 + $0x10] sm:$0xff] %vm390_vm0, %v2486_v58  ;;  %v4583_v58 = vld [vmem:[%s5796_s4 + $0x150] sm:$0xff]   ;;  %4342 = vmatprep.subr.bf16.mxu1 %v4725_v0  ;;  %v4584_v59 = vld [vmem:[%s5796_s4 + $0x148] sm:$0xff]  }
 0x9f7   : > { %v2495_v60 = vld [vmem:[#allocation2 + $0x5] sm:$0xff] }
 0x9f8   : > { %2499 = vrot.lane.b32.xlu0 %v2495_v60, %s5842_s0  ;;  %v2491_v61 = vld [vmem:[#allocation2 + $0x4] sm:$0xff] }
 0x9f9   : > { %v5558_v62 = vpop.f32.mrf.mxu1  ;;  %2493 = vst.msk [vmem:[#allocation3] sm:$0xff] %vm390_vm0, %v2491_v61  ;;  %v2507_v1 = vld [vmem:[#allocation2 + $0x6] sm:$0xff] }
 0x9fa   : > { %v2519_v2 = vld [vmem:[#allocation2 + $0x7] sm:$0xff] }
 0x9fb   : > { %v4286_v63 = vpop.f32.mrf.mxu1  ;;  %v2496_v13 = vld [vmem:[#allocation2 + $0xd] sm:$0xff]  ;;  %v4585_v60 = vld [vmem:[%s5796_s4 + $0x140] sm:$0xff]  }
 0x9fc   : > { %2511 = vrot.lane.b32.xlu0 %v2507_v1, %s5843_s3  ;;  %2501 = vrot.lane.b32.xlu1 %v2496_v13, %s5842_s0  ;;  %v2579_v17 = vld [vmem:[#allocation2 + $0xc] sm:$0xff]  ;;  %v2580_v25 = vld [vmem:[#allocation2 + $0x14] sm:$0xff]  ;;  %v3751_v63 = vld [vmem:[%s5797_s5 + $0x4] ss:$0 sm:$0xff] }
 0x9fd   : > { %v5563_v46 = vpop.f32.mrf.mxu1  ;;  %v2508_v3 = vld [vmem:[#allocation2 + $0xe] sm:$0xff]  ;;  %2494 = vst.msk [vmem:[#allocation3 + $0x8] sm:$0xff] %vm390_vm0, %v2579_v17 }
 0x9fe   : > { %v2531_v6 = vld [vmem:[#allocation2 + $0x8] sm:$0xff]  ;;  %v2532_v10 = vld [vmem:[#allocation2 + $0x10] sm:$0xff] }
 0x9ff   : > { %v4287_v50 = vpop.f32.mrf.mxu1  ;;  %v2520_v7 = vld [vmem:[#allocation2 + $0xf] sm:$0xff] }
 0xa00   : > { %2523 = vrot.lane.b32.xlu0 %v2519_v2, %s5844_s18  ;;  %2513 = vrot.lane.b32.xlu1 %v2508_v3, %s5843_s3  ;;  %v2543_v9 = vld [vmem:[#allocation2 + $0x9] sm:$0xff]  ;;  %v2544_v14 = vld [vmem:[#allocation2 + $0x11] sm:$0xff] }
 0xa01   : > { %v2555_v12 = vld [vmem:[#allocation2 + $0xa] sm:$0xff]  ;;  %v2556_v22 = vld [vmem:[#allocation2 + $0x12] sm:$0xff] }
 0xa02   : > { %v2567_v19 = vld [vmem:[#allocation2 + $0xb] sm:$0xff]  ;;  %v2568_v23 = vld [vmem:[#allocation2 + $0x13] sm:$0xff] }
 0xa04   : > { %2535 = vrot.lane.b32.xlu0 %v2531_v6, %s5837_s26  ;;  %2525 = vrot.lane.b32.xlu1 %v2520_v7, %s5844_s18 }
 0xa08   : > { %2547 = vrot.lane.b32.xlu0 %v2543_v9, %s5838_s12  ;;  %2537 = vrot.lane.b32.xlu1 %v2532_v10, %s5837_s26 }
 0xa0c   : > { %2559 = vrot.lane.b32.xlu0 %v2555_v12, %s5839_s29  ;;  %2549 = vrot.lane.b32.xlu1 %v2544_v14, %s5838_s12 }
 0xa10   : > { %2571 = vrot.lane.b32.xlu0 %v2567_v19, %s5840_s25  ;;  %2561 = vrot.lane.b32.xlu1 %v2556_v22, %s5839_s29 }
 0xa14   : > { %2583 = vrot.lane.b32.xlu0 %v2579_v17, %s5841_s11  ;;  %2573 = vrot.lane.b32.xlu1 %v2568_v23, %s5840_s25 }
 0xa18   : > { %2585 = vrot.lane.b32.xlu1 %v2580_v25, %s5841_s11 }
 0xa6a   : > { %v2500_v31 = vpop.permute.xlu0 %2499 }
 0xa6b   : > { %2505 = vst.msk [vmem:[#allocation3] sm:$0xff] %vm640_vm3, %v2500_v31 }
 0xa6e   : > { %v2512_v32 = vpop.permute.xlu0 %2511  ;;  %v2502_v16 = vpop.permute.xlu1 %2501 }
 0xa6f   : > { %2517 = vst.msk [vmem:[#allocation3] sm:$0xff] %vm653_vm4, %v2512_v32 }
 0xa70   : > { %2506 = vst.msk [vmem:[#allocation3 + $0x8] sm:$0xff] %vm640_vm3, %v2502_v16 }
 0xa72   : > { %v2524_v33 = vpop.permute.xlu0 %2523  ;;  %v2514_v34 = vpop.permute.xlu1 %2513 }
 0xa73   : > { %2529 = vst.msk [vmem:[#allocation3] sm:$0xff] %vm666_vm5, %v2524_v33 }
 0xa74   : > { %2518 = vst.msk [vmem:[#allocation3 + $0x8] sm:$0xff] %vm653_vm4, %v2514_v34 }
 0xa76   : > { %v2536_v35 = vpop.permute.xlu0 %2535  ;;  %v2526_v36 = vpop.permute.xlu1 %2525 }
 0xa77   : > { %2541 = vst.msk [vmem:[#allocation3] sm:$0xff] %vm679_vm6, %v2536_v35 }
 0xa78   : > { %2530 = vst.msk [vmem:[#allocation3 + $0x8] sm:$0xff] %vm666_vm5, %v2526_v36 }
 0xa7a   : > { %v2548_v37 = vpop.permute.xlu0 %2547  ;;  %v2538_v21 = vpop.permute.xlu1 %2537 }
 0xa7b   : > { %2553 = vst.msk [vmem:[#allocation3] sm:$0xff] %vm692_vm7, %v2548_v37 }
 0xa7c   : > { %2542 = vst.msk [vmem:[#allocation3 + $0x8] sm:$0xff] %vm679_vm6, %v2538_v21  ;;  %v4586_v21 = vld [vmem:[#allocation5 + $0xd4] ss:$0 sps:$4 sm:$0xff]  }
 0xa7e   : > { %v2560_v38 = vpop.permute.xlu0 %2559  ;;  %v2550_v39 = vpop.permute.xlu1 %2549 }
 0xa7f   : > { %2565 = vst.msk [vmem:[#allocation3] sm:$0xff] %vm705_vm8, %v2560_v38  ;;  %v3189_v38 = vsel %vm895_vm2, %v4586_v21, 0 }
 0xa80   : > { %2554 = vst.msk [vmem:[#allocation3 + $0x8] sm:$0xff] %vm692_vm7, %v2550_v39 }
 0xa82   : > { %v2572_v40 = vpop.permute.xlu0 %2571  ;;  %v2562_v41 = vpop.permute.xlu1 %2561 }
 0xa83   : > { %2577 = vst.msk [vmem:[#allocation3] sm:$0xff] %vm718_vm9, %v2572_v40 }
 0xa84   : > { %2566 = vst.msk [vmem:[#allocation3 + $0x8] sm:$0xff] %vm705_vm8, %v2562_v41  ;;  %v4587_v41 = vld [vmem:[#allocation5 + $0xcc] sm:$0xff]  }
 0xa86   : > { %v2584_v42 = vpop.permute.xlu0 %2583  ;;  %v2574_v43 = vpop.permute.xlu1 %2573 }
 0xa87   : > { %2589 = vst.msk [vmem:[#allocation3] sm:$0xff] %vm731_vm10, %v2584_v42 }
 0xa88   : > { %2578 = vst.msk [vmem:[#allocation3 + $0x8] sm:$0xff] %vm718_vm9, %v2574_v43 }
 0xa8a   : > { %v2586_v44 = vpop.permute.xlu1 %2585 }
 0xa8b   : > { %2590 = vst.msk [vmem:[#allocation3 + $0x8] sm:$0xff] %vm731_vm10, %v2586_v44  ;;  %v4588_v44 = vld [vmem:[#allocation5 + $0xc4] sm:$0xff]  }
 0xa8e   : > { %v2591_v45 = vld [vmem:[#allocation3] sm:$0xff] }
 0xa92   : > { %v2592_v47 = vld [vmem:[#allocation3 + $0x8] sm:$0xff] }
 0xa93   : > { %v2603_v49 = vpack.c.bf16 %v2592_v47, %v2591_v45 }
 0xa95   : > { %4299 = vmatmul.mubr.msk.bf16.vlgmr.msra.gmra.mxu0 %vm891_vm11, %v2603_v49  ;;  %v4590_v49 = vld [vmem:[#allocation5 + $0xb4] sm:$0xff]  }
 0xa96   : > { %4323 = vmatpush3.bf16.msra.mxu0 %v4574_v48  ;;  %4338 = vmatprep.mubr.msk.bf16.mxu0 %vm4726_vm1, %v4725_v0  ;;  %v4589_v48 = vld [vmem:[#allocation5 + $0xbc] sm:$0xff]  }
 0xa97   : > { %4324 = vmatprep.subr.bf16.mxu0 %v4725_v0 }
 0xa9a   : > { %4325 = vmatpush3.bf16.msra.mxu0 %v4576_v51 }
 0xa9b   : > { %4326 = vmatprep.subr.bf16.mxu0 %v4725_v0 }
 0xa9e   : > { %4327 = vmatpush3.bf16.msra.mxu0 %v4578_v53 }
 0xa9f   : > { %4328 = vmatprep.subr.bf16.mxu0 %v4725_v0 }
 0xaa2   : > { %4329 = vmatpush3.bf16.msra.mxu0 %v4580_v55 }
 0xaa3   : > { %4330 = vmatprep.subr.bf16.mxu0 %v4725_v0 }
 0xaa6   : > { %4331 = vmatpush3.bf16.msra.mxu0 %v4582_v57 }
 0xaa7   : > { %4332 = vmatprep.subr.bf16.mxu0 %v4725_v0 }
 0xaaa   : > { %4333 = vmatpush3.bf16.msra.mxu0 %v4583_v58 }
 0xaab   : > { %4334 = vmatprep.subr.bf16.mxu0 %v4725_v0 }
 0xaae   : > { %4335 = vmatpush3.bf16.msra.mxu0 %v4584_v59 }
 0xaaf   : > { %4336 = vmatprep.subr.bf16.mxu0 %v4725_v0 }
 0xab2   : > { %4337 = vmatpush3.bf16.msra.mxu0 %v4585_v60 }
 0xab3   : > { %4356 = vmatprep.subr.bf16.mxu0 %v4725_v0 }
 0xb55   : > { %v2790_v61 = vpop.f32.mrf.mxu0 }
 0xb56   : > { %v2791_v1 = vadd.f32 %v2790_v61, %v5558_v62 }
 0xb57   : > { %v4300_v13 = vpop.f32.mrf.mxu0 }
 0xb58   : > { %v2805_v17 = vadd.f32 %v3751_v63, %v2791_v1 }
 0xb59   : > { %v2793_v50 = vpop.f32.mrf.mxu0 }
 0xb5a   : > { %v2807_v2 = vmax.f32 %v2805_v17, 0.0  ;;  %v2794_v3 = vadd.f32 %v2793_v50, %v5563_v46  ;;  %v3769_v46 = vld [vmem:[%s5794_s2 + $0x5] ss:$0 sm:$0xff] }
 0xb5b   : > { %v4301_v4 = vpop.f32.mrf.mxu0 }
 0xb5c   : > { %3039 = vst [vmem:[#allocation4 + $0x8] sm:$0xff] %v2807_v2  ;;  %v2806_v5 = vadd.f32 %v3751_v63, %v2794_v3 }
 0xb5e   : > { %v2808_v6 = vmax.f32 %v2806_v5, 0.0 }
 0xb60   : > { %v2826_v7 = vpack.c.bf16 %v2808_v6, %v2807_v2  ;;  %3040 = vst [vmem:[#allocation4 + $0x10] sm:$0xff] %v2808_v6 }
 0xb62   : > { %4319 = vmatmul.mubr.bf16.vlgmr.msra.gmra.mxu1 %v2826_v7 }
 0xb63   : > { %4352 = vmatprep.mubr.msk.bf16.mxu1 %vm4726_vm1, %v4725_v0  ;;  %v3041_v8 = vld [vmem:[#allocation4 + $0x7] sm:$0xff]  ;;  %4343 = vmatpush3.bf16.msra.mxu1 %v3189_v38 }
 0xb64   : > { %v3045_v62 = vmax.f32 %v3041_v8, %v2807_v2  ;;  %4344 = vmatprep.subr.bf16.mxu1 %v4725_v0 }
 0xb67   : > { %v3042_v9 = vld [vmem:[#allocation4 + $0xf] sm:$0xff]  ;;  %4345 = vmatpush3.bf16.msra.mxu1 %v4587_v41 }
 0xb68   : > { %v3047_v10 = vld [vmem:[#allocation4 + $0x9] sm:$0xff]  ;;  %v3046_v11 = vmax.f32 %v3042_v9, %v2808_v6  ;;  %v3048_v12 = vld [vmem:[#allocation4 + $0x11] sm:$0xff]  ;;  %4346 = vmatprep.subr.bf16.mxu1 %v4725_v0 }
 0xb69   : > { %v3049_v14 = vmax.f32 %v3045_v62, %v3047_v10  ;;  %v4591_v9 = vld [vmem:[#allocation8 + $0x38] sm:$0xff]   ;;  %v4592_v10 = vld [vmem:[#allocation8 + $0x30] sm:$0xff]   ;;  %v4593_v62 = vld [vmem:[#allocation8 + $0x28] sm:$0xff]  }
 0xb6a   : > { %v3050_v15 = vmax.f32 %v3046_v11, %v3048_v12  ;;  %v4594_v11 = vld [vmem:[#allocation8 + $0x20] sm:$0xff]   ;;  %v4595_v12 = vld [vmem:[#allocation8 + $0x18] sm:$0xff]  }
 0xb6b   : > { %4347 = vmatpush3.bf16.msra.mxu1 %v4588_v44 }
 0xb6c   : > { %v3068_v18 = vpack.c.bf16 %v3050_v15, %v3049_v14  ;;  %4348 = vmatprep.subr.bf16.mxu1 %v4725_v0  ;;  %v4596_v14 = vld [vmem:[#allocation8 + $0x10] sm:$0xff]   ;;  %v4597_v15 = vld [vmem:[#allocation8 + $0x8] sm:$0xff]  }
 0xb6e   : > { %4339 = vmatmul.mubr.bf16.vlgmr.msra.gmra.mxu0 %v3068_v18  ;;  %v4598_v18 = vld [vmem:[#allocation8] sm:$0xff]  }
 0xb6f   : > { %4372 = vmatprep.mubr.msk.bf16.mxu0 %vm4726_vm1, %v4725_v0  ;;  %4349 = vmatpush3.bf16.msra.mxu1 %v4589_v48 }
 0xb70   : > { %4350 = vmatprep.subr.bf16.mxu1 %v4725_v0  ;;  %4357 = vmatpush3.bf16.msra.mxu0 %v4591_v9 }
 0xb71   : > { %4358 = vmatprep.subr.bf16.mxu0 %v4725_v0 }
 0xb73   : > { %4351 = vmatpush3.bf16.msra.mxu1 %v4590_v49 }
 0xb74   : > { %4359 = vmatpush3.bf16.msra.mxu0 %v4592_v10 }
 0xb75   : > { %4360 = vmatprep.subr.bf16.mxu0 %v4725_v0 }
 0xb78   : > { %4361 = vmatpush3.bf16.msra.mxu0 %v4593_v62 }
 0xb79   : > { %4362 = vmatprep.subr.bf16.mxu0 %v4725_v0 }
 0xb7c   : > { %4363 = vmatpush3.bf16.msra.mxu0 %v4594_v11 }
 0xb7d   : > { %4364 = vmatprep.subr.bf16.mxu0 %v4725_v0 }
 0xb80   : > { %4365 = vmatpush3.bf16.msra.mxu0 %v4595_v12 }
 0xb81   : > { %4366 = vmatprep.subr.bf16.mxu0 %v4725_v0 }
 0xb84   : > { %4367 = vmatpush3.bf16.msra.mxu0 %v4596_v14 }
 0xb85   : > { %4368 = vmatprep.subr.bf16.mxu0 %v4725_v0 }
 0xb88   : > { %4369 = vmatpush3.bf16.msra.mxu0 %v4597_v15 }
 0xb89   : > { %4370 = vmatprep.subr.bf16.mxu0 %v4725_v0 }
 0xb8c   : > { %4371 = vmatpush3.bf16.msra.mxu0 %v4598_v18 }
 0xc22   : > { %v2917_v19 = vpop.f32.mrf.mxu1 }
 0xc23   : > { %v2918_v22 = vadd.f32 %v3769_v46, %v2917_v19  ;;  %v3809_v19 = vld [vmem:[%s5797_s5 + $0x5] ss:$0 sm:$0xff] }
 0xc24   : > { %v4320_v23 = vpop.f32.mrf.mxu1 }
 0xc25   : > { %2924 = vst.msk [vmem:[#allocation2 + $0x8] sm:$0xff] %vm390_vm0, %v2918_v22  ;;  %v3627_v23 = vld [vmem:[%s5799_s7 + $0x1] ss:$0 sm:$0xff] }
 0xc26   : > { %v2920_v24 = vpop.f32.mrf.mxu1 }
 0xc27   : > { %v2921_v25 = vadd.f32 %v3769_v46, %v2920_v24 }
 0xc28   : > { %v4321_v27 = vpop.f32.mrf.mxu1 }
 0xc29   : > { %2925 = vst.msk [vmem:[#allocation2 + $0x10] sm:$0xff] %vm390_vm0, %v2921_v25 }
 0xc2c   : > { %v2930_v28 = vld [vmem:[#allocation2 + $0x5] sm:$0xff] }
 0xc2d   : > { %2934 = vrot.lane.b32.xlu0 %v2930_v28, %s5842_s0  ;;  %v2926_v29 = vld [vmem:[#allocation2 + $0x4] sm:$0xff]  ;;  %v1932_v28 = vadd.f32 %v3627_v23, %v5426_v20 }
 0xc2e   : > { %v5683_v30 = vpop.f32.mrf.mxu0  ;;  %2928 = vst.msk [vmem:[#allocation3] sm:$0xff] %vm390_vm0, %v2926_v29  ;;  %v2942_v32 = vld [vmem:[#allocation2 + $0x6] sm:$0xff]  ;;  %v1935_v29 = vadd.f32 %v3627_v23, %v5429_v26 }
 0xc2f   : > { %v2954_v36 = vld [vmem:[#allocation2 + $0x7] sm:$0xff] }
 0xc30   : > { %v4340_v31 = vpop.f32.mrf.mxu0  ;;  %v2931_v16 = vld [vmem:[#allocation2 + $0xd] sm:$0xff] }
 0xc31   : > { %2946 = vrot.lane.b32.xlu0 %v2942_v32, %s5843_s3  ;;  %2936 = vrot.lane.b32.xlu1 %v2931_v16, %s5842_s0  ;;  %v3014_v34 = vld [vmem:[#allocation2 + $0xc] sm:$0xff]  ;;  %v3015_v54 = vld [vmem:[#allocation2 + $0x14] sm:$0xff] }
 0xc32   : > { %v5688_v33 = vpop.f32.mrf.mxu0  ;;  %v2943_v37 = vld [vmem:[#allocation2 + $0xe] sm:$0xff]  ;;  %2929 = vst.msk [vmem:[#allocation3 + $0x8] sm:$0xff] %vm390_vm0, %v3014_v34 }
 0xc33   : > { %v2966_v39 = vld [vmem:[#allocation2 + $0x8] sm:$0xff]  ;;  %v2967_v43 = vld [vmem:[#allocation2 + $0x10] sm:$0xff] }
 0xc34   : > { %v4341_v35 = vpop.f32.mrf.mxu0  ;;  %v2955_v40 = vld [vmem:[#allocation2 + $0xf] sm:$0xff] }
 0xc35   : > { %2958 = vrot.lane.b32.xlu0 %v2954_v36, %s5844_s18  ;;  %2948 = vrot.lane.b32.xlu1 %v2943_v37, %s5843_s3  ;;  %v2978_v42 = vld [vmem:[#allocation2 + $0x9] sm:$0xff]  ;;  %v2979_v47 = vld [vmem:[#allocation2 + $0x11] sm:$0xff]  ;;  %v1939_v35 = vmax.f32 %v1935_v29, 0.0 }
 0xc36   : > { %v2990_v45 = vld [vmem:[#allocation2 + $0xa] sm:$0xff]  ;;  %v2991_v52 = vld [vmem:[#allocation2 + $0x12] sm:$0xff] }
 0xc37   : > { %v3002_v51 = vld [vmem:[#allocation2 + $0xb] sm:$0xff]  ;;  %v3003_v53 = vld [vmem:[#allocation2 + $0x13] sm:$0xff] }
 0xc39   : > { %2970 = vrot.lane.b32.xlu0 %v2966_v39, %s5837_s26  ;;  %2960 = vrot.lane.b32.xlu1 %v2955_v40, %s5844_s18  ;;  %s3818_s18 = sshll.u32 %s4813_s17, 4  ;;  %s4736_s17 = smov [#allocation10]  }
 0xc3a   : > { %s5751_s21 = scalar_lea.hbm %s5802_s10, %s3818_s18  ;;  %s4655_s22 = sshll.u32 %s4736_s17, 4  ;;  %s4656_s22 = int_to_ptr.vmem [resolvable:$false] %s4655_s22 }
 0xc3d   : > { %2982 = vrot.lane.b32.xlu0 %v2978_v42, %s5838_s12  ;;  %2972 = vrot.lane.b32.xlu1 %v2967_v43, %s5837_s26  ;;  %s4657_s26 = scalar_lea.vmem %s4656_s22, 32 }
 0xc41   : > { %2994 = vrot.lane.b32.xlu0 %v2990_v45, %s5839_s29  ;;  %2984 = vrot.lane.b32.xlu1 %v2979_v47, %s5838_s12 }
 0xc45   : > { %3006 = vrot.lane.b32.xlu0 %v3002_v51, %s5840_s25  ;;  %2996 = vrot.lane.b32.xlu1 %v2991_v52, %s5839_s29 }
 0xc49   : > { %3018 = vrot.lane.b32.xlu0 %v3014_v34, %s5841_s11  ;;  %3008 = vrot.lane.b32.xlu1 %v3003_v53, %s5840_s25  ;;  %v1938_v34 = vmax.f32 %v1932_v28, 0.0 }
 0xc4d   : > { %3020 = vrot.lane.b32.xlu1 %v3015_v54, %s5841_s11  ;;  %s381_s11 = sand.u32 1, %s4711_s14  }
 0xc4e   : > { %s382_s8 = scalar_lea.vmem [#allocation10], %s381_s11  ;;  %s3362_s28 = scalar_lea.sflag [#allocation7], %s381_s11 }
 0xc4f   : > { %s3374_s27 = sshll.u32 %s382_s8, 4  ;;  %s5753_s27 = int_to_ptr.vmem [resolvable:$true] %s3374_s27 }
 0xc50   : > { %s4651_s15 = scalar_lea.vmem %s5753_s27, 16  ;;  %p4658_p11 = scmp.lt.s32.totalorder %s5753_s27, %s4656_s22 }
 0xc51   : > { %p4652_p10 = scmp.ne.s32.totalorder %s5753_s27, %s4651_s15  ;;  %p4659_p0 = scmp.lt.s32.totalorder %s4657_s26, %s4651_s15 }
 0xc53   : > { %p4653_p12 = pnand %p4652_p10, %p4830_p5  ;;  %p4660_p1 = por %p4659_p0, %p4658_p11 }
 0xc55   : > { %p4654_p8 = pneg %p4653_p12 }
 0xc57   : > { %p4661_p3 = pnand %p4660_p1, %p4654_p8 }
 0xc9f   : > { %v2935_v55 = vpop.permute.xlu0 %2934 }
 0xca0   : > { %2940 = vst.msk [vmem:[#allocation3] sm:$0xff] %vm640_vm3, %v2935_v55 }
 0xca3   : > { %v2947_v56 = vpop.permute.xlu0 %2946  ;;  %v2937_v57 = vpop.permute.xlu1 %2936 }
 0xca4   : > { %2952 = vst.msk [vmem:[#allocation3] sm:$0xff] %vm653_vm4, %v2947_v56 }
 0xca5   : > { %2941 = vst.msk [vmem:[#allocation3 + $0x8] sm:$0xff] %vm640_vm3, %v2937_v57 }
 0xca7   : > { %v2959_v58 = vpop.permute.xlu0 %2958  ;;  %v2949_v59 = vpop.permute.xlu1 %2948 }
 0xca8   : > { %2964 = vst.msk [vmem:[#allocation3] sm:$0xff] %vm666_vm5, %v2959_v58 }
 0xca9   : > { %2953 = vst.msk [vmem:[#allocation3 + $0x8] sm:$0xff] %vm653_vm4, %v2949_v59 }
 0xcab   : > { %v2971_v60 = vpop.permute.xlu0 %2970  ;;  %v2961_v61 = vpop.permute.xlu1 %2960 }
 0xcac   : > { %2976 = vst.msk [vmem:[#allocation3] sm:$0xff] %vm679_vm6, %v2971_v60 }
 0xcad   : > { %2965 = vst.msk [vmem:[#allocation3 + $0x8] sm:$0xff] %vm666_vm5, %v2961_v61 }
 0xcaf   : > { %v2983_v63 = vpop.permute.xlu0 %2982  ;;  %v2973_v1 = vpop.permute.xlu1 %2972 }
 0xcb0   : > { %2988 = vst.msk [vmem:[#allocation3] sm:$0xff] %vm692_vm7, %v2983_v63 }
 0xcb1   : > { %2977 = vst.msk [vmem:[#allocation3 + $0x8] sm:$0xff] %vm679_vm6, %v2973_v1 }
 0xcb3   : > { %v2995_v13 = vpop.permute.xlu0 %2994  ;;  %v2985_v17 = vpop.permute.xlu1 %2984 }
 0xcb4   : > { %3000 = vst.msk [vmem:[#allocation3] sm:$0xff] %vm705_vm8, %v2995_v13 }
 0xcb5   : > { %2989 = vst.msk [vmem:[#allocation3 + $0x8] sm:$0xff] %vm692_vm7, %v2985_v17 }
 0xcb7   : > { %v3007_v50 = vpop.permute.xlu0 %3006  ;;  %v2997_v2 = vpop.permute.xlu1 %2996 }
 0xcb8   : > { %3012 = vst.msk [vmem:[#allocation3] sm:$0xff] %vm718_vm9, %v3007_v50 }
 0xcb9   : > { %3001 = vst.msk [vmem:[#allocation3 + $0x8] sm:$0xff] %vm705_vm8, %v2997_v2 }
 0xcbb   : > { %v3019_v3 = vpop.permute.xlu0 %3018  ;;  %v3009_v4 = vpop.permute.xlu1 %3008 }
 0xcbc   : > { %3024 = vst.msk [vmem:[#allocation3] sm:$0xff] %vm731_vm10, %v3019_v3 }
 0xcbd   : > { %3013 = vst.msk [vmem:[#allocation3 + $0x8] sm:$0xff] %vm718_vm9, %v3009_v4 }
 0xcbf   : > { %v3021_v5 = vpop.permute.xlu1 %3020 }
 0xcc0   : > { %3025 = vst.msk [vmem:[#allocation3 + $0x8] sm:$0xff] %vm731_vm10, %v3021_v5 }
 0xcc3   : > { %v3026_v6 = vld [vmem:[#allocation3] sm:$0xff] }
 0xcc7   : > { %v3027_v7 = vld [vmem:[#allocation3 + $0x8] sm:$0xff] }
 0xcc8   : > { %v3038_v8 = vpack.c.bf16 %v3027_v7, %v3026_v6 }
 0xcca   : > { %4353 = vmatmul.mubr.msk.bf16.vlgmr.msra.gmra.mxu1 %vm891_vm11, %v3038_v8 }
 0xd8a   : > { %v3225_v46 = vpop.f32.mrf.mxu1 }
 0xd8b   : > { %v3226_v22 = vadd.f32 %v3225_v46, %v5683_v30 }
 0xd8c   : > { %v4354_v24 = vpop.f32.mrf.mxu1 }
 0xd8d   : > { %v3240_v25 = vadd.f32 %v3809_v19, %v3226_v22 }
 0xd8e   : > { %v3228_v27 = vpop.f32.mrf.mxu1 }
 0xd8f   : > { %v3229_v0 = vadd.f32 %v3228_v27, %v5688_v33  ;;  %v3242_v32 = vmax.f32 %v3240_v25, 0.0  ;;  %v3271_v33 = vld [vmem:[%s5801_s9] sm:$0x1] }
 0xd90   : > { %v4355_v31 = vpop.f32.mrf.mxu1 }
 0xd91   : > { %v3241_v16 = vadd.f32 %v3809_v19, %v3229_v0  ;;  %v3244_v36 = vadd.f32 %v3242_v32, %v1938_v34 }
 0xd93   : > { %v3243_v30 = vmax.f32 %v3241_v16, 0.0 }
 0xd95   : > { %v3245_v37 = vadd.f32 %v3243_v30, %v1939_v35 }
 0xd97   : > { %v3246_v21 = vadd.f32 %v3245_v37, %v3244_v36 }
 0xd99   : > { %v3247_v38 = vrot.slane %v3246_v21, 4 }
 0xd9b   : > { %v3248_v39 = vadd.f32 %v3247_v38, %v3246_v21 }
 0xd9d   : > { %v3249_v40 = vrot.slane %v3248_v39, 2 }
 0xd9f   : > { %v3250_v41 = vadd.f32 %v3249_v40, %v3248_v39 }
 0xda1   : > { %v3251_v20 = vrot.slane %v3250_v41, 1 }
 0xda3   : > { %v3252_v42 = vadd.f32 %v3251_v20, %v3250_v41 }
 0xda5   : > { %v3253_v26 = vmul.f32 0.0625, %v3252_v42 }
 0xda7   : > { %v3270_v43 = vpack.c.bf16 %v3253_v26, %v3253_v26 }
 0xda9   : > { %4373 = vmatmul.mubr.bf16.vlgmr.msra.gmra.mxu0 %v3270_v43 }
 0xe69   : > { %v3354_v44 = vpop.f32.mrf.mxu0 }
 0xe6a   : > { %v3355_v45 = vadd.f32 %v3354_v44, %v3271_v33 }
 0xe6b   : > { %v4374_v47 = vpop.f32.mrf.mxu0 }
 0xe6c   : > { %3360 = vst [vmem:[%s382_s8] sm:$0x1] %v3355_v45 }
 0xe6d   : > { %v3357_v48 = vpop.f32.mrf.mxu0 }
 0xe6e   : > { %4664 = shalt.err (!%p4661_p3)
}
 0xe6f   : > { %s4665_s12 = scalar_lea.hbm %s5751_s21, 16  ;;  %s4669_s11 = scalar_lea.hbm %s5802_s10, 32 }
 0xe70   : > { %p4666_p2 = scmp.ne.s32.totalorder %s5751_s21, %s4665_s12  ;;  %p4670_p7 = scmp.lt.s32.totalorder %s5751_s21, %s5802_s10 }
 0xe71   : > { %p4671_p6 = scmp.lt.s32.totalorder %s4669_s11, %s4665_s12 }
 0xe72   : > { %p4667_p4 = pnand %p4666_p2, %p4830_p5 }
 0xe73   : > { %p4672_p9 = por %p4671_p6, %p4670_p7 }
 0xe74   : > { %p4668_p13 = pneg %p4667_p4 }
 0xe76   : > { %p4673_p10 = pnand %p4672_p9, %p4668_p13 }
 0xe78   : > { %4676 = shalt.err (!%p4673_p10)
}
 0xe79   : > { %4384 = dma.vmem_to_hbm [thread:$0]  (%p4830_p5), %s5753_s27, 16, %s5751_s21, %s3362_s28   ;;  %v4375_v49 = vpop.f32.mrf.mxu0 }
 0xe7a PF: > { %p4401_p12 = scmp.ge.s32.totalorder %s4719_s16, 2  ;;  %s3386_s18 = sand.u32 1, %s4707_s13  }
 0xe7b   : > { %p5845_p8 = scmp.ne.s32.totalorder %s5827_s24, 0  ;;  %s3387_s8 = scalar_lea.sflag [#allocation7], %s3386_s18 }
 0xe7d   : > { %p4394_p11 = pnand %p4401_p12, %p5845_p8 }
 0xe7f   : > { %p4395_p0 = pneg %p4394_p11 }
 0xe81   : > { %4702 = dma.done.wait (%p4395_p0), %s3387_s8, 16  }
 0xe82   : > { %4704 = vsyncadd (%p4395_p0), %s3387_s8, 4294967280  ;;  %s5846_s30 = sld [smem:[#allocation14_spill]]  ;;  %p22_p1 = scmp.ge.s32.totalorder %s4817_s19, 4  }
 0xe83   : > { %s5847_s15 = sld [smem:[#allocation15_spill]]  ;;  %s5848_s13 = smov %s4711_s14 }
 0xe84   : > { %s5850_s16 = smov %s4817_s19  ;;  %24 = sbr.rel (!%p22_p1) target bundleno = 9 (0x9), region = 131 }
 0xe88   : > { %s5849_s14 = smov %s5846_s30 }
 0xe89   :  { %3391 = vsyncpa [#allocation6], 1 }
 0xe8a   :  { %3393 = vsyncpa [#allocation6 + $0x1], 1 }
 0xe8b   :  { %3394 = vsyncpa [#allocation9], 1 }
 0xe8c   :  { %3395 = vsyncpa [#allocation7], 1 }
 0xe8d   :  { %3397 = vsyncpa [#allocation7 + $0x1], 1 }

</bundles_post_ra>
